<compile_context>
chip_gen: v5e
topology: v5e:2x2
jax: 0.10.0
libtpu: 0.0.40
codegen_flags: <defaults>
</compile_context>

<pallas_src>
import functools

import jax
import jax.numpy as jnp
from jax.experimental import pallas as pl
from jax.experimental.pallas import tpu as pltpu


def _vmem_spec():
    return pl.BlockSpec(memory_space=pltpu.MemorySpace.VMEM)


# ---------------------------------------------------------------------------
# time-embedding MLP:  v (N, T) -> Linear -> ReLU -> Linear -> emb (N, Cin)
# (tiny; its broadcast add into x is fused into the conv1 kernel below)
# ---------------------------------------------------------------------------
def mlp_kernel(v_ref, w1_ref, b1_ref, w2_ref, b2_ref, emb_ref):
    h = jnp.dot(v_ref[...], w1_ref[...], preferred_element_type=jnp.float32)
    h = jnp.maximum(h + b1_ref[...], 0.0)                         # ReLU
    emb_ref[...] = (jnp.dot(h, w2_ref[...], preferred_element_type=jnp.float32)
                    + b2_ref[...])


# ---------------------------------------------------------------------------
# conv stage: (per-channel affine + optional ReLU on the input) -> 3x3 conv
# (padding=1) -> emit pre-BN output tile + per-tile partial BN statistics.
# grid = (N, H // TH); the padded input image is built once per batch element
# in a VMEM scratch and reused across the (sequential) H-tile axis.
# ---------------------------------------------------------------------------
def conv_stage_kernel(x_ref, scale_ref, shift_ref, w_ref, b_ref,
                      out_ref, sum_ref, ssq_ref, xpad_ref,
                      *, apply_input_relu):
    _, H, W, Cin = x_ref.shape
    _, TH, _, Cout = out_ref.shape
    h = pl.program_id(1)

    # Build zero-padded (H+2, W+2, Cin) image for this batch element once
    # (first row tile); persists in VMEM scratch across the "arbitrary" h axis.
    # The input affine (+ ReLU) — time-emb shift for conv1, BN1+ReLU for conv2 —
    # is fused into this step, so no padded/normalized tensor ever hits HBM.
    @pl.when(h == 0)
    def _():
        xpad_ref[...] = jnp.zeros_like(xpad_ref)
        xin = x_ref[0].astype(jnp.float32) * scale_ref[...] + shift_ref[...]
        if apply_input_relu:
            xin = jnp.maximum(xin, 0.0)
        xpad_ref[1:H + 1, 1:W + 1, :] = xin

    # im2col for this row tile: one (TH*W, 9*Cin) bf16 patch matrix and a
    # single K = 9*Cin MXU matmul with f32 accumulation.
    r0 = pl.multiple_of(h * TH, TH)
    window = xpad_ref[pl.ds(r0, TH + 2), :, :]            # (TH+2, W+2, Cin)
    taps = []
    for dy in range(3):
        for dx in range(3):
            taps.append(window[dy:dy + TH, dx:dx + W, :].reshape(TH * W, Cin))
    patches = jnp.concatenate(taps, axis=-1).astype(jnp.bfloat16)  # (TH*W, 9*Cin)
    acc = jnp.dot(patches, w_ref[...], preferred_element_type=jnp.float32)
    acc = acc + b_ref[...]                                 # conv bias (1, Cout)

    out_ref[...] = acc.reshape(out_ref.shape)              # pre-BN conv output
    # Partial BatchNorm statistics for this tile (reduced globally outside).
    sum_ref[...] = jnp.sum(acc, axis=0, keepdims=True).reshape(sum_ref.shape)
    ssq_ref[...] = jnp.sum(acc * acc, axis=0, keepdims=True).reshape(ssq_ref.shape)


# ---------------------------------------------------------------------------
# final BatchNorm-apply + ReLU (tiled elementwise)
# ---------------------------------------------------------------------------
def bn_relu_kernel(x_ref, scale_ref, shift_ref, o_ref):
    y = x_ref[...] * scale_ref[...] + shift_ref[...]
    o_ref[...] = jnp.maximum(y, 0.0)


def _conv_stage(xin, in_scale, in_shift, wmat, bias, *, th, apply_input_relu):
    N, H, W, cin = xin.shape
    cout = wmat.shape[-1]
    ht = H // th
    kernel = functools.partial(conv_stage_kernel,
                               apply_input_relu=apply_input_relu)
    flops = 2 * N * H * W * 9 * cin * cout
    bytes_accessed = (xin.size * 4 + wmat.size * 2 + bias.size * 4
                      + N * H * W * cout * 4 + 2 * N * ht * cout * 4)

    pre, psum, pssq = pl.pallas_call(
        kernel,
        out_shape=(
            jax.ShapeDtypeStruct((N, H, W, cout), jnp.float32),    # pre-BN out
            jax.ShapeDtypeStruct((N, ht, 1, cout), jnp.float32),   # tile sums
            jax.ShapeDtypeStruct((N, ht, 1, cout), jnp.float32),   # tile sumsq
        ),
        grid_spec=pltpu.PrefetchScalarGridSpec(
            num_scalar_prefetch=0,
            grid=(N, ht),
            in_specs=[
                pl.BlockSpec((1, H, W, cin), lambda n, h: (n, 0, 0, 0)),
                pl.BlockSpec((1, 1, cin), lambda n, h: (n, 0, 0)),
                pl.BlockSpec((1, 1, cin), lambda n, h: (n, 0, 0)),
                pl.BlockSpec((9 * cin, cout), lambda n, h: (0, 0)),
                pl.BlockSpec((1, cout), lambda n, h: (0, 0)),
            ],
            out_specs=[
                pl.BlockSpec((1, th, W, cout), lambda n, h: (n, h, 0, 0)),
                pl.BlockSpec((1, 1, 1, cout), lambda n, h: (n, h, 0, 0)),
                pl.BlockSpec((1, 1, 1, cout), lambda n, h: (n, h, 0, 0)),
            ],
            scratch_shapes=[pltpu.VMEM((H + 2, W + 2, cin), jnp.float32)],
        ),
        compiler_params=pltpu.CompilerParams(
            # batch axis parallel (v7x 2 TensorCores); H-tile axis "arbitrary"
            # because the padded-image scratch is built at h == 0 and reused.
            dimension_semantics=("parallel", "arbitrary"),
            vmem_limit_bytes=64 * 1024 * 1024,     # sized for v7x 64 MiB VMEM
        ),
        cost_estimate=pl.CostEstimate(flops=flops, transcendentals=0,
                                      bytes_accessed=bytes_accessed),
    )(xin, in_scale, in_shift, wmat, bias)

    # Global BatchNorm batch statistics (training mode, biased variance),
    # reduced over all tiles in f32; var = E[x^2] - E[x]^2 clamped at 0.
    cnt = N * H * W
    mean = jnp.sum(psum, axis=(0, 1, 2)) / cnt
    var = jnp.maximum(jnp.sum(pssq, axis=(0, 1, 2)) / cnt - mean * mean, 0.0)
    return pre, mean, var


def init_params(key, in_ch, out_ch, time_emb_ch):
    ks = jax.random.split(key, 8)
    s = 0.1
    return dict(
        # Linear weights stored transposed (in_features, out_features).
        mlp_w1=jax.random.normal(ks[0], (time_emb_ch, in_ch), jnp.float32) * s,
        mlp_b1=jax.random.normal(ks[1], (1, in_ch), jnp.float32) * s,
        mlp_w2=jax.random.normal(ks[2], (in_ch, in_ch), jnp.float32) * s,
        mlp_b2=jax.random.normal(ks[3], (1, in_ch), jnp.float32) * s,
        # Conv weights stored HWIO (3, 3, in, out); PyTorch is OIHW.
        conv1_w=jax.random.normal(ks[4], (3, 3, in_ch, out_ch), jnp.float32) * s,
        conv1_b=jax.random.normal(ks[5], (1, out_ch), jnp.float32) * s,
        bn1_gamma=jnp.ones((1, out_ch), jnp.float32),
        bn1_beta=jnp.zeros((1, out_ch), jnp.float32),
        conv2_w=jax.random.normal(ks[6], (3, 3, out_ch, out_ch), jnp.float32) * s,
        conv2_b=jax.random.normal(ks[7], (1, out_ch), jnp.float32) * s,
        bn2_gamma=jnp.ones((1, out_ch), jnp.float32),
        bn2_beta=jnp.zeros((1, out_ch), jnp.float32),
    )


def conv_block_forward(x_nchw, v, p):
    """x_nchw: (N, C_in, H, W), v: (N, time_emb_ch) -> (N, C_out, H, W)."""
    x = jnp.transpose(x_nchw, (0, 2, 3, 1)).astype(jnp.float32)   # NCHW -> NHWC
    N, H, W, Cin = x.shape
    Cout = p['conv1_w'].shape[-1]
    eps = 1e-5

    # Row-tile size along H (demo: H=16 -> TH=8, 2 tiles per batch element).
    if H % 32 == 0:
        th = 32
    elif H % 8 == 0:
        th = 8
    else:
        th = H
    ht = H // th

    # 1) tiny time-embedding MLP -> (N, Cin); broadcast add fused into conv1.
    emb = pl.pallas_call(
        mlp_kernel,
        out_shape=jax.ShapeDtypeStruct((N, Cin), jnp.float32),
        in_specs=[_vmem_spec()] * 5,
        out_specs=_vmem_spec(),
    )(v.astype(jnp.float32), p['mlp_w1'], p['mlp_b1'], p['mlp_w2'], p['mlp_b2'])

    # 3x3 conv weights pre-reshaped to (9*Cin, Cout) bf16 for a single
    # K = 9*Cin MXU matmul per tile (f32 accumulation in-kernel).
    w1 = p['conv1_w'].reshape(9 * Cin, Cout).astype(jnp.bfloat16)
    w2 = p['conv2_w'].reshape(9 * Cout, Cout).astype(jnp.bfloat16)

    # 2) conv1: input transform is x + emb[n]  (scale = 1, shift = emb, no ReLU).
    ones_in = jnp.ones((N, 1, Cin), jnp.float32)
    pre1, mean1, var1 = _conv_stage(x, ones_in, emb.reshape(N, 1, Cin),
                                    w1, p['conv1_b'], th=th,
                                    apply_input_relu=False)
    scale1 = p['bn1_gamma'].reshape(-1) * jax.lax.rsqrt(var1 + eps)
    shift1 = p['bn1_beta'].reshape(-1) - mean1 * scale1

    # 3) conv2: BN1 + ReLU are applied on-the-fly while conv2 loads its input.
    in_scale2 = jnp.broadcast_to(scale1.reshape(1, 1, Cout), (N, 1, Cout))
    in_shift2 = jnp.broadcast_to(shift1.reshape(1, 1, Cout), (N, 1, Cout))
    pre2, mean2, var2 = _conv_stage(pre1, in_scale2, in_shift2,
                                    w2, p['conv2_b'], th=th,
                                    apply_input_relu=True)
    scale2 = p['bn2_gamma'].reshape(-1) * jax.lax.rsqrt(var2 + eps)
    shift2 = p['bn2_beta'].reshape(-1) - mean2 * scale2

    # 4) final BN2 + ReLU (tiled elementwise).
    y = pl.pallas_call(
        bn_relu_kernel,
        out_shape=jax.ShapeDtypeStruct((N, H, W, Cout), jnp.float32),
        grid_spec=pltpu.PrefetchScalarGridSpec(
            num_scalar_prefetch=0,
            grid=(N, ht),
            in_specs=[
                pl.BlockSpec((1, th, W, Cout), lambda n, h: (n, h, 0, 0)),
                pl.BlockSpec((1, 1, 1, Cout), lambda n, h: (0, 0, 0, 0)),
                pl.BlockSpec((1, 1, 1, Cout), lambda n, h: (0, 0, 0, 0)),
            ],
            out_specs=pl.BlockSpec((1, th, W, Cout), lambda n, h: (n, h, 0, 0)),
        ),
        compiler_params=pltpu.CompilerParams(
            dimension_semantics=("parallel", "parallel")),
    )(pre2, scale2.reshape(1, 1, 1, Cout), shift2.reshape(1, 1, 1, Cout))

    # TODO(synk): BatchNorm running_mean/running_var updates are a training
    # side effect and do not affect this forward output; not reproduced here.
    return jnp.transpose(y, (0, 3, 1, 2))   # NHWC -> NCHW


if __name__ == "__main__":
    N, in_ch, out_ch, time_emb_ch, H, W = 2, 4, 8, 8, 16, 16

    key = jax.random.PRNGKey(0)
    kx, kv, kp = jax.random.split(key, 3)
    x = jax.random.normal(kx, (N, in_ch, H, W), jnp.float32)   # NCHW, like PyTorch
    v = jax.random.normal(kv, (N, time_emb_ch), jnp.float32)
    params = init_params(kp, in_ch, out_ch, time_emb_ch)

    y = jax.jit(conv_block_forward)(x, v, params)
    jax.block_until_ready(y)
    assert y.shape == (N, out_ch, H, W)
    assert bool(jnp.all(jnp.isfinite(y)))
    print("KERNEL_OK")
</pallas_src>

<mosaic_0001>
module attributes {stable_mosaic.version = 11 : i64} {
  func.func @bn_relu_kernel(%arg0: i32, %arg1: i32, %arg2: memref<1x8x16x8xf32, #tpu.memory_space<vmem>>, %arg3: memref<1x1x1x8xf32, #tpu.memory_space<vmem>>, %arg4: memref<1x1x1x8xf32, #tpu.memory_space<vmem>>, %arg5: memref<1x8x16x8xf32, #tpu.memory_space<vmem>>) attributes {dimension_semantics = [#tpu.dimension_semantics<parallel>, #tpu.dimension_semantics<parallel>], iteration_bounds = array<i64: 2, 2>, scalar_prefetch = 0 : i64, scratch_operands = 0 : i64, tpu.core_type = #tpu.core_type<tc>, window_params = [{transform_indices = @transform_0, window_bounds = array<i64: 1, 8, 16, 8>}, {pipeline_mode = #tpu.pipeline_mode<synchronous>, transform_indices = @transform_1, window_bounds = array<i64: 1, 1, 1, 8>}, {pipeline_mode = #tpu.pipeline_mode<synchronous>, transform_indices = @transform_2, window_bounds = array<i64: 1, 1, 1, 8>}, {transform_indices = @transform_3, window_bounds = array<i64: 1, 8, 16, 8>}]} {
    %c0 = arith.constant 0 : index
    %c0_0 = arith.constant 0 : index
    %c0_1 = arith.constant 0 : index
    %c0_2 = arith.constant 0 : index
    %0 = vector.load %arg2[%c0, %c0_0, %c0_1, %c0_2] : memref<1x8x16x8xf32, #tpu.memory_space<vmem>>, vector<1x8x16x8xf32>
    %c0_3 = arith.constant 0 : index
    %c0_4 = arith.constant 0 : index
    %c0_5 = arith.constant 0 : index
    %c0_6 = arith.constant 0 : index
    %1 = vector.load %arg3[%c0_3, %c0_4, %c0_5, %c0_6] : memref<1x1x1x8xf32, #tpu.memory_space<vmem>>, vector<1x1x1x8xf32>
    %2 = vector.broadcast %1 : vector<1x1x1x8xf32> to vector<1x8x16x8xf32>
    %3 = arith.mulf %0, %2 : vector<1x8x16x8xf32>
    %c0_7 = arith.constant 0 : index
    %c0_8 = arith.constant 0 : index
    %c0_9 = arith.constant 0 : index
    %c0_10 = arith.constant 0 : index
    %4 = vector.load %arg4[%c0_7, %c0_8, %c0_9, %c0_10] : memref<1x1x1x8xf32, #tpu.memory_space<vmem>>, vector<1x1x1x8xf32>
    %5 = vector.broadcast %4 : vector<1x1x1x8xf32> to vector<1x8x16x8xf32>
    %6 = arith.addf %3, %5 : vector<1x8x16x8xf32>
    %cst = arith.constant 0.000000e+00 : f32
    %7 = vector.broadcast %cst : f32 to vector<1x8x16x8xf32>
    %8 = arith.maximumf %6, %7 : vector<1x8x16x8xf32>
    %c0_11 = arith.constant 0 : index
    %c0_12 = arith.constant 0 : index
    %c0_13 = arith.constant 0 : index
    %c0_14 = arith.constant 0 : index
    %9 = vector.load %arg5[%c0_11, %c0_12, %c0_13, %c0_14] : memref<1x8x16x8xf32, #tpu.memory_space<vmem>>, vector<1x8x16x8xf32>
    tpu.vector_store %arg5[%c0_11, %c0_12, %c0_13, %c0_14], %8 {strides = array<i32>} : memref<1x8x16x8xf32, #tpu.memory_space<vmem>>, vector<1x8x16x8xf32>,
    return
  }
  func.func @transform_0(%arg0: i32, %arg1: i32) -> (i32, i32, i32, i32) {
    %c0_i32 = arith.constant 0 : i32
    %c0_i32_0 = arith.constant 0 : i32
    %c0_i32_1 = arith.constant 0 : i32
    return %arg0, %arg1, %c0_i32, %c0_i32_0 : i32, i32, i32, i32
  }
  func.func @transform_1(%arg0: i32, %arg1: i32) -> (i32, i32, i32, i32) {
    %c0_i32 = arith.constant 0 : i32
    %c0_i32_0 = arith.constant 0 : i32
    %c0_i32_1 = arith.constant 0 : i32
    %c0_i32_2 = arith.constant 0 : i32
    %c0_i32_3 = arith.constant 0 : i32
    return %c0_i32, %c0_i32_0, %c0_i32_1, %c0_i32_2 : i32, i32, i32, i32
  }
  func.func @transform_2(%arg0: i32, %arg1: i32) -> (i32, i32, i32, i32) {
    %c0_i32 = arith.constant 0 : i32
    %c0_i32_0 = arith.constant 0 : i32
    %c0_i32_1 = arith.constant 0 : i32
    %c0_i32_2 = arith.constant 0 : i32
    %c0_i32_3 = arith.constant 0 : i32
    return %c0_i32, %c0_i32_0, %c0_i32_1, %c0_i32_2 : i32, i32, i32, i32
  }
  func.func @transform_3(%arg0: i32, %arg1: i32) -> (i32, i32, i32, i32) {
    %c0_i32 = arith.constant 0 : i32
    %c0_i32_0 = arith.constant 0 : i32
    %c0_i32_1 = arith.constant 0 : i32
    return %arg0, %arg1, %c0_i32, %c0_i32_0 : i32, i32, i32, i32
  }
}

module attributes {stable_mosaic.version = 11 : i64} {
  func.func @conv_stage_kernel(%arg0: i32, %arg1: i32, %arg2: memref<1x16x16x4xf32, #tpu.memory_space<vmem>>, %arg3: memref<1x1x4xf32, #tpu.memory_space<vmem>>, %arg4: memref<1x1x4xf32, #tpu.memory_space<vmem>>, %arg5: memref<36x8xbf16, #tpu.memory_space<vmem>>, %arg6: memref<1x8xf32, #tpu.memory_space<vmem>>, %arg7: memref<1x8x16x8xf32, #tpu.memory_space<vmem>>, %arg8: memref<1x1x1x8xf32, #tpu.memory_space<vmem>>, %arg9: memref<1x1x1x8xf32, #tpu.memory_space<vmem>>, %arg10: memref<18x18x4xf32, #tpu.memory_space<vmem>>) attributes {dimension_semantics = [#tpu.dimension_semantics<parallel>, #tpu.dimension_semantics<arbitrary>], iteration_bounds = array<i64: 2, 2>, scalar_prefetch = 0 : i64, scratch_operands = 1 : i64, tpu.core_type = #tpu.core_type<tc>, window_params = [{transform_indices = @transform_0, window_bounds = array<i64: 1, 16, 16, 4>}, {transform_indices = @transform_1, window_bounds = array<i64: 1, 1, 4>}, {transform_indices = @transform_2, window_bounds = array<i64: 1, 1, 4>}, {pipeline_mode = #tpu.pipeline_mode<synchronous>, transform_indices = @transform_3, window_bounds = array<i64: 36, 8>}, {pipeline_mode = #tpu.pipeline_mode<synchronous>, transform_indices = @transform_4, window_bounds = array<i64: 1, 8>}, {transform_indices = @transform_5, window_bounds = array<i64: 1, 8, 16, 8>}, {transform_indices = @transform_6, window_bounds = array<i64: 1, 1, 1, 8>}, {transform_indices = @transform_7, window_bounds = array<i64: 1, 1, 1, 8>}]} {
    %c0_i32 = arith.constant 0 : i32
    %0 = arith.cmpi eq, %arg1, %c0_i32 : i32
    %1 = arith.extui %0 : i1 to i32
    %c0_i32_0 = arith.constant 0 : i32
    %2 = arith.cmpi ne, %1, %c0_i32_0 : i32
    scf.if %2 {
      %cst_20 = arith.constant 0.000000e+00 : f32
      %43 = vector.broadcast %cst_20 : f32 to vector<18x18x4xf32>
      %c0_21 = arith.constant 0 : index
      %c0_22 = arith.constant 0 : index
      %c0_23 = arith.constant 0 : index
      %44 = vector.load %arg10[%c0_21, %c0_22, %c0_23] : memref<18x18x4xf32, #tpu.memory_space<vmem>>, vector<18x18x4xf32>
      tpu.vector_store %arg10[%c0_21, %c0_22, %c0_23], %43 {strides = array<i32>} : memref<18x18x4xf32, #tpu.memory_space<vmem>>, vector<18x18x4xf32>,
      %c0_24 = arith.constant 0 : index
      %c0_25 = arith.constant 0 : index
      %c0_26 = arith.constant 0 : index
      %c0_27 = arith.constant 0 : index
      %45 = vector.load %arg2[%c0_24, %c0_25, %c0_26, %c0_27] : memref<1x16x16x4xf32, #tpu.memory_space<vmem>>, vector<1x16x16x4xf32>
      %46 = vector.shape_cast %45 : vector<1x16x16x4xf32> to vector<16x16x4xf32>
      %c0_28 = arith.constant 0 : index
      %c0_29 = arith.constant 0 : index
      %c0_30 = arith.constant 0 : index
      %47 = vector.load %arg3[%c0_28, %c0_29, %c0_30] : memref<1x1x4xf32, #tpu.memory_space<vmem>>, vector<1x1x4xf32>
      %48 = vector.broadcast %47 : vector<1x1x4xf32> to vector<16x16x4xf32>
      %49 = arith.mulf %46, %48 : vector<16x16x4xf32>
      %c0_31 = arith.constant 0 : index
      %c0_32 = arith.constant 0 : index
      %c0_33 = arith.constant 0 : index
      %50 = vector.load %arg4[%c0_31, %c0_32, %c0_33] : memref<1x1x4xf32, #tpu.memory_space<vmem>>, vector<1x1x4xf32>
      %51 = vector.broadcast %50 : vector<1x1x4xf32> to vector<16x16x4xf32>
      %52 = arith.addf %49, %51 : vector<16x16x4xf32>
      %c1 = arith.constant 1 : index
      %c1_34 = arith.constant 1 : index
      %c0_35 = arith.constant 0 : index
      %53 = vector.load %arg10[%c1, %c1_34, %c0_35] : memref<18x18x4xf32, #tpu.memory_space<vmem>>, vector<16x16x4xf32>
      tpu.vector_store %arg10[%c1, %c1_34, %c0_35], %52 {strides = array<i32>} : memref<18x18x4xf32, #tpu.memory_space<vmem>>, vector<16x16x4xf32>,
    } else {
    }
    %c8_i32 = arith.constant 8 : i32
    %3 = arith.muli %arg1, %c8_i32 : i32
    %4 = tpu.assume_multiple %3, 8 : i32
    %5 = arith.index_cast %4 : i32 to index
    %c0 = arith.constant 0 : index
    %c0_1 = arith.constant 0 : index
    %6 = vector.load %arg10[%5, %c0, %c0_1] : memref<18x18x4xf32, #tpu.memory_space<vmem>>, vector<10x18x4xf32>
    %7 = vector.extract_strided_slice %6 {offsets = [0, 0, 0], sizes = [8, 16, 4], strides = [1, 1, 1]} : vector<10x18x4xf32> to vector<8x16x4xf32>
    %8 = vector.shape_cast %7 : vector<8x16x4xf32> to vector<128x4xf32>
    %9 = vector.extract_strided_slice %6 {offsets = [0, 1, 0], sizes = [8, 16, 4], strides = [1, 1, 1]} : vector<10x18x4xf32> to vector<8x16x4xf32>
    %10 = vector.shape_cast %9 : vector<8x16x4xf32> to vector<128x4xf32>
    %11 = vector.extract_strided_slice %6 {offsets = [0, 2, 0], sizes = [8, 16, 4], strides = [1, 1, 1]} : vector<10x18x4xf32> to vector<8x16x4xf32>
    %12 = vector.shape_cast %11 : vector<8x16x4xf32> to vector<128x4xf32>
    %13 = vector.extract_strided_slice %6 {offsets = [1, 0, 0], sizes = [8, 16, 4], strides = [1, 1, 1]} : vector<10x18x4xf32> to vector<8x16x4xf32>
    %14 = vector.shape_cast %13 : vector<8x16x4xf32> to vector<128x4xf32>
    %15 = vector.extract_strided_slice %6 {offsets = [1, 1, 0], sizes = [8, 16, 4], strides = [1, 1, 1]} : vector<10x18x4xf32> to vector<8x16x4xf32>
    %16 = vector.shape_cast %15 : vector<8x16x4xf32> to vector<128x4xf32>
    %17 = vector.extract_strided_slice %6 {offsets = [1, 2, 0], sizes = [8, 16, 4], strides = [1, 1, 1]} : vector<10x18x4xf32> to vector<8x16x4xf32>
    %18 = vector.shape_cast %17 : vector<8x16x4xf32> to vector<128x4xf32>
    %19 = vector.extract_strided_slice %6 {offsets = [2, 0, 0], sizes = [8, 16, 4], strides = [1, 1, 1]} : vector<10x18x4xf32> to vector<8x16x4xf32>
    %20 = vector.shape_cast %19 : vector<8x16x4xf32> to vector<128x4xf32>
    %21 = vector.extract_strided_slice %6 {offsets = [2, 1, 0], sizes = [8, 16, 4], strides = [1, 1, 1]} : vector<10x18x4xf32> to vector<8x16x4xf32>
    %22 = vector.shape_cast %21 : vector<8x16x4xf32> to vector<128x4xf32>
    %23 = vector.extract_strided_slice %6 {offsets = [2, 2, 0], sizes = [8, 16, 4], strides = [1, 1, 1]} : vector<10x18x4xf32> to vector<8x16x4xf32>
    %24 = vector.shape_cast %23 : vector<8x16x4xf32> to vector<128x4xf32>
    %25 = tpu.concatenate %8, %10, %12, %14, %16, %18, %20, %22, %24 in 1 : vector<128x4xf32>, vector<128x4xf32>, vector<128x4xf32>, vector<128x4xf32>, vector<128x4xf32>, vector<128x4xf32>, vector<128x4xf32>, vector<128x4xf32>, vector<128x4xf32> -> vector<128x36xf32>
    %26 = arith.truncf %25 : vector<128x36xf32> to vector<128x36xbf16>
    %c0_2 = arith.constant 0 : index
    %c0_3 = arith.constant 0 : index
    %27 = vector.load %arg5[%c0_2, %c0_3] : memref<36x8xbf16, #tpu.memory_space<vmem>>, vector<36x8xbf16>
    %cst = arith.constant dense<0.000000e+00> : vector<128x8xf32>
    %28 = tpu.matmul %26, %27, %cst {dimension_numbers = #tpu.dot_dimension_numbers<[1], [0], [0], [1], [0, 0, 1, 1], [], []>} : vector<128x36xbf16>, vector<36x8xbf16>, vector<128x8xf32> -> vector<128x8xf32>
    %c0_4 = arith.constant 0 : index
    %c0_5 = arith.constant 0 : index
    %29 = vector.load %arg6[%c0_4, %c0_5] : memref<1x8xf32, #tpu.memory_space<vmem>>, vector<1x8xf32>
    %30 = vector.broadcast %29 : vector<1x8xf32> to vector<128x8xf32>
    %31 = arith.addf %28, %30 : vector<128x8xf32>
    %32 = vector.shape_cast %31 : vector<128x8xf32> to vector<1x8x16x8xf32>
    %c0_6 = arith.constant 0 : index
    %c0_7 = arith.constant 0 : index
    %c0_8 = arith.constant 0 : index
    %c0_9 = arith.constant 0 : index
    %33 = vector.load %arg7[%c0_6, %c0_7, %c0_8, %c0_9] : memref<1x8x16x8xf32, #tpu.memory_space<vmem>>, vector<1x8x16x8xf32>
    tpu.vector_store %arg7[%c0_6, %c0_7, %c0_8, %c0_9], %32 {strides = array<i32>} : memref<1x8x16x8xf32, #tpu.memory_space<vmem>>, vector<1x8x16x8xf32>,
    %cst_10 = arith.constant dense<0.000000e+00> : vector<8xf32>
    %34 = vector.multi_reduction <add>, %31, %cst_10 [0] : vector<128x8xf32> to vector<8xf32>
    %35 = vector.shape_cast %34 : vector<8xf32> to vector<1x8xf32>
    %36 = vector.shape_cast %35 : vector<1x8xf32> to vector<1x1x1x8xf32>
    %c0_11 = arith.constant 0 : index
    %c0_12 = arith.constant 0 : index
    %c0_13 = arith.constant 0 : index
    %c0_14 = arith.constant 0 : index
    %37 = vector.load %arg8[%c0_11, %c0_12, %c0_13, %c0_14] : memref<1x1x1x8xf32, #tpu.memory_space<vmem>>, vector<1x1x1x8xf32>
    tpu.vector_store %arg8[%c0_11, %c0_12, %c0_13, %c0_14], %36 {strides = array<i32>} : memref<1x1x1x8xf32, #tpu.memory_space<vmem>>, vector<1x1x1x8xf32>,
    %38 = arith.mulf %31, %31 : vector<128x8xf32>
    %cst_15 = arith.constant dense<0.000000e+00> : vector<8xf32>
    %39 = vector.multi_reduction <add>, %38, %cst_15 [0] : vector<128x8xf32> to vector<8xf32>
    %40 = vector.shape_cast %39 : vector<8xf32> to vector<1x8xf32>
    %41 = vector.shape_cast %40 : vector<1x8xf32> to vector<1x1x1x8xf32>
    %c0_16 = arith.constant 0 : index
    %c0_17 = arith.constant 0 : index
    %c0_18 = arith.constant 0 : index
    %c0_19 = arith.constant 0 : index
    %42 = vector.load %arg9[%c0_16, %c0_17, %c0_18, %c0_19] : memref<1x1x1x8xf32, #tpu.memory_space<vmem>>, vector<1x1x1x8xf32>
    tpu.vector_store %arg9[%c0_16, %c0_17, %c0_18, %c0_19], %41 {strides = array<i32>} : memref<1x1x1x8xf32, #tpu.memory_space<vmem>>, vector<1x1x1x8xf32>,
    return
  }
  func.func @transform_0(%arg0: i32, %arg1: i32) -> (i32, i32, i32, i32) {
    %c0_i32 = arith.constant 0 : i32
    %c0_i32_0 = arith.constant 0 : i32
    %c0_i32_1 = arith.constant 0 : i32
    %c0_i32_2 = arith.constant 0 : i32
    return %arg0, %c0_i32, %c0_i32_0, %c0_i32_1 : i32, i32, i32, i32
  }
  func.func @transform_1(%arg0: i32, %arg1: i32) -> (i32, i32, i32) {
    %c0_i32 = arith.constant 0 : i32
    %c0_i32_0 = arith.constant 0 : i32
    %c0_i32_1 = arith.constant 0 : i32
    return %arg0, %c0_i32, %c0_i32_0 : i32, i32, i32
  }
  func.func @transform_2(%arg0: i32, %arg1: i32) -> (i32, i32, i32) {
    %c0_i32 = arith.constant 0 : i32
    %c0_i32_0 = arith.constant 0 : i32
    %c0_i32_1 = arith.constant 0 : i32
    return %arg0, %c0_i32, %c0_i32_0 : i32, i32, i32
  }
  func.func @transform_3(%arg0: i32, %arg1: i32) -> (i32, i32) {
    %c0_i32 = arith.constant 0 : i32
    %c0_i32_0 = arith.constant 0 : i32
    %c0_i32_1 = arith.constant 0 : i32
    return %c0_i32, %c0_i32_0 : i32, i32
  }
  func.func @transform_4(%arg0: i32, %arg1: i32) -> (i32, i32) {
    %c0_i32 = arith.constant 0 : i32
    %c0_i32_0 = arith.constant 0 : i32
    %c0_i32_1 = arith.constant 0 : i32
    return %c0_i32, %c0_i32_0 : i32, i32
  }
  func.func @transform_5(%arg0: i32, %arg1: i32) -> (i32, i32, i32, i32) {
    %c0_i32 = arith.constant 0 : i32
    %c0_i32_0 = arith.constant 0 : i32
    %c0_i32_1 = arith.constant 0 : i32
    return %arg0, %arg1, %c0_i32, %c0_i32_0 : i32, i32, i32, i32
  }
  func.func @transform_6(%arg0: i32, %arg1: i32) -> (i32, i32, i32, i32) {
    %c0_i32 = arith.constant 0 : i32
    %c0_i32_0 = arith.constant 0 : i32
    %c0_i32_1 = arith.constant 0 : i32
    return %arg0, %arg1, %c0_i32, %c0_i32_0 : i32, i32, i32, i32
  }
  func.func @transform_7(%arg0: i32, %arg1: i32) -> (i32, i32, i32, i32) {
    %c0_i32 = arith.constant 0 : i32
    %c0_i32_0 = arith.constant 0 : i32
    %c0_i32_1 = arith.constant 0 : i32
    return %arg0, %arg1, %c0_i32, %c0_i32_0 : i32, i32, i32, i32
  }
}

module attributes {stable_mosaic.version = 11 : i64} {
  func.func @mlp_kernel(%arg0: memref<2x8xf32, #tpu.memory_space<vmem>>, %arg1: memref<8x4xf32, #tpu.memory_space<vmem>>, %arg2: memref<1x4xf32, #tpu.memory_space<vmem>>, %arg3: memref<4x4xf32, #tpu.memory_space<vmem>>, %arg4: memref<1x4xf32, #tpu.memory_space<vmem>>, %arg5: memref<2x4xf32, #tpu.memory_space<vmem>>) attributes {dimension_semantics = [], scalar_prefetch = 0 : i64, scratch_operands = 0 : i64, tpu.core_type = #tpu.core_type<tc>} {
    %c0 = arith.constant 0 : index
    %c0_0 = arith.constant 0 : index
    %0 = vector.load %arg0[%c0, %c0_0] : memref<2x8xf32, #tpu.memory_space<vmem>>, vector<2x8xf32>
    %c0_1 = arith.constant 0 : index
    %c0_2 = arith.constant 0 : index
    %1 = vector.load %arg1[%c0_1, %c0_2] : memref<8x4xf32, #tpu.memory_space<vmem>>, vector<8x4xf32>
    %cst = arith.constant dense<0.000000e+00> : vector<2x4xf32>
    %2 = tpu.matmul %0, %1, %cst {dimension_numbers = #tpu.dot_dimension_numbers<[1], [0], [0], [1], [0, 0, 1, 1], [], []>} : vector<2x8xf32>, vector<8x4xf32>, vector<2x4xf32> -> vector<2x4xf32>
    %c0_3 = arith.constant 0 : index
    %c0_4 = arith.constant 0 : index
    %3 = vector.load %arg2[%c0_3, %c0_4] : memref<1x4xf32, #tpu.memory_space<vmem>>, vector<1x4xf32>
    %4 = vector.broadcast %3 : vector<1x4xf32> to vector<2x4xf32>
    %5 = arith.addf %2, %4 : vector<2x4xf32>
    %cst_5 = arith.constant 0.000000e+00 : f32
    %6 = vector.broadcast %cst_5 : f32 to vector<2x4xf32>
    %7 = arith.maximumf %5, %6 : vector<2x4xf32>
    %c0_6 = arith.constant 0 : index
    %c0_7 = arith.constant 0 : index
    %8 = vector.load %arg3[%c0_6, %c0_7] : memref<4x4xf32, #tpu.memory_space<vmem>>, vector<4x4xf32>
    %cst_8 = arith.constant dense<0.000000e+00> : vector<2x4xf32>
    %9 = tpu.matmul %7, %8, %cst_8 {dimension_numbers = #tpu.dot_dimension_numbers<[1], [0], [0], [1], [0, 0, 1, 1], [], []>} : vector<2x4xf32>, vector<4x4xf32>, vector<2x4xf32> -> vector<2x4xf32>
    %c0_9 = arith.constant 0 : index
    %c0_10 = arith.constant 0 : index
    %10 = vector.load %arg4[%c0_9, %c0_10] : memref<1x4xf32, #tpu.memory_space<vmem>>, vector<1x4xf32>
    %11 = vector.broadcast %10 : vector<1x4xf32> to vector<2x4xf32>
    %12 = arith.addf %9, %11 : vector<2x4xf32>
    %c0_11 = arith.constant 0 : index
    %c0_12 = arith.constant 0 : index
    %13 = vector.load %arg5[%c0_11, %c0_12] : memref<2x4xf32, #tpu.memory_space<vmem>>, vector<2x4xf32>
    tpu.vector_store %arg5[%c0_11, %c0_12], %12 {strides = array<i32>} : memref<2x4xf32, #tpu.memory_space<vmem>>, vector<2x4xf32>,
    return
  }
}

module attributes {stable_mosaic.version = 11 : i64} {
  func.func @conv_stage_kernel(%arg0: i32, %arg1: i32, %arg2: memref<1x16x16x8xf32, #tpu.memory_space<vmem>>, %arg3: memref<1x1x8xf32, #tpu.memory_space<vmem>>, %arg4: memref<1x1x8xf32, #tpu.memory_space<vmem>>, %arg5: memref<72x8xbf16, #tpu.memory_space<vmem>>, %arg6: memref<1x8xf32, #tpu.memory_space<vmem>>, %arg7: memref<1x8x16x8xf32, #tpu.memory_space<vmem>>, %arg8: memref<1x1x1x8xf32, #tpu.memory_space<vmem>>, %arg9: memref<1x1x1x8xf32, #tpu.memory_space<vmem>>, %arg10: memref<18x18x8xf32, #tpu.memory_space<vmem>>) attributes {dimension_semantics = [#tpu.dimension_semantics<parallel>, #tpu.dimension_semantics<arbitrary>], iteration_bounds = array<i64: 2, 2>, scalar_prefetch = 0 : i64, scratch_operands = 1 : i64, tpu.core_type = #tpu.core_type<tc>, window_params = [{transform_indices = @transform_0, window_bounds = array<i64: 1, 16, 16, 8>}, {transform_indices = @transform_1, window_bounds = array<i64: 1, 1, 8>}, {transform_indices = @transform_2, window_bounds = array<i64: 1, 1, 8>}, {pipeline_mode = #tpu.pipeline_mode<synchronous>, transform_indices = @transform_3, window_bounds = array<i64: 72, 8>}, {pipeline_mode = #tpu.pipeline_mode<synchronous>, transform_indices = @transform_4, window_bounds = array<i64: 1, 8>}, {transform_indices = @transform_5, window_bounds = array<i64: 1, 8, 16, 8>}, {transform_indices = @transform_6, window_bounds = array<i64: 1, 1, 1, 8>}, {transform_indices = @transform_7, window_bounds = array<i64: 1, 1, 1, 8>}]} {
    %c0_i32 = arith.constant 0 : i32
    %0 = arith.cmpi eq, %arg1, %c0_i32 : i32
    %1 = arith.extui %0 : i1 to i32
    %c0_i32_0 = arith.constant 0 : i32
    %2 = arith.cmpi ne, %1, %c0_i32_0 : i32
    scf.if %2 {
      %cst_20 = arith.constant 0.000000e+00 : f32
      %43 = vector.broadcast %cst_20 : f32 to vector<18x18x8xf32>
      %c0_21 = arith.constant 0 : index
      %c0_22 = arith.constant 0 : index
      %c0_23 = arith.constant 0 : index
      %44 = vector.load %arg10[%c0_21, %c0_22, %c0_23] : memref<18x18x8xf32, #tpu.memory_space<vmem>>, vector<18x18x8xf32>
      tpu.vector_store %arg10[%c0_21, %c0_22, %c0_23], %43 {strides = array<i32>} : memref<18x18x8xf32, #tpu.memory_space<vmem>>, vector<18x18x8xf32>,
      %c0_24 = arith.constant 0 : index
      %c0_25 = arith.constant 0 : index
      %c0_26 = arith.constant 0 : index
      %c0_27 = arith.constant 0 : index
      %45 = vector.load %arg2[%c0_24, %c0_25, %c0_26, %c0_27] : memref<1x16x16x8xf32, #tpu.memory_space<vmem>>, vector<1x16x16x8xf32>
      %46 = vector.shape_cast %45 : vector<1x16x16x8xf32> to vector<16x16x8xf32>
      %c0_28 = arith.constant 0 : index
      %c0_29 = arith.constant 0 : index
      %c0_30 = arith.constant 0 : index
      %47 = vector.load %arg3[%c0_28, %c0_29, %c0_30] : memref<1x1x8xf32, #tpu.memory_space<vmem>>, vector<1x1x8xf32>
      %48 = vector.broadcast %47 : vector<1x1x8xf32> to vector<16x16x8xf32>
      %49 = arith.mulf %46, %48 : vector<16x16x8xf32>
      %c0_31 = arith.constant 0 : index
      %c0_32 = arith.constant 0 : index
      %c0_33 = arith.constant 0 : index
      %50 = vector.load %arg4[%c0_31, %c0_32, %c0_33] : memref<1x1x8xf32, #tpu.memory_space<vmem>>, vector<1x1x8xf32>
      %51 = vector.broadcast %50 : vector<1x1x8xf32> to vector<16x16x8xf32>
      %52 = arith.addf %49, %51 : vector<16x16x8xf32>
      %cst_34 = arith.constant 0.000000e+00 : f32
      %53 = vector.broadcast %cst_34 : f32 to vector<16x16x8xf32>
      %54 = arith.maximumf %52, %53 : vector<16x16x8xf32>
      %c1 = arith.constant 1 : index
      %c1_35 = arith.constant 1 : index
      %c0_36 = arith.constant 0 : index
      %55 = vector.load %arg10[%c1, %c1_35, %c0_36] : memref<18x18x8xf32, #tpu.memory_space<vmem>>, vector<16x16x8xf32>
      tpu.vector_store %arg10[%c1, %c1_35, %c0_36], %54 {strides = array<i32>} : memref<18x18x8xf32, #tpu.memory_space<vmem>>, vector<16x16x8xf32>,
    } else {
    }
    %c8_i32 = arith.constant 8 : i32
    %3 = arith.muli %arg1, %c8_i32 : i32
    %4 = tpu.assume_multiple %3, 8 : i32
    %5 = arith.index_cast %4 : i32 to index
    %c0 = arith.constant 0 : index
    %c0_1 = arith.constant 0 : index
    %6 = vector.load %arg10[%5, %c0, %c0_1] : memref<18x18x8xf32, #tpu.memory_space<vmem>>, vector<10x18x8xf32>
    %7 = vector.extract_strided_slice %6 {offsets = [0, 0, 0], sizes = [8, 16, 8], strides = [1, 1, 1]} : vector<10x18x8xf32> to vector<8x16x8xf32>
    %8 = vector.shape_cast %7 : vector<8x16x8xf32> to vector<128x8xf32>
    %9 = vector.extract_strided_slice %6 {offsets = [0, 1, 0], sizes = [8, 16, 8], strides = [1, 1, 1]} : vector<10x18x8xf32> to vector<8x16x8xf32>
    %10 = vector.shape_cast %9 : vector<8x16x8xf32> to vector<128x8xf32>
    %11 = vector.extract_strided_slice %6 {offsets = [0, 2, 0], sizes = [8, 16, 8], strides = [1, 1, 1]} : vector<10x18x8xf32> to vector<8x16x8xf32>
    %12 = vector.shape_cast %11 : vector<8x16x8xf32> to vector<128x8xf32>
    %13 = vector.extract_strided_slice %6 {offsets = [1, 0, 0], sizes = [8, 16, 8], strides = [1, 1, 1]} : vector<10x18x8xf32> to vector<8x16x8xf32>
    %14 = vector.shape_cast %13 : vector<8x16x8xf32> to vector<128x8xf32>
    %15 = vector.extract_strided_slice %6 {offsets = [1, 1, 0], sizes = [8, 16, 8], strides = [1, 1, 1]} : vector<10x18x8xf32> to vector<8x16x8xf32>
    %16 = vector.shape_cast %15 : vector<8x16x8xf32> to vector<128x8xf32>
    %17 = vector.extract_strided_slice %6 {offsets = [1, 2, 0], sizes = [8, 16, 8], strides = [1, 1, 1]} : vector<10x18x8xf32> to vector<8x16x8xf32>
    %18 = vector.shape_cast %17 : vector<8x16x8xf32> to vector<128x8xf32>
    %19 = vector.extract_strided_slice %6 {offsets = [2, 0, 0], sizes = [8, 16, 8], strides = [1, 1, 1]} : vector<10x18x8xf32> to vector<8x16x8xf32>
    %20 = vector.shape_cast %19 : vector<8x16x8xf32> to vector<128x8xf32>
    %21 = vector.extract_strided_slice %6 {offsets = [2, 1, 0], sizes = [8, 16, 8], strides = [1, 1, 1]} : vector<10x18x8xf32> to vector<8x16x8xf32>
    %22 = vector.shape_cast %21 : vector<8x16x8xf32> to vector<128x8xf32>
    %23 = vector.extract_strided_slice %6 {offsets = [2, 2, 0], sizes = [8, 16, 8], strides = [1, 1, 1]} : vector<10x18x8xf32> to vector<8x16x8xf32>
    %24 = vector.shape_cast %23 : vector<8x16x8xf32> to vector<128x8xf32>
    %25 = tpu.concatenate %8, %10, %12, %14, %16, %18, %20, %22, %24 in 1 : vector<128x8xf32>, vector<128x8xf32>, vector<128x8xf32>, vector<128x8xf32>, vector<128x8xf32>, vector<128x8xf32>, vector<128x8xf32>, vector<128x8xf32>, vector<128x8xf32> -> vector<128x72xf32>
    %26 = arith.truncf %25 : vector<128x72xf32> to vector<128x72xbf16>
    %c0_2 = arith.constant 0 : index
    %c0_3 = arith.constant 0 : index
    %27 = vector.load %arg5[%c0_2, %c0_3] : memref<72x8xbf16, #tpu.memory_space<vmem>>, vector<72x8xbf16>
    %cst = arith.constant dense<0.000000e+00> : vector<128x8xf32>
    %28 = tpu.matmul %26, %27, %cst {dimension_numbers = #tpu.dot_dimension_numbers<[1], [0], [0], [1], [0, 0, 1, 1], [], []>} : vector<128x72xbf16>, vector<72x8xbf16>, vector<128x8xf32> -> vector<128x8xf32>
    %c0_4 = arith.constant 0 : index
    %c0_5 = arith.constant 0 : index
    %29 = vector.load %arg6[%c0_4, %c0_5] : memref<1x8xf32, #tpu.memory_space<vmem>>, vector<1x8xf32>
    %30 = vector.broadcast %29 : vector<1x8xf32> to vector<128x8xf32>
    %31 = arith.addf %28, %30 : vector<128x8xf32>
    %32 = vector.shape_cast %31 : vector<128x8xf32> to vector<1x8x16x8xf32>
    %c0_6 = arith.constant 0 : index
    %c0_7 = arith.constant 0 : index
    %c0_8 = arith.constant 0 : index
    %c0_9 = arith.constant 0 : index
    %33 = vector.load %arg7[%c0_6, %c0_7, %c0_8, %c0_9] : memref<1x8x16x8xf32, #tpu.memory_space<vmem>>, vector<1x8x16x8xf32>
    tpu.vector_store %arg7[%c0_6, %c0_7, %c0_8, %c0_9], %32 {strides = array<i32>} : memref<1x8x16x8xf32, #tpu.memory_space<vmem>>, vector<1x8x16x8xf32>,
    %cst_10 = arith.constant dense<0.000000e+00> : vector<8xf32>
    %34 = vector.multi_reduction <add>, %31, %cst_10 [0] : vector<128x8xf32> to vector<8xf32>
    %35 = vector.shape_cast %34 : vector<8xf32> to vector<1x8xf32>
    %36 = vector.shape_cast %35 : vector<1x8xf32> to vector<1x1x1x8xf32>
    %c0_11 = arith.constant 0 : index
    %c0_12 = arith.constant 0 : index
    %c0_13 = arith.constant 0 : index
    %c0_14 = arith.constant 0 : index
    %37 = vector.load %arg8[%c0_11, %c0_12, %c0_13, %c0_14] : memref<1x1x1x8xf32, #tpu.memory_space<vmem>>, vector<1x1x1x8xf32>
    tpu.vector_store %arg8[%c0_11, %c0_12, %c0_13, %c0_14], %36 {strides = array<i32>} : memref<1x1x1x8xf32, #tpu.memory_space<vmem>>, vector<1x1x1x8xf32>,
    %38 = arith.mulf %31, %31 : vector<128x8xf32>
    %cst_15 = arith.constant dense<0.000000e+00> : vector<8xf32>
    %39 = vector.multi_reduction <add>, %38, %cst_15 [0] : vector<128x8xf32> to vector<8xf32>
    %40 = vector.shape_cast %39 : vector<8xf32> to vector<1x8xf32>
    %41 = vector.shape_cast %40 : vector<1x8xf32> to vector<1x1x1x8xf32>
    %c0_16 = arith.constant 0 : index
    %c0_17 = arith.constant 0 : index
    %c0_18 = arith.constant 0 : index
    %c0_19 = arith.constant 0 : index
    %42 = vector.load %arg9[%c0_16, %c0_17, %c0_18, %c0_19] : memref<1x1x1x8xf32, #tpu.memory_space<vmem>>, vector<1x1x1x8xf32>
    tpu.vector_store %arg9[%c0_16, %c0_17, %c0_18, %c0_19], %41 {strides = array<i32>} : memref<1x1x1x8xf32, #tpu.memory_space<vmem>>, vector<1x1x1x8xf32>,
    return
  }
  func.func @transform_0(%arg0: i32, %arg1: i32) -> (i32, i32, i32, i32) {
    %c0_i32 = arith.constant 0 : i32
    %c0_i32_0 = arith.constant 0 : i32
    %c0_i32_1 = arith.constant 0 : i32
    %c0_i32_2 = arith.constant 0 : i32
    return %arg0, %c0_i32, %c0_i32_0, %c0_i32_1 : i32, i32, i32, i32
  }
  func.func @transform_1(%arg0: i32, %arg1: i32) -> (i32, i32, i32) {
    %c0_i32 = arith.constant 0 : i32
    %c0_i32_0 = arith.constant 0 : i32
    %c0_i32_1 = arith.constant 0 : i32
    return %arg0, %c0_i32, %c0_i32_0 : i32, i32, i32
  }
  func.func @transform_2(%arg0: i32, %arg1: i32) -> (i32, i32, i32) {
    %c0_i32 = arith.constant 0 : i32
    %c0_i32_0 = arith.constant 0 : i32
    %c0_i32_1 = arith.constant 0 : i32
    return %arg0, %c0_i32, %c0_i32_0 : i32, i32, i32
  }
  func.func @transform_3(%arg0: i32, %arg1: i32) -> (i32, i32) {
    %c0_i32 = arith.constant 0 : i32
    %c0_i32_0 = arith.constant 0 : i32
    %c0_i32_1 = arith.constant 0 : i32
    return %c0_i32, %c0_i32_0 : i32, i32
  }
  func.func @transform_4(%arg0: i32, %arg1: i32) -> (i32, i32) {
    %c0_i32 = arith.constant 0 : i32
    %c0_i32_0 = arith.constant 0 : i32
    %c0_i32_1 = arith.constant 0 : i32
    return %c0_i32, %c0_i32_0 : i32, i32
  }
  func.func @transform_5(%arg0: i32, %arg1: i32) -> (i32, i32, i32, i32) {
    %c0_i32 = arith.constant 0 : i32
    %c0_i32_0 = arith.constant 0 : i32
    %c0_i32_1 = arith.constant 0 : i32
    return %arg0, %arg1, %c0_i32, %c0_i32_0 : i32, i32, i32, i32
  }
  func.func @transform_6(%arg0: i32, %arg1: i32) -> (i32, i32, i32, i32) {
    %c0_i32 = arith.constant 0 : i32
    %c0_i32_0 = arith.constant 0 : i32
    %c0_i32_1 = arith.constant 0 : i32
    return %arg0, %arg1, %c0_i32, %c0_i32_0 : i32, i32, i32, i32
  }
  func.func @transform_7(%arg0: i32, %arg1: i32) -> (i32, i32, i32, i32) {
    %c0_i32 = arith.constant 0 : i32
    %c0_i32_0 = arith.constant 0 : i32
    %c0_i32_1 = arith.constant 0 : i32
    return %arg0, %arg1, %c0_i32, %c0_i32_0 : i32, i32, i32, i32
  }
}

</mosaic_0001>

<bundles_post_ra>
// kernel: conv_block_forward.4
= control target key start
LH: loop header
LB: loop body
LE: loop exit
PB: predicated region body
PF: predicated region fallthrough
CT: control target
= control target key end

     0   :  { %vm26_vm0 = vcmask 64512   ;;  %vm60_vm1 = vcmask 1043456   ;;  %vm56_vm2 = vcmask 31744   ;;  %vm84_vm3 = vcmask 25600   ;;  %s143_s1 = inlined_call_operand.vmem [shape: f32[8,4], index: 1, kind: input, shape index: {}]   ;;  %s144_s0 = inlined_call_operand.vmem [shape: f32[2,8], index: 0, kind: input, shape index: {}]   ;;  %s145_s2 = inlined_call_operand.vmem [shape: f32[1,4], index: 2, kind: input, shape index: {}]   ;;  %s146_s4 = inlined_call_operand.vmem [shape: f32[1,4], index: 4, kind: input, shape index: {}]   ;;  %s147_s3 = inlined_call_operand.vmem [shape: f32[4,4], index: 3, kind: input, shape index: {}]   ;;  %s148_s5 = inlined_call_operand.vmem [shape: f32[2,4], index: 5, kind: output, shape index: {}]  }
   0x1   :  { %v21_v0 = vld [vmem:[%s143_s1] sm:$0xff] }
   0x2   :  { %v20_v1 = vld [vmem:[%s144_s0] sm:$0x3]  ;;  %45 = vmatpush.msra.mxu0 %v21_v0 }
   0x3   :  { %90 = vmatmul.msk.f32.vlgmr.msra.gmra.mxu0 %vm26_vm0, %v20_v1  ;;  %v51_v2 = vld [vmem:[%s147_s3] sm:$0xf] }
   0x4   :  { %91 = vmatpush.msk.msra.mxu1 %vm60_vm1, %v51_v2  ;;  %v93_v3 = vld [vmem:[%s145_s2] ss:$0 sm:$0xff] }
   0x5   :  { %v94_v7 = vld [vmem:[%s146_s4] ss:$0 sm:$0xff] }
  0x80   :  { %v47_v4 = vpop.f32.mrf.mxu0 }
  0x81   :  { %v48_v5 = vadd.f32 %v93_v3, %v47_v4 }
  0x83   :  { %v50_v6 = vmax.f32 %v48_v5, 0.0 }
  0x85   :  { %92 = vmatmul.msk.f32.vlgmr.msra.gmra.mxu1 %vm56_vm2, %v50_v6 }
 0x102   :  { %v81_v8 = vpop.f32.mrf.mxu1 }
 0x103   :  { %v82_v9 = vadd.f32 %v94_v7, %v81_v8 }
 0x105   :  { %85 = vst.msk [vmem:[%s148_s5] sm:$0x3] %vm84_vm3, %v82_v9 }

// kernel: conv_block_forward.7
= control target key start
LH: loop header
LB: loop body
LE: loop exit
PB: predicated region body
PF: predicated region fallthrough
CT: control target
= control target key end

     0   :  { %s520_s12 = smov 0   ;;  %s522_s13 = smov 0   ;;  %s647_s0 = inlined_call_operand.vmem [shape: f32[2,16,16,8], index: 0, kind: input, shape index: {}]   ;;  %s648_s1 = inlined_call_operand.vmem [shape: f32[1,1,1,8], index: 1, kind: input, shape index: {}]   ;;  %s649_s2 = inlined_call_operand.vmem [shape: f32[1,1,1,8], index: 2, kind: input, shape index: {}]   ;;  %s650_s3 = inlined_call_operand.vmem [shape: f32[2,16,16,8], index: 3, kind: output, shape index: {}]  }
   0x1   :  { %s524_s14 = smov 0   ;;  %s526_s15 = smov 0  }
   0x2   :  { %s528_s16 = smov 0  }
   0x3 LB: > { %s22_s17 = sadd.s32 1, %s490_s14  ;;  %s25_s18 = sadd.s32 1, %s494_s15  ;;  %s498_s16 = sphi %s528_s16, %s13_s16   ;;  %s494_s15 = sphi %s526_s15, %s654_s15   ;;  %s490_s14 = sphi %s524_s14, %s653_s14   ;;  %s486_s13 = sphi %s522_s13, %s652_s13   ;;  %s482_s12 = sphi %s520_s12, %s651_s12  }
   0x4   : > { %p23_p0 = scmp.ge.s32.totalorder %s22_s17, 2  ;;  %p407_p1 = scmp.ge.s32.totalorder %s498_s16, 1 }
   0x5   : > { %p159_p2 = scmp.lt.s32.totalorder %s498_s16, 5 }
   0x6   : > { %s656_s17 = smov (%p23_p0, %s22_s17), 0  ;;  %s658_s18 = smov (!%p23_p0, %s25_s18), %s494_s15 }
   0x7   : > { %p160_p3 = pnand %p407_p1, %p159_p2  ;;  %p27_p4 = scmp.ge.s32.totalorder %s658_s18, 2 }
   0x8   : > { %s408_s19 = sshll.u32 (!%p160_p3), %s482_s12, 3  ;;  %p194_p5 = scmp.lt.s32.totalorder (!%p160_p3), %s486_s13, 1 }
   0x9   : > { %s660_s18 = smov (%p27_p4, %s658_s18), 0  ;;  %163 = sbr.rel (%p160_p3) target bundleno = 42 (0x2a), region = 32 }
   0xa   : > { %p196_p6 = scmp.lt.s32.totalorder (!%p160_p3), %s408_s19, 15 }
   0xe   : > { %s662_s13 = smov (!%p194_p5, %s486_s13), 1  ;;  %s664_s19 = smov (!%p196_p6, %s408_s19), 15  ;;  %v458_v0 = vld [vmem:[%s648_s1] ss:$0 sm:$0xff]  ;;  %vm287_vm0 = vcmask 64512  }
   0xf   : > { %s410_s20 = sshll.u32 %s662_s13, 5  ;;  %s409_s21 = sshll.u32 %s664_s19, 1  ;;  %v561_v1 = vld [vmem:[%s649_s2] ss:$0 sm:$0xff] }
  0x10   : > { %s200_s22 = sadd.s32 %s410_s20, %s409_s21 }
  0x11   : > { %s411_s25 = sshll.u32 %s200_s22, 3 }
  0x12   : > { %s556_s28 = scalar_lea.vmem %s647_s0, %s411_s25  ;;  %s577_s6 = scalar_lea.vmem %s650_s3, %s411_s25 }
  0x13   : > { %v215_v2 = vld [vmem:[%s556_s28] sm:$0xff]  ;;  %v216_v3 = vld [vmem:[%s556_s28 + $0x8] sm:$0xff]  ;;  %v217_v4 = vld [vmem:[%s556_s28 + $0x10] sm:$0xff] }
  0x14   : > { %v235_v5 = vmul.f32 %v458_v0, %v215_v2  ;;  %v236_v6 = vmul.f32 %v458_v0, %v216_v3  ;;  %v237_v7 = vmul.f32 %v458_v0, %v217_v4  ;;  %v218_v8 = vld [vmem:[%s556_s28 + $0x18] sm:$0xff]  ;;  %v219_v9 = vld [vmem:[%s556_s28 + $0x20] sm:$0xff]  ;;  %v220_v10 = vld [vmem:[%s556_s28 + $0x28] sm:$0xff] }
  0x15   : > { %v238_v11 = vmul.f32 %v458_v0, %v218_v8  ;;  %v239_v12 = vmul.f32 %v458_v0, %v219_v9  ;;  %v240_v13 = vmul.f32 %v458_v0, %v220_v10  ;;  %v221_v14 = vld [vmem:[%s556_s28 + $0x30] sm:$0xff]  ;;  %v222_v15 = vld [vmem:[%s556_s28 + $0x38] sm:$0xff]  ;;  %v223_v24 = vld [vmem:[%s556_s28 + $0x40] sm:$0xff] }
  0x16   : > { %v255_v16 = vadd.f32 %v561_v1, %v235_v5  ;;  %v256_v17 = vadd.f32 %v561_v1, %v236_v6  ;;  %v257_v18 = vadd.f32 %v561_v1, %v237_v7  ;;  %v241_v19 = vmul.f32 %v458_v0, %v221_v14  ;;  %v224_v25 = vld [vmem:[%s556_s28 + $0x48] sm:$0xff]  ;;  %v225_v26 = vld [vmem:[%s556_s28 + $0x50] sm:$0xff]  ;;  %v226_v31 = vld [vmem:[%s556_s28 + $0x58] sm:$0xff] }
  0x17   : > { %v258_v20 = vadd.f32 %v561_v1, %v238_v11  ;;  %v259_v21 = vadd.f32 %v561_v1, %v239_v12  ;;  %v260_v22 = vadd.f32 %v561_v1, %v240_v13  ;;  %v242_v23 = vmul.f32 %v458_v0, %v222_v15  ;;  %v227_v32 = vld [vmem:[%s556_s28 + $0x60] sm:$0xff]  ;;  %v228_v33 = vld [vmem:[%s556_s28 + $0x68] sm:$0xff]  ;;  %v229_v37 = vld [vmem:[%s556_s28 + $0x70] sm:$0xff] }
  0x18   : > { %v271_v27 = vmax.f32 %v255_v16, 0.0  ;;  %v272_v28 = vmax.f32 %v256_v17, 0.0  ;;  %v273_v29 = vmax.f32 %v257_v18, 0.0  ;;  %v261_v30 = vadd.f32 %v561_v1, %v241_v19  ;;  %v230_v42 = vld [vmem:[%s556_s28 + $0x78] sm:$0xff] }
  0x19   : > { %v274_v34 = vmax.f32 %v258_v20, 0.0  ;;  %v275_v35 = vmax.f32 %v259_v21, 0.0  ;;  %v262_v36 = vadd.f32 %v561_v1, %v242_v23  ;;  %v276_v38 = vmax.f32 %v260_v22, 0.0 }
  0x1a   : > { %288 = vst.msk [vmem:[%s577_s6] sm:$0xff] %vm287_vm0, %v271_v27  ;;  %v243_v39 = vmul.f32 %v458_v0, %v223_v24  ;;  %v244_v40 = vmul.f32 %v458_v0, %v224_v25  ;;  %v245_v41 = vmul.f32 %v458_v0, %v225_v26  ;;  %v277_v43 = vmax.f32 %v261_v30, 0.0 }
  0x1b   : > { %289 = vst.msk [vmem:[%s577_s6 + $0x8] sm:$0xff] %vm287_vm0, %v272_v28  ;;  %v246_v44 = vmul.f32 %v458_v0, %v226_v31  ;;  %v247_v45 = vmul.f32 %v458_v0, %v227_v32  ;;  %v248_v46 = vmul.f32 %v458_v0, %v228_v33  ;;  %v249_v50 = vmul.f32 %v458_v0, %v229_v37 }
  0x1c   : > { %290 = vst.msk [vmem:[%s577_s6 + $0x10] sm:$0xff] %vm287_vm0, %v273_v29  ;;  %v263_v47 = vadd.f32 %v561_v1, %v243_v39  ;;  %v264_v48 = vadd.f32 %v561_v1, %v244_v40  ;;  %v265_v49 = vadd.f32 %v561_v1, %v245_v41  ;;  %v278_v51 = vmax.f32 %v262_v36, 0.0 }
  0x1d   : > { %291 = vst.msk [vmem:[%s577_s6 + $0x18] sm:$0xff] %vm287_vm0, %v274_v34  ;;  %v266_v52 = vadd.f32 %v561_v1, %v246_v44  ;;  %v250_v53 = vmul.f32 %v458_v0, %v230_v42  ;;  %v267_v55 = vadd.f32 %v561_v1, %v247_v45  ;;  %v268_v57 = vadd.f32 %v561_v1, %v248_v46 }
  0x1e   : > { %292 = vst.msk [vmem:[%s577_s6 + $0x20] sm:$0xff] %vm287_vm0, %v275_v35  ;;  %v279_v54 = vmax.f32 %v263_v47, 0.0  ;;  %v280_v56 = vmax.f32 %v264_v48, 0.0  ;;  %v281_v58 = vmax.f32 %v265_v49, 0.0  ;;  %v269_v59 = vadd.f32 %v561_v1, %v249_v50 }
  0x1f   : > { %293 = vst.msk [vmem:[%s577_s6 + $0x28] sm:$0xff] %vm287_vm0, %v276_v38  ;;  %v282_v60 = vmax.f32 %v266_v52, 0.0  ;;  %v270_v61 = vadd.f32 %v561_v1, %v250_v53  ;;  %v283_v62 = vmax.f32 %v267_v55, 0.0  ;;  %v284_v63 = vmax.f32 %v268_v57, 0.0 }
  0x20   : > { %294 = vst.msk [vmem:[%s577_s6 + $0x30] sm:$0xff] %vm287_vm0, %v277_v43  ;;  %v285_v0 = vmax.f32 %v269_v59, 0.0 }
  0x21   : > { %295 = vst.msk [vmem:[%s577_s6 + $0x38] sm:$0xff] %vm287_vm0, %v278_v51  ;;  %v286_v2 = vmax.f32 %v270_v61, 0.0 }
  0x22   : > { %296 = vst.msk [vmem:[%s577_s6 + $0x40] sm:$0xff] %vm287_vm0, %v279_v54 }
  0x23   : > { %297 = vst.msk [vmem:[%s577_s6 + $0x48] sm:$0xff] %vm287_vm0, %v280_v56 }
  0x24   : > { %298 = vst.msk [vmem:[%s577_s6 + $0x50] sm:$0xff] %vm287_vm0, %v281_v58 }
  0x25   : > { %299 = vst.msk [vmem:[%s577_s6 + $0x58] sm:$0xff] %vm287_vm0, %v282_v60 }
  0x26   : > { %300 = vst.msk [vmem:[%s577_s6 + $0x60] sm:$0xff] %vm287_vm0, %v283_v62 }
  0x27   : > { %301 = vst.msk [vmem:[%s577_s6 + $0x68] sm:$0xff] %vm287_vm0, %v284_v63 }
  0x28   : > { %302 = vst.msk [vmem:[%s577_s6 + $0x70] sm:$0xff] %vm287_vm0, %v285_v0 }
  0x29   : > { %303 = vst.msk [vmem:[%s577_s6 + $0x78] sm:$0xff] %vm287_vm0, %v286_v2 }
  0x2a PF: > { %s13_s16 = sadd.s32 1, %s498_s16   ;;  %s651_s12 = smov %s490_s14 }
  0x2b   : > { %p10_p7 = scmp.ge.s32.totalorder %s13_s16, 6   ;;  %s652_s13 = smov %s494_s15 }
  0x2c   : > { %s653_s14 = smov %s656_s17  ;;  %s654_s15 = smov %s660_s18 }
  0x2d   :  { %12 = sbr.rel (!%p10_p7) target bundleno = 3 (0x3), region = 62 }

// kernel: conv_block_forward.5
= control target key start
LH: loop header
LB: loop body
LE: loop exit
PB: predicated region body
PF: predicated region fallthrough
CT: control target
= control target key end

     0   :  { %s2170_s24 = smov 0   ;;  %s2172_s25 = smov 0   ;;  %s3195_s0 = inlined_call_operand.vmem [shape: f32[2,16,16,4], index: 0, kind: input, shape index: {}]   ;;  %s3196_s1 = inlined_call_operand.vmem [shape: f32[2,1,4], index: 1, kind: input, shape index: {}]   ;;  %s3197_s2 = inlined_call_operand.vmem [shape: f32[2,1,4], index: 2, kind: input, shape index: {}]   ;;  %s3198_s3 = inlined_call_operand.vmem [shape: bf16[36,8], index: 3, kind: input, shape index: {}]   ;;  %s3199_s4 = inlined_call_operand.vmem [shape: f32[1,8], index: 4, kind: input, shape index: {}]   ;;  %s3200_s5 = inlined_call_operand.vmem [shape: f32[2,16,16,8], index: 5, kind: output, shape index: {0}]   ;;  %s3201_s6 = inlined_call_operand.vmem [shape: f32[2,2,1,8], index: 6, kind: output, shape index: {1}]   ;;  %s3202_s7 = inlined_call_operand.vmem [shape: f32[2,2,1,8], index: 7, kind: output, shape index: {2}]  }
   0x1   :  { %s2174_s26 = smov 0   ;;  %s2176_s27 = smov 0  }
   0x2   :  { %s2178_s28 = smov 0  }
   0x3 LB: > { %s27_s29 = sadd.s32 1, %s2111_s26  ;;  %s30_s30 = sadd.s32 1, %s2115_s27  ;;  %s2119_s28 = sphi %s2178_s28, %s18_s28   ;;  %s2115_s27 = sphi %s2176_s27, %s3211_s27   ;;  %s2111_s26 = sphi %s2174_s26, %s3210_s26   ;;  %s2107_s25 = sphi %s2172_s25, %s3209_s25   ;;  %s2103_s24 = sphi %s2170_s24, %s3208_s24  }
   0x4   : > { %p28_p0 = scmp.ge.s32.totalorder %s27_s29, 2  ;;  %p1667_p1 = scmp.ge.s32.totalorder %s2119_s28, 1 }
   0x5   : > { %p276_p2 = scmp.lt.s32.totalorder %s2119_s28, 5 }
   0x6   : > { %s3213_s29 = smov (%p28_p0, %s27_s29), 0  ;;  %s3215_s30 = smov (!%p28_p0, %s30_s30), %s2115_s27 }
   0x7   : > { %3203 = sst [smem:[#allocation3_spill]] %s3213_s29  ;;  %p277_p3 = pnand %p1667_p1, %p276_p2 }
   0x8   : > { %p32_p4 = scmp.ge.s32.totalorder %s3215_s30, 2  ;;  %p333_p5 = scmp.lt.s32.totalorder (!%p277_p3), %s2107_s25, 1 }
   0x9   : > { %280 = sbr.rel (%p277_p3) target bundleno = 575 (0x23f), region = 40  ;;  %s1670_s8 = sshll.u32 (!%p277_p3), %s2103_s24, 3 }
   0xa   : > { %s3217_s30 = smov (%p32_p4, %s3215_s30), 0  ;;  %p347_p6 = scmp.lt.s32.totalorder (!%p277_p3), %s1670_s8, 15 }
   0xb   : > { %3204 = sst [smem:[#allocation4_spill]] %s3217_s30  ;;  %p357_p7 = scmp.lt.s32.totalorder (!%p277_p3), %s2103_s24, 1 }
   0xc   : > { %p1676_p8 = scmp.ne.s32.totalorder (!%p277_p3), %s2103_s24, 0 }
   0xe   : > { %s3219_s25 = smov (!%p333_p5, %s2107_s25), 1  ;;  %s3221_s8 = smov (!%p347_p6, %s1670_s8), 15 }
   0xf   : > { %s1697_s9 = sshll.u32 %s3219_s25, 8  ;;  %s343_s18 = scalar_lea.vmem %s3197_s2, %s3219_s25 }
  0x10   : > { %s2214_s15 = scalar_lea.vmem %s3195_s0, %s1697_s9  ;;  %s1671_s19 = sshll.u32 %s3221_s8, 1 }
  0x11   : > { %s1672_s20 = sshll.u32 %s3219_s25, 5  ;;  %s1674_s10 = sshll.u32 %s3219_s25, 1 }
  0x12   : > { %s351_s21 = sadd.s32 %s1672_s20, %s1671_s19  ;;  %s3205_s20 = scalar_lea.vmem (!%p1676_p8), %s3196_s1, %s3219_s25 }
  0x13   : > { %s1673_s22 = sshll.u32 %s351_s21, 3 }
  0x14   : > { %s2224_s29 = scalar_lea.vmem %s3200_s5, %s1673_s22  ;;  %373 = sbr.rel (%p1676_p8) target bundleno = 112 (0x70), region = 44 }
  0x15   : > { %s358_s11 = scalar_select %p357_p7, %s2103_s24, 1 }
  0x17   : > { %s2228_s12 = sadd.s32 %s1674_s10, %s358_s11 }
  0x18   : > { %s361_s14 = scalar_lea.vmem %s3201_s6, %s2228_s12  ;;  %s368_s17 = scalar_lea.vmem %s3202_s7, %s2228_s12 }
  0x19   : > { %vm374_vm0 = vcmask 31744   ;;  %v2121_v0 = vmov 0.0   ;;  %vm377_vm1 = vcmask 25600   ;;  %v2330_v1 = vld [vmem:[%s3205_s20] ss:$0 sm:$0xff]  ;;  %v431_v3 = vld [vmem:[%s2214_s15 + $0x8] sm:$0xff] }
  0x1a   : > { %379 = vst.msk [vmem:[#allocation2 + $0x18] sm:$0xff] %vm374_vm0, %v2121_v0  ;;  %v430_v2 = vld [vmem:[%s2214_s15] sm:$0xff]  ;;  %v432_v4 = vld [vmem:[%s2214_s15 + $0x10] sm:$0xff]  ;;  %v433_v7 = vld [vmem:[%s2214_s15 + $0x18] sm:$0xff]  ;;  %v467_v8 = vmul.f32 %v2330_v1, %v431_v3 }
  0x1b   : > { %375 = vst.msk [vmem:[#allocation2] sm:$0xff] %vm374_vm0, %v2121_v0  ;;  %v466_v5 = vmul.f32 %v2330_v1, %v430_v2  ;;  %v2349_v6 = vld [vmem:[%s343_s18] ss:$0 sm:$0xff]  ;;  %v468_v10 = vmul.f32 %v2330_v1, %v432_v4  ;;  %v435_v11 = vld [vmem:[%s2214_s15 + $0x28] sm:$0xff]  ;;  %v469_v12 = vmul.f32 %v2330_v1, %v433_v7  ;;  %v436_v13 = vld [vmem:[%s2214_s15 + $0x30] sm:$0xff] }
  0x1c   : > { %376 = vst.msk [vmem:[#allocation2 + $0x8] sm:$0xff] %vm374_vm0, %v2121_v0  ;;  %v434_v9 = vld [vmem:[%s2214_s15 + $0x20] sm:$0xff]  ;;  %v437_v16 = vld [vmem:[%s2214_s15 + $0x38] sm:$0xff]  ;;  %v503_v17 = vadd.f32 %v2349_v6, %v467_v8  ;;  %v471_v18 = vmul.f32 %v2330_v1, %v435_v11  ;;  %v472_v21 = vmul.f32 %v2330_v1, %v436_v13  ;;  %v439_v22 = vld [vmem:[%s2214_s15 + $0x48] sm:$0xff] }
  0x1d   : > { %380 = vst.msk [vmem:[#allocation2 + $0x20] sm:$0xff] %vm374_vm0, %v2121_v0  ;;  %v502_v14 = vadd.f32 %v2349_v6, %v466_v5  ;;  %v470_v15 = vmul.f32 %v2330_v1, %v434_v9  ;;  %v438_v19 = vld [vmem:[%s2214_s15 + $0x40] sm:$0xff]  ;;  %v504_v20 = vadd.f32 %v2349_v6, %v468_v10  ;;  %v505_v23 = vadd.f32 %v2349_v6, %v469_v12  ;;  %v440_v25 = vld [vmem:[%s2214_s15 + $0x50] sm:$0xff]  ;;  %v441_v28 = vld [vmem:[%s2214_s15 + $0x58] sm:$0xff] }
  0x1e   : > { %382 = vst.msk [vmem:[#allocation2 + $0x30] sm:$0xff] %vm374_vm0, %v2121_v0  ;;  %v473_v24 = vmul.f32 %v2330_v1, %v437_v16  ;;  %v474_v27 = vmul.f32 %v2330_v1, %v438_v19  ;;  %v507_v29 = vadd.f32 %v2349_v6, %v471_v18  ;;  %v475_v30 = vmul.f32 %v2330_v1, %v439_v22  ;;  %v442_v31 = vld [vmem:[%s2214_s15 + $0x60] sm:$0xff]  ;;  %v443_v34 = vld [vmem:[%s2214_s15 + $0x68] sm:$0xff]  ;;  %v444_v37 = vld [vmem:[%s2214_s15 + $0x70] sm:$0xff] }
  0x1f   : > { %383 = vst.msk [vmem:[#allocation2 + $0x38] sm:$0xff] %vm374_vm0, %v2121_v0  ;;  %v506_v26 = vadd.f32 %v2349_v6, %v470_v15  ;;  %v508_v32 = vadd.f32 %v2349_v6, %v472_v21  ;;  %v476_v33 = vmul.f32 %v2330_v1, %v440_v25  ;;  %v477_v36 = vmul.f32 %v2330_v1, %v441_v28  ;;  %v445_v40 = vld [vmem:[%s2214_s15 + $0x78] sm:$0xff]  ;;  %v446_v43 = vld [vmem:[%s2214_s15 + $0x80] sm:$0xff]  ;;  %v447_v46 = vld [vmem:[%s2214_s15 + $0x88] sm:$0xff] }
  0x20   : > { %385 = vst.msk [vmem:[#allocation2 + $0x48] sm:$0xff] %vm374_vm0, %v2121_v0  ;;  %v509_v35 = vadd.f32 %v2349_v6, %v473_v24  ;;  %v510_v38 = vadd.f32 %v2349_v6, %v474_v27  ;;  %v478_v39 = vmul.f32 %v2330_v1, %v442_v31  ;;  %v511_v41 = vadd.f32 %v2349_v6, %v475_v30  ;;  %v448_v49 = vld [vmem:[%s2214_s15 + $0x90] sm:$0xff]  ;;  %v449_v52 = vld [vmem:[%s2214_s15 + $0x98] sm:$0xff]  ;;  %v450_v55 = vld [vmem:[%s2214_s15 + $0xa0] sm:$0xff] }
  0x21   : > { %386 = vst.msk [vmem:[#allocation2 + $0x50] sm:$0xff] %vm374_vm0, %v2121_v0  ;;  %v479_v42 = vmul.f32 %v2330_v1, %v443_v34  ;;  %v512_v44 = vadd.f32 %v2349_v6, %v476_v33  ;;  %v480_v45 = vmul.f32 %v2330_v1, %v444_v37  ;;  %v513_v47 = vadd.f32 %v2349_v6, %v477_v36  ;;  %v451_v58 = vld [vmem:[%s2214_s15 + $0xa8] sm:$0xff]  ;;  %v452_v61 = vld [vmem:[%s2214_s15 + $0xb0] sm:$0xff]  ;;  %v454_v4 = vld [vmem:[%s2214_s15 + $0xc0] sm:$0xff] }
  0x22   : > { %388 = vst.msk [vmem:[#allocation2 + $0x60] sm:$0xff] %vm374_vm0, %v2121_v0  ;;  %v481_v48 = vmul.f32 %v2330_v1, %v445_v40  ;;  %v514_v50 = vadd.f32 %v2349_v6, %v478_v39  ;;  %v482_v51 = vmul.f32 %v2330_v1, %v446_v43  ;;  %v483_v54 = vmul.f32 %v2330_v1, %v447_v46  ;;  %v455_v8 = vld [vmem:[%s2214_s15 + $0xc8] sm:$0xff]  ;;  %v456_v11 = vld [vmem:[%s2214_s15 + $0xd0] sm:$0xff] }
  0x23   : > { %389 = vst.msk [vmem:[#allocation2 + $0x68] sm:$0xff] %vm374_vm0, %v2121_v0  ;;  %v515_v53 = vadd.f32 %v2349_v6, %v479_v42  ;;  %v516_v56 = vadd.f32 %v2349_v6, %v480_v45  ;;  %v484_v57 = vmul.f32 %v2330_v1, %v448_v49  ;;  %v485_v60 = vmul.f32 %v2330_v1, %v449_v52 }
  0x24   : > { %391 = vst.msk [vmem:[#allocation2 + $0x78] sm:$0xff] %vm374_vm0, %v2121_v0  ;;  %v517_v59 = vadd.f32 %v2349_v6, %v481_v48  ;;  %v518_v62 = vadd.f32 %v2349_v6, %v482_v51  ;;  %v486_v63 = vmul.f32 %v2330_v1, %v450_v55  ;;  %v519_v2 = vadd.f32 %v2349_v6, %v483_v54 }
  0x25   : > { %392 = vst.msk [vmem:[#allocation2 + $0x80] sm:$0xff] %vm374_vm0, %v2121_v0  ;;  %v487_v3 = vmul.f32 %v2330_v1, %v451_v58  ;;  %v520_v5 = vadd.f32 %v2349_v6, %v484_v57  ;;  %v488_v7 = vmul.f32 %v2330_v1, %v452_v61  ;;  %v521_v9 = vadd.f32 %v2349_v6, %v485_v60 }
  0x26   : > { %394 = vst.msk [vmem:[#allocation2 + $0x90] sm:$0xff] %vm374_vm0, %v2121_v0  ;;  %v522_v12 = vadd.f32 %v2349_v6, %v486_v63  ;;  %v490_v13 = vmul.f32 %v2330_v1, %v454_v4  ;;  %v491_v16 = vmul.f32 %v2330_v1, %v455_v8  ;;  %v492_v19 = vmul.f32 %v2330_v1, %v456_v11 }
  0x27   : > { %395 = vst.msk [vmem:[#allocation2 + $0x98] sm:$0xff] %vm374_vm0, %v2121_v0  ;;  %v523_v15 = vadd.f32 %v2349_v6, %v487_v3  ;;  %v524_v18 = vadd.f32 %v2349_v6, %v488_v7 }
  0x28   : > { %397 = vst.msk [vmem:[#allocation2 + $0xa8] sm:$0xff] %vm374_vm0, %v2121_v0  ;;  %v526_v24 = vadd.f32 %v2349_v6, %v490_v13  ;;  %v527_v27 = vadd.f32 %v2349_v6, %v491_v16 }
  0x29   : > { %398 = vst.msk [vmem:[#allocation2 + $0xb0] sm:$0xff] %vm374_vm0, %v2121_v0 }
  0x2a   : > { %400 = vst.msk [vmem:[#allocation2 + $0xc0] sm:$0xff] %vm374_vm0, %v2121_v0 }
  0x2b   : > { %401 = vst.msk [vmem:[#allocation2 + $0xc8] sm:$0xff] %vm374_vm0, %v2121_v0 }
  0x2c   : > { %403 = vst.msk [vmem:[#allocation2 + $0xd8] sm:$0xff] %vm374_vm0, %v2121_v0 }
  0x2d   : > { %404 = vst.msk [vmem:[#allocation2 + $0xe0] sm:$0xff] %vm374_vm0, %v2121_v0 }
  0x2e   : > { %406 = vst.msk [vmem:[#allocation2 + $0xf0] sm:$0xff] %vm374_vm0, %v2121_v0 }
  0x2f   : > { %407 = vst.msk [vmem:[#allocation2 + $0xf8] sm:$0xff] %vm374_vm0, %v2121_v0 }
  0x30   : > { %409 = vst.msk [vmem:[#allocation2 + $0x108] sm:$0xff] %vm374_vm0, %v2121_v0 }
  0x31   : > { %410 = vst.msk [vmem:[#allocation2 + $0x110] sm:$0xff] %vm374_vm0, %v2121_v0 }
  0x32   : > { %412 = vst.msk [vmem:[#allocation2 + $0x120] sm:$0xff] %vm374_vm0, %v2121_v0 }
  0x33   : > { %413 = vst.msk [vmem:[#allocation2 + $0x128] sm:$0xff] %vm374_vm0, %v2121_v0 }
  0x34   : > { %415 = vst.msk [vmem:[#allocation2 + $0x138] sm:$0xff] %vm374_vm0, %v2121_v0 }
  0x35   : > { %416 = vst.msk [vmem:[#allocation2 + $0x140] sm:$0xff] %vm374_vm0, %v2121_v0 }
  0x36   : > { %418 = vst.msk [vmem:[#allocation2 + $0x150] sm:$0xff] %vm374_vm0, %v2121_v0 }
  0x37   : > { %419 = vst.msk [vmem:[#allocation2 + $0x158] sm:$0xff] %vm374_vm0, %v2121_v0 }
  0x38   : > { %421 = vst.msk [vmem:[#allocation2 + $0x168] sm:$0xff] %vm374_vm0, %v2121_v0 }
  0x39   : > { %422 = vst.msk [vmem:[#allocation2 + $0x170] sm:$0xff] %vm374_vm0, %v2121_v0 }
  0x3a   : > { %424 = vst.msk [vmem:[#allocation2 + $0x180] sm:$0xff] %vm374_vm0, %v2121_v0 }
  0x3b   : > { %425 = vst.msk [vmem:[#allocation2 + $0x188] sm:$0xff] %vm374_vm0, %v2121_v0 }
  0x3c   : > { %427 = vst.msk [vmem:[#allocation2 + $0x198] sm:$0xff] %vm374_vm0, %v2121_v0 }
  0x3d   : > { %428 = vst.msk [vmem:[#allocation2 + $0x1a0] sm:$0xff] %vm374_vm0, %v2121_v0 }
  0x3e   : > { %381 = vst.msk [vmem:[#allocation2 + $0x28] sm:$0x3] %vm377_vm1, %v2121_v0 }
  0x3f   : > { %378 = vst.msk [vmem:[#allocation2 + $0x10] sm:$0x3] %vm377_vm1, %v2121_v0 }
  0x40   : > { %384 = vst.msk [vmem:[#allocation2 + $0x40] sm:$0x3] %vm377_vm1, %v2121_v0 }
  0x41   : > { %387 = vst.msk [vmem:[#allocation2 + $0x58] sm:$0x3] %vm377_vm1, %v2121_v0 }
  0x42   : > { %390 = vst.msk [vmem:[#allocation2 + $0x70] sm:$0x3] %vm377_vm1, %v2121_v0 }
  0x43   : > { %393 = vst.msk [vmem:[#allocation2 + $0x88] sm:$0x3] %vm377_vm1, %v2121_v0 }
  0x44   : > { %396 = vst.msk [vmem:[#allocation2 + $0xa0] sm:$0x3] %vm377_vm1, %v2121_v0 }
  0x45   : > { %399 = vst.msk [vmem:[#allocation2 + $0xb8] sm:$0x3] %vm377_vm1, %v2121_v0 }
  0x46   : > { %402 = vst.msk [vmem:[#allocation2 + $0xd0] sm:$0x3] %vm377_vm1, %v2121_v0 }
  0x47   : > { %405 = vst.msk [vmem:[#allocation2 + $0xe8] sm:$0x3] %vm377_vm1, %v2121_v0 }
  0x48   : > { %408 = vst.msk [vmem:[#allocation2 + $0x100] sm:$0x3] %vm377_vm1, %v2121_v0 }
  0x49   : > { %411 = vst.msk [vmem:[#allocation2 + $0x118] sm:$0x3] %vm377_vm1, %v2121_v0 }
  0x4a   : > { %414 = vst.msk [vmem:[#allocation2 + $0x130] sm:$0x3] %vm377_vm1, %v2121_v0 }
  0x4b   : > { %417 = vst.msk [vmem:[#allocation2 + $0x148] sm:$0x3] %vm377_vm1, %v2121_v0 }
  0x4c   : > { %420 = vst.msk [vmem:[#allocation2 + $0x160] sm:$0x3] %vm377_vm1, %v2121_v0 }
  0x4d   : > { %423 = vst.msk [vmem:[#allocation2 + $0x178] sm:$0x3] %vm377_vm1, %v2121_v0 }
  0x4e   : > { %426 = vst.msk [vmem:[#allocation2 + $0x190] sm:$0x3] %vm377_vm1, %v2121_v0 }
  0x4f   : > { %429 = vst.msk [vmem:[#allocation2 + $0x1a8] sm:$0x3] %vm377_vm1, %v2121_v0  ;;  %v453_v0 = vld [vmem:[%s2214_s15 + $0xb8] sm:$0xff] }
  0x50   : > { %535 = vst.msk [vmem:[#allocation2 + $0x19] sm:$0xff] %vm374_vm0, %v502_v14  ;;  %v489_v10 = vmul.f32 %v2330_v1, %v453_v0  ;;  %v457_v14 = vld [vmem:[%s2214_s15 + $0xd8] sm:$0xff] }
  0x51   : > { %536 = vst.msk [vmem:[#allocation2 + $0x21] sm:$0xff] %vm374_vm0, %v503_v17  ;;  %v458_v17 = vld [vmem:[%s2214_s15 + $0xe0] sm:$0xff]  ;;  %v493_v22 = vmul.f32 %v2330_v1, %v457_v14 }
  0x52   : > { %537 = vst.msk [vmem:[#allocation2 + $0x31] sm:$0xff] %vm374_vm0, %v504_v20  ;;  %v459_v20 = vld [vmem:[%s2214_s15 + $0xe8] sm:$0xff]  ;;  %v525_v21 = vadd.f32 %v2349_v6, %v489_v10  ;;  %v494_v25 = vmul.f32 %v2330_v1, %v458_v17 }
  0x53   : > { %538 = vst.msk [vmem:[#allocation2 + $0x39] sm:$0xff] %vm374_vm0, %v505_v23  ;;  %v460_v23 = vld [vmem:[%s2214_s15 + $0xf0] sm:$0xff]  ;;  %v495_v28 = vmul.f32 %v2330_v1, %v459_v20  ;;  %v529_v31 = vadd.f32 %v2349_v6, %v493_v22 }
  0x54   : > { %539 = vst.msk [vmem:[#allocation2 + $0x49] sm:$0xff] %vm374_vm0, %v506_v26  ;;  %v461_v26 = vld [vmem:[%s2214_s15 + $0xf8] sm:$0xff]  ;;  %v496_v30 = vmul.f32 %v2330_v1, %v460_v23  ;;  %v530_v33 = vadd.f32 %v2349_v6, %v494_v25 }
  0x55   : > { %540 = vst.msk [vmem:[#allocation2 + $0x51] sm:$0xff] %vm374_vm0, %v507_v29  ;;  %v528_v29 = vadd.f32 %v2349_v6, %v492_v19  ;;  %v531_v34 = vadd.f32 %v2349_v6, %v495_v28 }
  0x56   : > { %541 = vst.msk [vmem:[#allocation2 + $0x61] sm:$0xff] %vm374_vm0, %v508_v32  ;;  %v497_v32 = vmul.f32 %v2330_v1, %v461_v26 }
  0x57   : > { %542 = vst.msk [vmem:[#allocation2 + $0x69] sm:$0xff] %vm374_vm0, %v509_v35  ;;  %v532_v35 = vadd.f32 %v2349_v6, %v496_v30 }
  0x58   : > { %543 = vst.msk [vmem:[#allocation2 + $0x79] sm:$0xff] %vm374_vm0, %v510_v38  ;;  %v533_v36 = vadd.f32 %v2349_v6, %v497_v32 }
  0x59   : > { %544 = vst.msk [vmem:[#allocation2 + $0x81] sm:$0xff] %vm374_vm0, %v511_v41 }
  0x5a   : > { %545 = vst.msk [vmem:[#allocation2 + $0x91] sm:$0xff] %vm374_vm0, %v512_v44 }
  0x5b   : > { %546 = vst.msk [vmem:[#allocation2 + $0x99] sm:$0xff] %vm374_vm0, %v513_v47 }
  0x5c   : > { %547 = vst.msk [vmem:[#allocation2 + $0xa9] sm:$0xff] %vm374_vm0, %v514_v50 }
  0x5d   : > { %548 = vst.msk [vmem:[#allocation2 + $0xb1] sm:$0xff] %vm374_vm0, %v515_v53 }
  0x5e   : > { %549 = vst.msk [vmem:[#allocation2 + $0xc1] sm:$0xff] %vm374_vm0, %v516_v56 }
  0x5f   : > { %550 = vst.msk [vmem:[#allocation2 + $0xc9] sm:$0xff] %vm374_vm0, %v517_v59 }
  0x60   : > { %551 = vst.msk [vmem:[#allocation2 + $0xd9] sm:$0xff] %vm374_vm0, %v518_v62 }
  0x61   : > { %552 = vst.msk [vmem:[#allocation2 + $0xe1] sm:$0xff] %vm374_vm0, %v519_v2 }
  0x62   : > { %553 = vst.msk [vmem:[#allocation2 + $0xf1] sm:$0xff] %vm374_vm0, %v520_v5 }
  0x63   : > { %554 = vst.msk [vmem:[#allocation2 + $0xf9] sm:$0xff] %vm374_vm0, %v521_v9 }
  0x64   : > { %555 = vst.msk [vmem:[#allocation2 + $0x109] sm:$0xff] %vm374_vm0, %v522_v12 }
  0x65   : > { %556 = vst.msk [vmem:[#allocation2 + $0x111] sm:$0xff] %vm374_vm0, %v523_v15 }
  0x66   : > { %557 = vst.msk [vmem:[#allocation2 + $0x121] sm:$0xff] %vm374_vm0, %v524_v18 }
  0x67   : > { %558 = vst.msk [vmem:[#allocation2 + $0x129] sm:$0xff] %vm374_vm0, %v525_v21 }
  0x68   : > { %559 = vst.msk [vmem:[#allocation2 + $0x139] sm:$0xff] %vm374_vm0, %v526_v24 }
  0x69   : > { %560 = vst.msk [vmem:[#allocation2 + $0x141] sm:$0xff] %vm374_vm0, %v527_v27 }
  0x6a   : > { %561 = vst.msk [vmem:[#allocation2 + $0x151] sm:$0xff] %vm374_vm0, %v528_v29 }
  0x6b   : > { %562 = vst.msk [vmem:[#allocation2 + $0x159] sm:$0xff] %vm374_vm0, %v529_v31 }
  0x6c   : > { %563 = vst.msk [vmem:[#allocation2 + $0x169] sm:$0xff] %vm374_vm0, %v530_v33 }
  0x6d   : > { %564 = vst.msk [vmem:[#allocation2 + $0x171] sm:$0xff] %vm374_vm0, %v531_v34 }
  0x6e   : > { %565 = vst.msk [vmem:[#allocation2 + $0x181] sm:$0xff] %vm374_vm0, %v532_v35 }
  0x6f   : > { %566 = vst.msk [vmem:[#allocation2 + $0x189] sm:$0xff] %vm374_vm0, %v533_v36 }
  0x70 PF: > { %s1678_s25 = smul.u32 192, %s2103_s24  ;;  %vm624_vm2 = vcmask 1046528   ;;  %s2122_s24 = smov 4   ;;  %vm665_vm3 = vcmask 1045504   ;;  %vm1116_vm4 = vcmask 31744   ;;  %vm1133_vm5 = vcmask 64512  }
  0x71   : > { %s2123_s18 = smov 8   ;;  %s2124_s23 = smov 12   ;;  %vm1150_vm6 = vcmask 97280   ;;  %vm1309_vm7 = vcmask 1041408   ;;  %vm1167_vm8 = vcmask 130048   ;;  %vm1184_vm9 = vcmask 162816  }
  0x72   : > { %s2490_s15 = scalar_lea.vmem [#allocation2], %s1678_s25  ;;  %s2125_s10 = smov 24   ;;  %vm1201_vm10 = vcmask 195584   ;;  %vm1218_vm11 = vcmask 228352   ;;  %vm1235_vm12 = vcmask 261120   ;;  %vm1284_vm13 = vcmask 293888  }
  0x73   : > { %s2126_s11 = smov 20   ;;  %s2127_s9 = smov 16   ;;  %vm1415_vm14 = vcmask 57344  }
  0x74   : > { %s2128_s13 = smov 32   ;;  %s2129_s16 = smov 28  }
  0x76   : > { %v2493_v1 = vld [vmem:[%s2490_s15 + $0x60] sm:$0xff]  ;;  %v2496_v6 = vld [vmem:[%s2490_s15 + $0x68] sm:$0xff]  ;;  %v2499_v37 = vld [vmem:[%s2490_s15 + $0x70] sm:$0x3] }
  0x77   : > { %v645_v38 = vrot.slane %v2493_v1, 1  ;;  %v646_v39 = vrot.slane %v2496_v6, 1  ;;  %v648_v40 = vrot.slane %v2499_v37, 1  ;;  %v2505_v41 = vld [vmem:[%s2490_s15 + $0x30] sm:$0xff]  ;;  %v2508_v42 = vld [vmem:[%s2490_s15 + $0x38] sm:$0xff]  ;;  %v2516_v46 = vld [vmem:[%s2490_s15] sm:$0xff] }
  0x78   : > { %v2511_v43 = vld [vmem:[%s2490_s15 + $0x40] sm:$0x3]  ;;  %v635_v44 = vrot.slane %v2505_v41, 1  ;;  %v636_v45 = vrot.slane %v2508_v42, 1  ;;  %v2519_v47 = vld [vmem:[%s2490_s15 + $0x8] sm:$0xff]  ;;  %v2526_v52 = vld [vmem:[%s2490_s15 + $0x78] sm:$0xff] }
  0x79   : > { %v647_v48 = vsel %vm624_vm2, %v645_v38, %v646_v39  ;;  %v649_v49 = vsel %vm624_vm2, %v646_v39, %v648_v40  ;;  %v638_v50 = vrot.slane %v2511_v43, 1  ;;  %v572_v51 = vld [vmem:[%s2490_s15 + $0x10] sm:$0x3]  ;;  %v2529_v53 = vld [vmem:[%s2490_s15 + $0x80] sm:$0xff]  ;;  %v625_v56 = vrot.slane %v2516_v46, 1  ;;  %v2540_v59 = vld [vmem:[%s2490_s15 + $0x48] sm:$0xff] }
  0x7a   : > { %v2531_v54 = vpack.i.bf16 %v649_v49, %v647_v48  ;;  %v637_v55 = vsel %vm624_vm2, %v635_v44, %v636_v45  ;;  %v626_v57 = vrot.slane %v2519_v47, 1  ;;  %v2537_v58 = vld [vmem:[%s2490_s15 + $0x88] sm:$0x3]  ;;  %v2543_v60 = vld [vmem:[%s2490_s15 + $0x50] sm:$0xff]  ;;  %v628_v62 = vrot.slane %v572_v51, 1  ;;  %v2551_v2 = vld [vmem:[%s2490_s15 + $0x18] sm:$0xff] }
  0x7b   : > { %v639_v61 = vsel %vm624_vm2, %v636_v45, %v638_v50  ;;  %v650_v63 = vrot.slane %v2526_v52, 1  ;;  %v2548_v0 = vld [vmem:[%s2490_s15 + $0x58] sm:$0x3]  ;;  %v651_v5 = vrot.slane %v2529_v53, 1  ;;  %v653_v7 = vrot.slane %v2537_v58, 1  ;;  %v2561_v8 = vld [vmem:[%s2490_s15 + $0x20] sm:$0xff] }
  0x7c   : > { %1781 = vrot.lane.b32.xlu2 %v2531_v54, %s2122_s24  ;;  %v2555_v3 = vpack.i.bf16 %v639_v61, %v637_v55  ;;  %v627_v4 = vsel %vm624_vm2, %v625_v56, %v626_v57  ;;  %v629_v9 = vsel %vm624_vm2, %v626_v57, %v628_v62  ;;  %v640_v10 = vrot.slane %v2540_v59, 1  ;;  %v2568_v13 = vld [vmem:[%s2490_s15 + $0x28] sm:$0x3]  ;;  %v2586_v24 = vld [vmem:[%s2490_s15 + $0xb0] sm:$0xff]  ;;  %v2589_v25 = vld [vmem:[%s2490_s15 + $0xb8] sm:$0x3] }
  0x7d   : > { %v641_v11 = vrot.slane %v2543_v60, 1  ;;  %v643_v12 = vrot.slane %v2548_v0, 1  ;;  %v1760_v14 = vpack.i.bf16 %v629_v9, %v627_v4  ;;  %v652_v15 = vsel %vm624_vm2, %v650_v63, %v651_v5  ;;  %v2583_v23 = vld [vmem:[%s2490_s15 + $0xa8] sm:$0xff]  ;;  %v2595_v30 = vld [vmem:[%s2490_s15 + $0x90] sm:$0xff]  ;;  %v2598_v31 = vld [vmem:[%s2490_s15 + $0x98] sm:$0xff] }
  0x7e   : > { %1771 = vrot.lane.b32.xlu1 %v2555_v3, %s2122_s24  ;;  %v654_v16 = vsel %vm624_vm2, %v651_v5, %v653_v7  ;;  %v630_v17 = vrot.slane %v2551_v2, 1  ;;  %v631_v20 = vrot.slane %v2561_v8, 1  ;;  %v633_v22 = vrot.slane %v2568_v13, 1  ;;  %v590_v34 = vld [vmem:[%s2490_s15 + $0xa0] sm:$0x3] }
  0x7f   : > { %v642_v18 = vsel %vm624_vm2, %v640_v10, %v641_v11  ;;  %v644_v19 = vsel %vm624_vm2, %v641_v11, %v643_v12  ;;  %1761 = vrot.lane.b32.xlu0 %v1760_v14, %s2122_s24  ;;  %v2579_v21 = vpack.i.bf16 %v654_v16, %v652_v15  ;;  %v669_v26 = vrot.slane %v572_v51, 2 }
  0x80   : > { %v632_v27 = vsel %vm624_vm2, %v630_v17, %v631_v20  ;;  %v666_v28 = vrot.slane %v2516_v46, 2  ;;  %v667_v29 = vrot.slane %v2519_v47, 2  ;;  %v2600_v32 = vpack.i.bf16 %v644_v19, %v642_v18 }
  0x81   : > { %v634_v33 = vsel %vm624_vm2, %v631_v20, %v633_v22  ;;  %v660_v35 = vrot.slane %v2583_v23, 1  ;;  %v661_v36 = vrot.slane %v2586_v24, 1  ;;  %v663_v38 = vrot.slane %v2589_v25, 1 }
  0x82   : > { %v2609_v39 = vpack.i.bf16 %v634_v33, %v632_v27  ;;  %v655_v40 = vrot.slane %v2595_v30, 1  ;;  %v656_v44 = vrot.slane %v2598_v31, 1  ;;  %v668_v45 = vsel %vm665_vm3, %v666_v28, %v667_v29 }
  0x83   : > { %v670_v48 = vsel %vm665_vm3, %v667_v29, %v669_v26  ;;  %v658_v49 = vrot.slane %v590_v34, 1  ;;  %v662_v50 = vsel %vm624_vm2, %v660_v35, %v661_v36  ;;  %v664_v51 = vsel %vm624_vm2, %v661_v36, %v663_v38 }
  0x84   : > { %1786 = vrot.lane.b32.xlu2 %v2579_v21, %s2122_s24  ;;  %v1800_v55 = vpack.i.bf16 %v670_v48, %v668_v45  ;;  %v657_v56 = vsel %vm624_vm2, %v655_v40, %v656_v44  ;;  %v681_v61 = vrot.slane %v2540_v59, 2  ;;  %v682_v62 = vrot.slane %v2543_v60, 2 }
  0x85   : > { %v659_v57 = vsel %vm624_vm2, %v656_v44, %v658_v49  ;;  %v684_v63 = vrot.slane %v2548_v0, 2  ;;  %v2626_v4 = vpack.i.bf16 %v664_v51, %v662_v50  ;;  %v679_v5 = vrot.slane %v2511_v43, 2 }
  0x86   : > { %1776 = vrot.lane.b32.xlu1 %v2600_v32, %s2122_s24  ;;  %v676_v7 = vrot.slane %v2505_v41, 2  ;;  %v677_v9 = vrot.slane %v2508_v42, 2  ;;  %v2632_v10 = vpack.i.bf16 %v659_v57, %v657_v56  ;;  %v671_v11 = vrot.slane %v2551_v2, 2 }
  0x87   : > { %1766 = vrot.lane.b32.xlu0 %v2609_v39, %s2122_s24  ;;  %v672_v12 = vrot.slane %v2561_v8, 2  ;;  %v683_v14 = vsel %vm665_vm3, %v681_v61, %v682_v62  ;;  %v685_v0 = vsel %vm665_vm3, %v682_v62, %v684_v63  ;;  %v674_v15 = vrot.slane %v2568_v13, 2 }
  0x88   : > { %v678_v43 = vsel %vm665_vm3, %v676_v7, %v677_v9  ;;  %v680_v16 = vsel %vm665_vm3, %v677_v9, %v679_v5  ;;  %v2645_v17 = vpack.i.bf16 %v685_v0, %v683_v14  ;;  %v696_v20 = vrot.slane %v2595_v30, 2 }
  0x89   : > { %v673_v18 = vsel %vm665_vm3, %v671_v11, %v672_v12  ;;  %v675_v19 = vsel %vm665_vm3, %v672_v12, %v674_v15  ;;  %v697_v13 = vrot.slane %v2598_v31, 2  ;;  %v699_v22 = vrot.slane %v590_v34, 2  ;;  %v2705_v11 = vld [vmem:[%s2490_s15 + $0xc0] sm:$0xff]  ;;  %v2708_v12 = vld [vmem:[%s2490_s15 + $0xc8] sm:$0xff] }
  0x8a   : > { %v2651_v26 = vpack.i.bf16 %v680_v16, %v678_v43  ;;  %v691_v27 = vrot.slane %v2526_v52, 2  ;;  %v692_v28 = vrot.slane %v2529_v53, 2  ;;  %v694_v29 = vrot.slane %v2537_v58, 2 }
  0x8b   : > { %v689_v33 = vrot.slane %v2499_v37, 2  ;;  %v1805_v35 = vpack.i.bf16 %v675_v19, %v673_v18  ;;  %v698_v36 = vsel %vm665_vm3, %v696_v20, %v697_v13  ;;  %v700_v38 = vsel %vm665_vm3, %v697_v13, %v699_v22  ;;  %v596_v22 = vld [vmem:[%s2490_s15 + $0xd0] sm:$0x3] }
  0x8c   : > { %1801 = vrot.lane.b32.xlu2 %v1800_v55, %s2123_s18  ;;  %v686_v34 = vrot.slane %v2493_v1, 2  ;;  %v687_v40 = vrot.slane %v2496_v6, 2  ;;  %v693_v44 = vsel %vm665_vm3, %v691_v27, %v692_v28  ;;  %v695_v58 = vsel %vm665_vm3, %v692_v28, %v694_v29 }
  0x8d   : > { %v2668_v37 = vpack.i.bf16 %v700_v38, %v698_v36  ;;  %v2672_v49 = vpack.i.bf16 %v695_v58, %v693_v44  ;;  %v701_v51 = vrot.slane %v2583_v23, 2  ;;  %v702_v55 = vrot.slane %v2586_v24, 2 }
  0x8e   : > { %1796 = vrot.lane.b32.xlu1 %v2626_v4, %s2122_s24  ;;  %v688_v45 = vsel %vm665_vm3, %v686_v34, %v687_v40  ;;  %v690_v48 = vsel %vm665_vm3, %v687_v40, %v689_v33  ;;  %v704_v56 = vrot.slane %v2589_v25, 2  ;;  %v1845_v57 = vpack.i.bf16 %v2508_v42, %v2505_v41 }
  0x8f   : > { %1791 = vrot.lane.b32.xlu0 %v2632_v10, %s2122_s24  ;;  %v2676_v50 = vpack.i.bf16 %v690_v48, %v688_v45  ;;  %v703_v61 = vsel %vm665_vm3, %v701_v51, %v702_v55  ;;  %v1840_v63 = vpack.i.bf16 %v2561_v8, %v2551_v2  ;;  %v2697_v5 = vpack.i.bf16 %v2529_v53, %v2526_v52 }
  0x90   : > { %v705_v62 = vsel %vm665_vm3, %v702_v55, %v704_v56  ;;  %v1855_v7 = vpack.i.bf16 %v2496_v6, %v2493_v1  ;;  %v1850_v9 = vpack.i.bf16 %v2543_v60, %v2540_v59  ;;  %v1875_v14 = vpack.i.bf16 %v2708_v12, %v2705_v11 }
  0x91   : > { %v2691_v25 = vpack.i.bf16 %v705_v62, %v703_v61  ;;  %v2714_v0 = vpack.i.bf16 %v2586_v24, %v2583_v23  ;;  %v1865_v15 = vpack.i.bf16 %v2598_v31, %v2595_v30  ;;  %v709_v27 = vrot.slane %v2705_v11, 1 }
  0x92   : > { %v712_v28 = vrot.slane %v596_v22, 1  ;;  %v715_v36 = vrot.slane %v2708_v12, 2  ;;  %v717_v38 = vrot.slane %v596_v22, 2 }
  0x94   : > { %1816 = vrot.lane.b32.xlu2 %v2645_v17, %s2123_s18  ;;  %v718_v55 = vsel %vm665_vm3, %v715_v36, %v717_v38 }
  0x96   : > { %1811 = vrot.lane.b32.xlu1 %v2651_v26, %s2123_s18 }
  0x97   : > { %1806 = vrot.lane.b32.xlu0 %v1805_v35, %s2123_s18 }
  0x9c   : > { %1831 = vrot.lane.b32.xlu2 %v2668_v37, %s2123_s18 }
  0x9e   : > { %1826 = vrot.lane.b32.xlu1 %v2672_v49, %s2123_s18 }
  0x9f   : > { %1821 = vrot.lane.b32.xlu0 %v2676_v50, %s2123_s18 }
  0xa4   : > { %1846 = vrot.lane.b32.xlu2 %v1845_v57, %s2124_s23 }
  0xa6   : > { %1841 = vrot.lane.b32.xlu1 %v1840_v63, %s2124_s23 }
  0xa7   : > { %1836 = vrot.lane.b32.xlu0 %v2691_v25, %s2123_s18 }
  0xac   : > { %1861 = vrot.lane.b32.xlu2 %v2697_v5, %s2124_s23 }
  0xae   : > { %1856 = vrot.lane.b32.xlu1 %v1855_v7, %s2124_s23 }
  0xaf   : > { %1851 = vrot.lane.b32.xlu0 %v1850_v9, %s2124_s23 }
  0xb4   : > { %1876 = vrot.lane.b32.xlu2 %v1875_v14, %s2124_s23 }
  0xb6   : > { %1871 = vrot.lane.b32.xlu1 %v2714_v0, %s2124_s23 }
  0xb7   : > { %1866 = vrot.lane.b32.xlu0 %v1865_v15, %s2124_s23 }
  0xbc   : > { %1891 = vrot.lane.b32.xlu2 %v1845_v57, %s2125_s10 }
  0xbe   : > { %1886 = vrot.lane.b32.xlu1 %v1805_v35, %s2126_s11 }
  0xbf   : > { %1881 = vrot.lane.b32.xlu0 %v2609_v39, %s2127_s9 }
  0xc4   : > { %1906 = vrot.lane.b32.xlu2 %v2600_v32, %s2127_s9 }
  0xc6   : > { %1901 = vrot.lane.b32.xlu1 %v2651_v26, %s2128_s13 }
  0xc7   : > { %1896 = vrot.lane.b32.xlu0 %v2555_v3, %s2129_s16 }
  0xcc   : > { %1921 = vrot.lane.b32.xlu2 %v1855_v7, %s2125_s10 }
  0xce   : > { %1916 = vrot.lane.b32.xlu1 %v2579_v21, %s2127_s9 }
  0xcf   : > { %1911 = vrot.lane.b32.xlu0 %v2645_v17, %s2126_s11 }
  0xd4   : > { %1936 = vrot.lane.b32.xlu2 %v1865_v15, %s2125_s10 }
  0xd6   : > { %1931 = vrot.lane.b32.xlu1 %v2531_v54, %s2129_s16  ;;  %v2737_v39 = vpop.permute.xlu2 %1781 }
  0xd7   : > { %1926 = vrot.lane.b32.xlu0 %v2672_v49, %s2126_s11 }
  0xdc   : > { %1951 = vrot.lane.b32.xlu2 %v2668_v37, %s2128_s13 }
  0xde   : > { %1946 = vrot.lane.b32.xlu1 %v2632_v10, %s2129_s16  ;;  %v1787_v43 = vpop.permute.xlu2 %1786 }
  0xdf   : > { %v1789_v16 = vunpack.i.h.bf16 %v1787_v43  ;;  %v1788_v18 = vunpack.i.l.bf16 %v1787_v43  ;;  %1941 = vrot.lane.b32.xlu0 %v2676_v50, %s2128_s13 }
  0xe1   : > { %v2749_v19 = vsel %vm1116_vm4, %v2529_v53, %v1789_v16  ;;  %v2753_v20 = vsel %vm1116_vm4, %v2526_v52, %v1788_v18  ;;  %v710_v53 = vrot.slane %v2708_v12, 1 }
  0xe3   : > { %v711_v52 = vsel %vm624_vm2, %v709_v27, %v710_v53  ;;  %v713_v29 = vsel %vm624_vm2, %v710_v53, %v712_v28 }
  0xe4   : > { %1966 = vrot.lane.b32.xlu2 %v2626_v4, %s2127_s9 }
  0xe6   : > { %1961 = vrot.lane.b32.xlu1 %v2651_v26, %s2126_s11  ;;  %v2759_v13 = vpop.permute.xlu2 %1801 }
  0xe7   : > { %1956 = vrot.lane.b32.xlu0 %v2555_v3, %s2127_s9  ;;  %v2773_v3 = vpack.i.bf16 %v713_v29, %v711_v52 }
  0xec   : > { %1981 = vrot.lane.b32.xlu2 %v2600_v32, %s2129_s16  ;;  %v714_v32 = vrot.slane %v2705_v11, 2 }
  0xee   : > { %1976 = vrot.lane.b32.xlu1 %v2691_v25, %s2126_s11  ;;  %v1817_v26 = vpop.permute.xlu2 %1816  ;;  %v716_v51 = vsel %vm665_vm3, %v714_v32, %v715_v36 }
  0xef   : > { %1971 = vrot.lane.b32.xlu0 %v1850_v9, %s2125_s10  ;;  %v1819_v40 = vunpack.i.h.bf16 %v1817_v26  ;;  %v1818_v44 = vunpack.i.l.bf16 %v1817_v26 }
  0xf0   : > { %v1772_v33 = vpop.permute.xlu1 %1771 }
  0xf1   : > { %v2775_v35 = vpop.permute.xlu0 %1761  ;;  %v1774_v22 = vunpack.i.h.bf16 %v1772_v33  ;;  %v1773_v27 = vunpack.i.l.bf16 %v1772_v33 }
  0xf3   : > { %v1121_v29 = vsel %vm1116_vm4, %v2505_v41, %v1773_v27 }
  0xf4   : > { %1996 = vrot.lane.b32.xlu2 %v2773_v3, %s2129_s16 }
  0xf6   : > { %1991 = vrot.lane.b32.xlu1 %v2645_v17, %s2128_s13  ;;  %v1832_v34 = vpop.permute.xlu2 %1831  ;;  %v2792_v17 = vpack.i.bf16 %v718_v55, %v716_v51 }
  0xf7   : > { %1986 = vrot.lane.b32.xlu0 %v1875_v14, %s2125_s10  ;;  %v1834_v11 = vunpack.i.h.bf16 %v1832_v34 }
  0xf8   : > { %v1777_v58 = vpop.permute.xlu1 %1776 }
  0xf9   : > { %v1779_v45 = vunpack.i.h.bf16 %v1777_v58  ;;  %v1778_v48 = vunpack.i.l.bf16 %v1777_v58  ;;  %v1767_v56 = vpop.permute.xlu0 %1766 }
  0xfa   : > { %v1769_v53 = vunpack.i.h.bf16 %v1767_v56  ;;  %v1768_v28 = vunpack.i.l.bf16 %v1767_v56  ;;  %v598_v56 = vld [vmem:[%s2490_s15 + $0xe0] sm:$0xff] }
  0xfb   : > { %v1124_v57 = vsel %vm1116_vm4, %v2543_v60, %v1779_v45  ;;  %v1123_v61 = vsel %vm1116_vm4, %v2540_v59, %v1778_v48 }
  0xfc   : > { %2011 = vrot.lane.b32.xlu2 %v2676_v50, %s2126_s11  ;;  %v2795_v62 = vsel %vm1133_vm5, %v1123_v61, %v1818_v44  ;;  %v2798_v63 = vsel %vm1133_vm5, %v1124_v57, %v1819_v40  ;;  %v1833_v50 = vunpack.i.l.bf16 %v1832_v34  ;;  %v1120_v40 = vsel %vm1116_vm4, %v2561_v8, %v1769_v53  ;;  %v1264_v8 = vld [vmem:[%s3198_s3 + $0x10] sm:$0x3] }
  0xfd   : > { %v1278_v51 = vunpack.c.l.b16 %v1264_v8  ;;  %v728_v53 = vrot.slane %v598_v56, 2 }
  0xfe   : > { %2006 = vrot.lane.b32.xlu1 %v2531_v54, %s2127_s9  ;;  %v1847_v7 = vpop.permute.xlu2 %1846 }
  0xff   : > { %2001 = vrot.lane.b32.xlu0 %v2792_v17, %s2128_s13  ;;  %v1849_v26 = vunpack.i.h.bf16 %v1847_v7  ;;  %v1848_v33 = vunpack.i.l.bf16 %v1847_v7  ;;  %v723_v7 = vrot.slane %v598_v56, 1 }
 0x100   : > { %v1797_v59 = vpop.permute.xlu1 %1796 }
 0x101   : > { %v1799_v60 = vunpack.i.h.bf16 %v1797_v59  ;;  %v1798_v9 = vunpack.i.l.bf16 %v1797_v59  ;;  %v1792_v12 = vpop.permute.xlu0 %1791 }
 0x102   : > { %v1794_v43 = vunpack.i.h.bf16 %v1792_v12  ;;  %v1793_v54 = vunpack.i.l.bf16 %v1792_v12 }
 0x103   : > { %v2806_v14 = vsel %vm1116_vm4, %v2586_v24, %v1799_v60  ;;  %v2810_v15 = vsel %vm1116_vm4, %v2583_v23, %v1798_v9  ;;  %v599_v60 = vld [vmem:[%s2490_s15 + $0xe8] sm:$0x3]  ;;  %v1281_v9 = vpack.c.b16 %v1278_v51, %v1278_v51 }
 0x104   : > { %2026 = vrot.lane.b32.xlu2 %v2668_v37, %s2126_s11  ;;  %v1130_v16 = vsel %vm1116_vm4, %v2598_v31, %v1794_v43  ;;  %v1129_v18 = vsel %vm1116_vm4, %v2595_v30, %v1793_v54 }
 0x105   : > { %v2821_v24 = vsel %vm1133_vm5, %v1129_v18, %v1833_v50  ;;  %v2824_v23 = vsel %vm1133_vm5, %v1130_v16, %v1834_v11  ;;  %v725_v11 = vrot.slane %v599_v60, 1  ;;  %v1311_v50 = vsel %vm1309_vm7, %v1281_v9, 0 }
 0x106   : > { %2021 = vrot.lane.b32.xlu1 %v2697_v5, %s2125_s10  ;;  %v2828_v30 = vpop.permute.xlu2 %1861  ;;  %v1122_v5 = vsel %vm1116_vm4, %v2508_v42, %v1774_v22  ;;  %v1119_v42 = vsel %vm1116_vm4, %v2551_v2, %v1768_v28  ;;  %1318 = vmatpush.bf16.msra.mxu0 %v1311_v50 }
 0x107   : > { %2016 = vrot.lane.b32.xlu0 %v2632_v10, %s2127_s9  ;;  %v726_v12 = vsel %vm624_vm2, %v723_v7, %v725_v11  ;;  %1700 = vmatpush.bf16.msra.mxu1 %v1311_v50 }
 0x108   : > { %v1812_v31 = vpop.permute.xlu1 %1811  ;;  %1701 = vmatpush.bf16.msra.mxu2 %v1311_v50  ;;  %1702 = vmatpush.bf16.msra.mxu3 %v1311_v50 }
 0x109   : > { %v1814_v37 = vunpack.i.h.bf16 %v1812_v31  ;;  %v1813_v52 = vunpack.i.l.bf16 %v1812_v31  ;;  %v1807_v32 = vpop.permute.xlu0 %1806 }
 0x10a   : > { %v1809_v38 = vunpack.i.h.bf16 %v1807_v32  ;;  %v1808_v34 = vunpack.i.l.bf16 %v1807_v32 }
 0x10b   : > { %v2835_v36 = vsel %vm1133_vm5, %v1121_v29, %v1813_v52  ;;  %v2838_v10 = vsel %vm1133_vm5, %v1122_v5, %v1814_v37  ;;  %v730_v5 = vrot.slane %v599_v60, 2 }
 0x10c   : > { %2041 = vrot.lane.b32.xlu2 %v2672_v49, %s2128_s13  ;;  %v1136_v41 = vsel %vm1133_vm5, %v1119_v42, %v1808_v34  ;;  %v1137_v44 = vsel %vm1133_vm5, %v1120_v40, %v1809_v38 }
 0x10d   : > { %v2851_v58 = vsel %vm1150_vm6, %v1136_v41, %v1848_v33  ;;  %v2854_v45 = vsel %vm1150_vm6, %v1137_v44, %v1849_v26  ;;  %v731_v38 = vsel %vm665_vm3, %v728_v53, %v730_v5 }
 0x10e   : > { %2036 = vrot.lane.b32.xlu1 %v2714_v0, %s2125_s10  ;;  %v597_v0 = vld [vmem:[%s2490_s15 + $0xd8] sm:$0xff] }
 0x10f   : > { %2031 = vrot.lane.b32.xlu0 %v2579_v21, %s2129_s16  ;;  %v1877_v21 = vpop.permute.xlu2 %1876  ;;  %v722_v59 = vrot.slane %v597_v0, 1  ;;  %v2065_v18 = vpack.i.bf16 %v598_v56, %v597_v0  ;;  %v727_v52 = vrot.slane %v597_v0, 2  ;;  %v1764_v0 = vunpack.i.h.bf16 %v2775_v35 }
 0x110   : > { %v1827_v2 = vpop.permute.xlu1 %1826  ;;  %v1878_v54 = vunpack.i.l.bf16 %v1877_v21  ;;  %v1763_v56 = vunpack.i.l.bf16 %v2775_v35 }
 0x111   : > { %v1829_v49 = vunpack.i.h.bf16 %v1827_v2  ;;  %v1828_v48 = vunpack.i.l.bf16 %v1827_v2  ;;  %v2861_v55 = vpop.permute.xlu0 %1821  ;;  %v729_v32 = vsel %vm665_vm3, %v727_v52, %v728_v53  ;;  %v1118_v60 = vsel %vm1116_vm4, %v2519_v47, %v1764_v0 }
 0x112   : > { %v1117_v9 = vsel %vm1116_vm4, %v2516_v46, %v1763_v56 }
 0x113   : > { %v2867_v57 = vsel %vm1133_vm5, %v2749_v19, %v1829_v49  ;;  %v2871_v61 = vsel %vm1133_vm5, %v2753_v20, %v1828_v48  ;;  %v1699_v19 = vld [vmem:[%s3198_s3 + $0x8] sm:$0xff]  ;;  %v724_v20 = vsel %vm624_vm2, %v722_v59, %v723_v7  ;;  %v1803_v59 = vunpack.i.l.bf16 %v2759_v13 }
 0x114   : > { %2056 = vrot.lane.b32.xlu2 %v2773_v3, %s2127_s9  ;;  %v2070_v43 = vpack.i.bf16 %v726_v12, %v724_v20  ;;  %1319 = vmatpush.bf16.msra.mxu0 %v1699_v19 }
 0x115   : > { %1703 = vmatpush.bf16.msra.mxu1 %v1699_v19  ;;  %1704 = vmatpush.bf16.msra.mxu2 %v1699_v19  ;;  %v1134_v20 = vsel %vm1133_vm5, %v1117_v9, %v1803_v59  ;;  %v1863_v9 = vunpack.i.l.bf16 %v2828_v30 }
 0x116   : > { %2051 = vrot.lane.b32.xlu1 %v2691_v25, %s2128_s13  ;;  %v1879_v25 = vunpack.i.h.bf16 %v1877_v21  ;;  %1705 = vmatpush.bf16.msra.mxu3 %v1699_v19 }
 0x117   : > { %2046 = vrot.lane.b32.xlu0 %v2626_v4, %s2129_s16  ;;  %v1698_v4 = vld [vmem:[%s3198_s3] sm:$0xff]  ;;  %v2891_v28 = vpop.permute.xlu2 %1891 }
 0x118   : > { %v2885_v3 = vpop.permute.xlu1 %1841  ;;  %1320 = vmatpush.bf16.msra.mxu0 %v1698_v4 }
 0x119   : > { %v1837_v16 = vpop.permute.xlu0 %1836  ;;  %1706 = vmatpush.bf16.msra.mxu1 %v1698_v4  ;;  %1707 = vmatpush.bf16.msra.mxu2 %v1698_v4  ;;  %v1844_v35 = vunpack.i.h.bf16 %v2885_v3 }
 0x11a   : > { %v1839_v22 = vunpack.i.h.bf16 %v1837_v16  ;;  %v1838_v27 = vunpack.i.l.bf16 %v1837_v16  ;;  %1708 = vmatpush.bf16.msra.mxu3 %v1698_v4  ;;  %v1893_v16 = vunpack.i.l.bf16 %v2891_v28 }
 0x11c   : > { %2071 = vrot.lane.b32.xlu2 %v2070_v43, %s2129_s16  ;;  %v1149_v31 = vsel %vm1133_vm5, %v2806_v14, %v1839_v22  ;;  %v1148_v37 = vsel %vm1133_vm5, %v2810_v15, %v1838_v27 }
 0x11d   : > { %v2899_v29 = vsel %vm1150_vm6, %v1148_v37, %v1878_v54  ;;  %v2902_v26 = vsel %vm1150_vm6, %v1149_v31, %v1879_v25  ;;  %v1894_v54 = vunpack.i.h.bf16 %v2891_v28 }
 0x11e   : > { %2066 = vrot.lane.b32.xlu1 %v2065_v18, %s2125_s10 }
 0x11f   : > { %2061 = vrot.lane.b32.xlu0 %v2792_v17, %s2126_s11  ;;  %v2075_v17 = vpack.i.bf16 %v731_v38, %v729_v32  ;;  %v2918_v41 = vpop.permute.xlu2 %1906 }
 0x120   : > { %v1857_v14 = vpop.permute.xlu1 %1856 }
 0x121   : > { %v1859_v33 = vunpack.i.h.bf16 %v1857_v14  ;;  %v1858_v15 = vunpack.i.l.bf16 %v1857_v14  ;;  %v2908_v34 = vpop.permute.xlu0 %1851 }
 0x122   : > { %v1854_v56 = vunpack.i.h.bf16 %v2908_v34 }
 0x123   : > { %v2912_v40 = vsel %vm1150_vm6, %v2795_v62, %v1858_v15  ;;  %v2916_v42 = vsel %vm1150_vm6, %v2798_v63, %v1859_v33 }
 0x127   : > { %2076 = vrot.lane.b32.xlu0 %v2075_v17, %s2128_s13  ;;  %v2947_v11 = vpop.permute.xlu2 %1921 }
 0x128   : > { %v1872_v44 = vpop.permute.xlu1 %1871 }
 0x129   : > { %v1874_v2 = vunpack.i.h.bf16 %v1872_v44  ;;  %v1873_v8 = vunpack.i.l.bf16 %v1872_v44  ;;  %v1867_v49 = vpop.permute.xlu0 %1866 }
 0x12a   : > { %v1869_v51 = vunpack.i.h.bf16 %v1867_v49  ;;  %v1868_v63 = vunpack.i.l.bf16 %v1867_v49  ;;  %v1783_v49 = vunpack.i.l.bf16 %v2737_v39 }
 0x12b   : > { %v2923_v48 = vsel %vm1150_vm6, %v2821_v24, %v1873_v8  ;;  %v2927_v62 = vsel %vm1150_vm6, %v2824_v23, %v1874_v2  ;;  %v1804_v24 = vunpack.i.h.bf16 %v2759_v13  ;;  %v1784_v8 = vunpack.i.h.bf16 %v2737_v39 }
 0x12c   : > { %v2933_v21 = vsel %vm1150_vm6, %v2867_v57, %v1869_v51  ;;  %v2937_v7 = vsel %vm1150_vm6, %v2871_v61, %v1868_v63  ;;  %v1843_v57 = vunpack.i.l.bf16 %v2885_v3  ;;  %v1824_v51 = vunpack.i.h.bf16 %v2861_v55 }
 0x12d   : > { %v1135_v13 = vsel %vm1133_vm5, %v1118_v60, %v1804_v24  ;;  %v1823_v63 = vunpack.i.l.bf16 %v2861_v55  ;;  %v1853_v24 = vunpack.i.l.bf16 %v2908_v34  ;;  %v1126_v59 = vsel %vm1116_vm4, %v2496_v6, %v1784_v8 }
 0x12e   : > { %v1151_v12 = vsel %vm1150_vm6, %v1134_v20, %v1843_v57  ;;  %v1152_v47 = vsel %vm1150_vm6, %v1135_v13, %v1844_v35  ;;  %v1864_v60 = vunpack.i.h.bf16 %v2828_v30  ;;  %v1143_v35 = vsel %vm1133_vm5, %v1126_v59, %v1824_v51 }
 0x12f   : > { %v2959_v37 = vpop.permute.xlu2 %1936  ;;  %v1909_v57 = vunpack.i.h.bf16 %v2918_v41  ;;  %v1156_v34 = vsel %vm1150_vm6, %v2838_v10, %v1854_v56  ;;  %v1155_v6 = vsel %vm1150_vm6, %v2835_v36, %v1853_v24 }
 0x130   : > { %v1887_v23 = vpop.permute.xlu1 %1886  ;;  %v1939_v36 = vunpack.i.h.bf16 %v2959_v37 }
 0x131   : > { %v1882_v50 = vpop.permute.xlu0 %1881  ;;  %v1889_v43 = vunpack.i.h.bf16 %v1887_v23  ;;  %v1888_v46 = vunpack.i.l.bf16 %v1887_v23  ;;  %v1125_v23 = vsel %vm1116_vm4, %v2493_v1, %v1783_v49 }
 0x132   : > { %v1884_v61 = vunpack.i.h.bf16 %v1882_v50  ;;  %v1883_v19 = vunpack.i.l.bf16 %v1882_v50  ;;  %v1142_v55 = vsel %vm1133_vm5, %v1125_v23, %v1823_v63  ;;  %v1908_v50 = vunpack.i.l.bf16 %v2918_v41 }
 0x133   : > { %v1923_v41 = vunpack.i.l.bf16 %v2947_v11 }
 0x134   : > { %v1168_v25 = vsel %vm1167_vm8, %v1151_v12, %v1883_v19  ;;  %v1169_v3 = vsel %vm1167_vm8, %v1152_v47, %v1884_v61  ;;  %v1159_v47 = vsel %vm1150_vm6, %v1142_v55, %v1863_v9  ;;  %v1172_v10 = vsel %vm1167_vm8, %v1155_v6, %v1908_v50 }
 0x135   : > { %v1185_v22 = vsel %vm1184_vm9, %v1168_v25, %v1888_v46  ;;  %v1186_v27 = vsel %vm1184_vm9, %v1169_v3, %v1889_v43  ;;  %v1160_v43 = vsel %vm1150_vm6, %v1143_v35, %v1864_v60  ;;  %v1924_v46 = vunpack.i.h.bf16 %v2947_v11 }
 0x136   : > { %v1202_v14 = vsel %vm1201_vm10, %v1185_v22, %v1893_v16  ;;  %v1203_v33 = vsel %vm1201_vm10, %v1186_v27, %v1894_v54  ;;  %v1173_v25 = vsel %vm1167_vm8, %v1156_v34, %v1909_v57  ;;  %v1938_v3 = vunpack.i.l.bf16 %v2959_v37 }
 0x137   : > { %v1952_v0 = vpop.permute.xlu2 %1951 }
 0x138   : > { %v1902_v18 = vpop.permute.xlu1 %1901 }
 0x139   : > { %v1904_v53 = vunpack.i.h.bf16 %v1902_v18  ;;  %v1903_v4 = vunpack.i.l.bf16 %v1902_v18  ;;  %v1897_v31 = vpop.permute.xlu0 %1896 }
 0x13a   : > { %v1899_v52 = vunpack.i.h.bf16 %v1897_v31  ;;  %v1898_v5 = vunpack.i.l.bf16 %v1897_v31  ;;  %v1953_v31 = vunpack.i.l.bf16 %v1952_v0 }
 0x13c   : > { %v1219_v28 = vsel %vm1218_vm11, %v1202_v14, %v1898_v5  ;;  %v1220_v15 = vsel %vm1218_vm11, %v1203_v33, %v1899_v52 }
 0x13d   : > { %v1236_v32 = vsel %vm1235_vm12, %v1219_v28, %v1903_v4  ;;  %v1237_v38 = vsel %vm1235_vm12, %v1220_v15, %v1904_v53  ;;  %v1954_v4 = vunpack.i.h.bf16 %v1952_v0 }
 0x13e   : > { %v1252_v17 = vpack.c.bf16 %v1237_v38, %v1236_v32 }
 0x13f   : > { %v2998_v18 = vpop.permute.xlu2 %1966 }
 0x140   : > { %v1917_v44 = vpop.permute.xlu1 %1916  ;;  %1687 = vmatmul.msk.bf16.vlgmr.msra.gmra.mxu0 %vm1284_vm13, %v1252_v17 }
 0x141   : > { %v1912_v2 = vpop.permute.xlu0 %1911  ;;  %v1919_v1 = vunpack.i.h.bf16 %v1917_v44  ;;  %v1918_v61 = vunpack.i.l.bf16 %v1917_v44 }
 0x142   : > { %v1914_v20 = vunpack.i.h.bf16 %v1912_v2  ;;  %v1913_v30 = vunpack.i.l.bf16 %v1912_v2 }
 0x143   : > { %v1176_v54 = vsel %vm1167_vm8, %v1159_v47, %v1918_v61  ;;  %v1177_v16 = vsel %vm1167_vm8, %v1160_v43, %v1919_v1 }
 0x144   : > { %v1189_v22 = vsel %vm1184_vm9, %v1172_v10, %v1913_v30  ;;  %v1190_v27 = vsel %vm1184_vm9, %v1173_v25, %v1914_v20 }
 0x145   : > { %v1206_v28 = vsel %vm1201_vm10, %v1189_v22, %v1923_v41  ;;  %v1207_v15 = vsel %vm1201_vm10, %v1190_v27, %v1924_v46  ;;  %v1968_v22 = vunpack.i.l.bf16 %v2998_v18 }
 0x148   : > { %v1932_v39 = vpop.permute.xlu1 %1931 }
 0x149   : > { %v1927_v19 = vpop.permute.xlu0 %1926  ;;  %v1934_v52 = vunpack.i.h.bf16 %v1932_v39  ;;  %v1933_v5 = vunpack.i.l.bf16 %v1932_v39  ;;  %v1982_v39 = vpop.permute.xlu2 %1981 }
 0x14a   : > { %v1929_v13 = vunpack.i.h.bf16 %v1927_v19  ;;  %v1928_v12 = vunpack.i.l.bf16 %v1927_v19  ;;  %v1983_v47 = vunpack.i.l.bf16 %v1982_v39 }
 0x14b   : > { %v1223_v51 = vsel %vm1218_vm11, %v1206_v28, %v1933_v5  ;;  %v1224_v63 = vsel %vm1218_vm11, %v1207_v15, %v1934_v52 }
 0x14c   : > { %v1193_v11 = vsel %vm1184_vm9, %v1176_v54, %v1928_v12  ;;  %v1194_v53 = vsel %vm1184_vm9, %v1177_v16, %v1929_v13  ;;  %v1984_v12 = vunpack.i.h.bf16 %v1982_v39  ;;  %v1969_v16 = vunpack.i.h.bf16 %v2998_v18 }
 0x14d   : > { %v1210_v32 = vsel %vm1201_vm10, %v1193_v11, %v1938_v3  ;;  %v1211_v38 = vsel %vm1201_vm10, %v1194_v53, %v1939_v36 }
 0x150   : > { %v1947_v14 = vpop.permute.xlu1 %1946 }
 0x151   : > { %v1949_v37 = vunpack.i.h.bf16 %v1947_v14  ;;  %v1948_v33 = vunpack.i.l.bf16 %v1947_v14  ;;  %v1942_v17 = vpop.permute.xlu0 %1941  ;;  %v1997_v61 = vpop.permute.xlu2 %1996 }
 0x152   : > { %v1944_v8 = vunpack.i.h.bf16 %v1942_v17  ;;  %v1943_v49 = vunpack.i.l.bf16 %v1942_v17  ;;  %v1999_v28 = vunpack.i.h.bf16 %v1997_v61  ;;  %v1998_v18 = vunpack.i.l.bf16 %v1997_v61 }
 0x153   : > { %v1227_v44 = vsel %vm1218_vm11, %v1210_v32, %v1948_v33  ;;  %v1228_v2 = vsel %vm1218_vm11, %v1211_v38, %v1949_v37  ;;  %v1180_v37 = vsel %vm1167_vm8, %v2923_v48, %v1968_v22  ;;  %v1181_v33 = vsel %vm1167_vm8, %v2927_v62, %v1969_v16 }
 0x154   : > { %v1244_v0 = vsel %vm1235_vm12, %v1227_v44, %v1953_v31  ;;  %v1245_v56 = vsel %vm1235_vm12, %v1228_v2, %v1954_v4  ;;  %v1240_v24 = vsel %vm1235_vm12, %v1223_v51, %v1943_v49  ;;  %v1241_v59 = vsel %vm1235_vm12, %v1224_v63, %v1944_v8 }
 0x155   : > { %v1256_v23 = vpack.c.bf16 %v1245_v56, %v1244_v0  ;;  %v1254_v60 = vpack.c.bf16 %v1241_v59, %v1240_v24 }
 0x157   : > { %1691 = vmatmul.msk.bf16.vlgmr.msra.gmra.mxu2 %vm1284_vm13, %v1256_v23  ;;  %1689 = vmatmul.msk.bf16.vlgmr.msra.gmra.mxu1 %vm1284_vm13, %v1254_v60 }
 0x158   : > { %v1962_v9 = vpop.permute.xlu1 %1961 }
 0x159   : > { %v1957_v35 = vpop.permute.xlu0 %1956  ;;  %v1964_v34 = vunpack.i.h.bf16 %v1962_v9  ;;  %v1963_v6 = vunpack.i.l.bf16 %v1962_v9  ;;  %v2012_v52 = vpop.permute.xlu2 %2011 }
 0x15a   : > { %v1959_v55 = vunpack.i.h.bf16 %v1957_v35  ;;  %v1958_v57 = vunpack.i.l.bf16 %v1957_v35  ;;  %v2014_v9 = vunpack.i.h.bf16 %v2012_v52  ;;  %v2013_v39 = vunpack.i.l.bf16 %v2012_v52 }
 0x15c   : > { %v1170_v19 = vsel %vm1167_vm8, %v2851_v58, %v1958_v57  ;;  %v1171_v20 = vsel %vm1167_vm8, %v2854_v45, %v1959_v55 }
 0x15d   : > { %v1187_v43 = vsel %vm1184_vm9, %v1170_v19, %v1963_v6  ;;  %v1188_v46 = vsel %vm1184_vm9, %v1171_v20, %v1964_v34 }
 0x160   : > { %v1977_v50 = vpop.permute.xlu1 %1976 }
 0x161   : > { %v1972_v1 = vpop.permute.xlu0 %1971  ;;  %v1979_v53 = vunpack.i.h.bf16 %v1977_v50  ;;  %v1978_v4 = vunpack.i.l.bf16 %v1977_v50  ;;  %v2027_v56 = vpop.permute.xlu2 %2026 }
 0x162   : > { %v1974_v30 = vunpack.i.h.bf16 %v1972_v1  ;;  %v1973_v13 = vunpack.i.l.bf16 %v1972_v1 }
 0x163   : > { %v1197_v15 = vsel %vm1184_vm9, %v1180_v37, %v1978_v4  ;;  %v1198_v32 = vsel %vm1184_vm9, %v1181_v33, %v1979_v53 }
 0x164   : > { %v1204_v41 = vsel %vm1201_vm10, %v1187_v43, %v1973_v13  ;;  %v1205_v10 = vsel %vm1201_vm10, %v1188_v46, %v1974_v30 }
 0x165   : > { %v1221_v58 = vsel %vm1218_vm11, %v1204_v41, %v1983_v47  ;;  %v1222_v45 = vsel %vm1218_vm11, %v1205_v10, %v1984_v12 }
 0x168   : > { %v1992_v25 = vpop.permute.xlu1 %1991 }
 0x169   : > { %v1994_v36 = vunpack.i.h.bf16 %v1992_v25  ;;  %v1993_v3 = vunpack.i.l.bf16 %v1992_v25  ;;  %v1987_v54 = vpop.permute.xlu0 %1986  ;;  %v2042_v6 = vpop.permute.xlu2 %2041 }
 0x16a   : > { %v1989_v5 = vunpack.i.h.bf16 %v1987_v54  ;;  %v1988_v14 = vunpack.i.l.bf16 %v1987_v54  ;;  %v2044_v1 = vunpack.i.h.bf16 %v2042_v6  ;;  %v2043_v61 = vunpack.i.l.bf16 %v2042_v6  ;;  %v3088_v6 = vld [vmem:[%s3199_s4] ss:$0 sm:$0xff] }
 0x16b   : > { %v1238_v27 = vsel %vm1235_vm12, %v1221_v58, %v1993_v3  ;;  %v1239_v11 = vsel %vm1235_vm12, %v1222_v45, %v1994_v36  ;;  %v2029_v36 = vunpack.i.h.bf16 %v2027_v56  ;;  %v2028_v3 = vunpack.i.l.bf16 %v2027_v56 }
 0x16c   : > { %v1253_v31 = vpack.c.bf16 %v1239_v11, %v1238_v27  ;;  %v1214_v17 = vsel %vm1201_vm10, %v1197_v15, %v1988_v14  ;;  %v1215_v44 = vsel %vm1201_vm10, %v1198_v32, %v1989_v5 }
 0x16d   : > { %v1231_v51 = vsel %vm1218_vm11, %v1214_v17, %v1998_v18  ;;  %v1232_v48 = vsel %vm1218_vm11, %v1215_v44, %v1999_v28 }
 0x16e   : > { %1688 = vmatmul.msk.bf16.gmra.mxu0 %vm1284_vm13, %v1253_v31 }
 0x170   : > { %v2007_v38 = vpop.permute.xlu1 %2006 }
 0x171   : > { %v2002_v2 = vpop.permute.xlu0 %2001  ;;  %v2009_v23 = vunpack.i.h.bf16 %v2007_v38  ;;  %v2008_v60 = vunpack.i.l.bf16 %v2007_v38  ;;  %v2057_v33 = vpop.permute.xlu2 %2056 }
 0x172   : > { %v2004_v8 = vunpack.i.h.bf16 %v2002_v2  ;;  %v2003_v49 = vunpack.i.l.bf16 %v2002_v2  ;;  %v2059_v38 = vunpack.i.h.bf16 %v2057_v33  ;;  %v2058_v17 = vunpack.i.l.bf16 %v2057_v33 }
 0x173   : > { %v1174_v35 = vsel %vm1167_vm8, %v2912_v40, %v2008_v60  ;;  %v1175_v55 = vsel %vm1167_vm8, %v2916_v42, %v2009_v23 }
 0x174   : > { %v1248_v62 = vsel %vm1235_vm12, %v1231_v51, %v2003_v49  ;;  %v1249_v63 = vsel %vm1235_vm12, %v1232_v48, %v2004_v8  ;;  %v1191_v20 = vsel %vm1184_vm9, %v1174_v35, %v2013_v39  ;;  %v1192_v30 = vsel %vm1184_vm9, %v1175_v55, %v2014_v9 }
 0x175   : > { %v1258_v0 = vpack.c.bf16 %v1249_v63, %v1248_v62  ;;  %v1182_v51 = vsel %vm1167_vm8, %v2899_v29, %v2058_v17  ;;  %v1183_v48 = vsel %vm1167_vm8, %v2902_v26, %v2059_v38 }
 0x177   : > { %1693 = vmatmul.msk.bf16.vlgmr.msra.gmra.mxu3 %vm1284_vm13, %v1258_v0 }
 0x178   : > { %v2022_v24 = vpop.permute.xlu1 %2021 }
 0x179   : > { %v2017_v59 = vpop.permute.xlu0 %2016  ;;  %v2024_v57 = vunpack.i.h.bf16 %v2022_v24  ;;  %v2023_v50 = vunpack.i.l.bf16 %v2022_v24  ;;  %v2072_v0 = vpop.permute.xlu2 %2071 }
 0x17a   : > { %v2019_v43 = vunpack.i.h.bf16 %v2017_v59  ;;  %v2018_v46 = vunpack.i.l.bf16 %v2017_v59  ;;  %v2074_v59 = vunpack.i.h.bf16 %v2072_v0  ;;  %v2073_v23 = vunpack.i.l.bf16 %v2072_v0 }
 0x17b   : > { %v1208_v47 = vsel %vm1201_vm10, %v1191_v20, %v2023_v50  ;;  %v1209_v40 = vsel %vm1201_vm10, %v1192_v30, %v2024_v57 }
 0x17c   : > { %v1178_v58 = vsel %vm1167_vm8, %v2937_v7, %v2018_v46  ;;  %v1179_v45 = vsel %vm1167_vm8, %v2933_v21, %v2019_v43 }
 0x17d   : > { %v1195_v31 = vsel %vm1184_vm9, %v1178_v58, %v2028_v3  ;;  %v1196_v52 = vsel %vm1184_vm9, %v1179_v45, %v2029_v36 }
 0x180   : > { %v2037_v34 = vpop.permute.xlu1 %2036 }
 0x181   : > { %v2032_v19 = vpop.permute.xlu0 %2031  ;;  %v2039_v16 = vunpack.i.h.bf16 %v2037_v34  ;;  %v2038_v22 = vunpack.i.l.bf16 %v2037_v34 }
 0x182   : > { %v2034_v13 = vunpack.i.h.bf16 %v2032_v19  ;;  %v2033_v12 = vunpack.i.l.bf16 %v2032_v19 }
 0x183   : > { %v1212_v37 = vsel %vm1201_vm10, %v1195_v31, %v2038_v22  ;;  %v1213_v7 = vsel %vm1201_vm10, %v1196_v52, %v2039_v16 }
 0x184   : > { %v1226_v42 = vsel %vm1218_vm11, %v1209_v40, %v2034_v13  ;;  %v1225_v41 = vsel %vm1218_vm11, %v1208_v47, %v2033_v12 }
 0x185   : > { %v1242_v10 = vsel %vm1235_vm12, %v1225_v41, %v2043_v61  ;;  %v1243_v25 = vsel %vm1235_vm12, %v1226_v42, %v2044_v1 }
 0x186   : > { %v1255_v54 = vpack.c.bf16 %v1243_v25, %v1242_v10 }
 0x188   : > { %v2052_v27 = vpop.permute.xlu1 %2051  ;;  %1690 = vmatmul.msk.bf16.gmra.mxu1 %vm1284_vm13, %v1255_v54 }
 0x189   : > { %v2047_v11 = vpop.permute.xlu0 %2046  ;;  %v2054_v53 = vunpack.i.h.bf16 %v2052_v27  ;;  %v2053_v4 = vunpack.i.l.bf16 %v2052_v27 }
 0x18a   : > { %v2049_v5 = vunpack.i.h.bf16 %v2047_v11  ;;  %v2048_v14 = vunpack.i.l.bf16 %v2047_v11 }
 0x18c   : > { %v1229_v21 = vsel %vm1218_vm11, %v1212_v37, %v2048_v14  ;;  %v1230_v28 = vsel %vm1218_vm11, %v1213_v7, %v2049_v5 }
 0x18d   : > { %v1246_v18 = vsel %vm1235_vm12, %v1229_v21, %v2053_v4  ;;  %v1247_v15 = vsel %vm1235_vm12, %v1230_v28, %v2054_v53 }
 0x18e   : > { %v1257_v32 = vpack.c.bf16 %v1247_v15, %v1246_v18 }
 0x190   : > { %1692 = vmatmul.msk.bf16.gmra.mxu2 %vm1284_vm13, %v1257_v32  ;;  %v2067_v2 = vpop.permute.xlu1 %2066 }
 0x191   : > { %v2062_v44 = vpop.permute.xlu0 %2061  ;;  %v2069_v62 = vunpack.i.h.bf16 %v2067_v2  ;;  %v2068_v63 = vunpack.i.l.bf16 %v2067_v2 }
 0x192   : > { %v2064_v8 = vunpack.i.h.bf16 %v2062_v44  ;;  %v2063_v49 = vunpack.i.l.bf16 %v2062_v44 }
 0x194   : > { %v1199_v56 = vsel %vm1184_vm9, %v1182_v51, %v2063_v49  ;;  %v1200_v24 = vsel %vm1184_vm9, %v1183_v48, %v2064_v8 }
 0x195   : > { %v1216_v60 = vsel %vm1201_vm10, %v1199_v56, %v2068_v63  ;;  %v1217_v9 = vsel %vm1201_vm10, %v1200_v24, %v2069_v62 }
 0x196   : > { %v1233_v26 = vsel %vm1218_vm11, %v1216_v60, %v2073_v23  ;;  %v1234_v55 = vsel %vm1218_vm11, %v1217_v9, %v2074_v59 }
 0x199   : > { %v2077_v39 = vpop.permute.xlu0 %2076 }
 0x19a   : > { %v2079_v35 = vunpack.i.h.bf16 %v2077_v39  ;;  %v2078_v29 = vunpack.i.l.bf16 %v2077_v39 }
 0x19c   : > { %v1250_v57 = vsel %vm1235_vm12, %v1233_v26, %v2078_v29  ;;  %v1251_v50 = vsel %vm1235_vm12, %v1234_v55, %v2079_v35 }
 0x19d   : > { %v1259_v34 = vpack.c.bf16 %v1251_v50, %v1250_v57 }
 0x19f   : > { %1694 = vmatmul.msk.bf16.gmra.mxu3 %vm1284_vm13, %v1259_v34 }
 0x1bd   : > { %v1322_v1 = vpop.f32.mrf.mxu0 }
 0x1be   : > { %v1323_v61 = vadd.f32 %v3088_v6, %v1322_v1 }
 0x1c0   : > { %1362 = vst.msk [vmem:[%s2224_s29] sm:$0xff] %vm1133_vm5, %v1323_v61  ;;  %v1417_v20 = vmul.f32 %v1323_v61, %v1323_v61  ;;  %v1378_v13 = vsel %vm1133_vm5, %v1323_v61, 0.0 }
 0x1c2   : > { %v1433_v43 = vsel %vm1133_vm5, %v1417_v20, 0.0 }
 0x1c5   : > { %v1324_v19 = vpop.f32.mrf.mxu0 }
 0x1c6   : > { %v1325_v30 = vadd.f32 %v3088_v6, %v1324_v19 }
 0x1c8   : > { %1363 = vst.msk [vmem:[%s2224_s29 + $0x8] sm:$0xff] %vm1133_vm5, %v1325_v30  ;;  %v1379_v12 = vsel %vm1133_vm5, %v1325_v30, 0.0  ;;  %v1418_v47 = vmul.f32 %v1325_v30, %v1325_v30 }
 0x1c9   : > { %v1380_v40 = vadd.f32 %v1379_v12, %v1378_v13 }
 0x1ca   : > { %v1434_v46 = vsel %vm1133_vm5, %v1418_v47, 0.0 }
 0x1cb   : > { %v1435_v42 = vadd.f32 %v1434_v46, %v1433_v43 }
 0x1d4   : > { %v1332_v41 = vpop.f32.mrf.mxu1 }
 0x1d5   : > { %v1333_v10 = vadd.f32 %v3088_v6, %v1332_v41 }
 0x1d7   : > { %1366 = vst.msk [vmem:[%s2224_s29 + $0x20] sm:$0xff] %vm1133_vm5, %v1333_v10  ;;  %v1421_v5 = vmul.f32 %v1333_v10, %v1333_v10  ;;  %v1385_v21 = vsel %vm1133_vm5, %v1333_v10, 0.0 }
 0x1d9   : > { %v1440_v32 = vsel %vm1133_vm5, %v1421_v5, 0.0 }
 0x1da   : > { %v1342_v25 = vpop.f32.mrf.mxu2 }
 0x1db   : > { %v1343_v36 = vadd.f32 %v3088_v6, %v1342_v25 }
 0x1dc   : > { %v1334_v3 = vpop.f32.mrf.mxu1 }
 0x1dd   : > { %1370 = vst.msk [vmem:[%s2224_s29 + $0x40] sm:$0xff] %vm1133_vm5, %v1343_v36  ;;  %v1335_v54 = vadd.f32 %v3088_v6, %v1334_v3  ;;  %v1425_v35 = vmul.f32 %v1343_v36, %v1343_v36  ;;  %v1393_v50 = vsel %vm1133_vm5, %v1343_v36, 0.0 }
 0x1df   : > { %1367 = vst.msk [vmem:[%s2224_s29 + $0x28] sm:$0xff] %vm1133_vm5, %v1335_v54  ;;  %v1422_v48 = vmul.f32 %v1335_v54, %v1335_v54  ;;  %v1387_v63 = vsel %vm1133_vm5, %v1335_v54, 0.0  ;;  %v1448_v20 = vsel %vm1133_vm5, %v1425_v35, 0.0 }
 0x1e1   : > { %v1442_v59 = vsel %vm1133_vm5, %v1422_v48, 0.0 }
 0x1e2   : > { %v1344_v58 = vpop.f32.mrf.mxu2 }
 0x1e3   : > { %v1345_v45 = vadd.f32 %v3088_v6, %v1344_v58 }
 0x1e5   : > { %1371 = vst.msk [vmem:[%s2224_s29 + $0x48] sm:$0xff] %vm1133_vm5, %v1345_v45  ;;  %v1426_v12 = vmul.f32 %v1345_v45, %v1345_v45  ;;  %v1395_v47 = vsel %vm1133_vm5, %v1345_v45, 0.0 }
 0x1e7   : > { %v1450_v46 = vsel %vm1133_vm5, %v1426_v12, 0.0 }
 0x1eb   : > { %v1327_v16 = vpop.f32.mrf.mxu0 }
 0x1ec   : > { %v1328_v22 = vadd.f32 %v3088_v6, %v1327_v16 }
 0x1ee   : > { %1364 = vst.msk [vmem:[%s2224_s29 + $0x10] sm:$0xff] %vm1133_vm5, %v1328_v22  ;;  %v1419_v27 = vmul.f32 %v1328_v22, %v1328_v22  ;;  %v1381_v11 = vsel %vm1133_vm5, %v1328_v22, 0.0 }
 0x1ef   : > { %v1382_v52 = vadd.f32 %v1381_v11, %v1380_v40 }
 0x1f0   : > { %v1436_v4 = vsel %vm1133_vm5, %v1419_v27, 0.0 }
 0x1f1   : > { %v1437_v7 = vadd.f32 %v1436_v4, %v1435_v42 }
 0x1f3   : > { %v1329_v53 = vpop.f32.mrf.mxu0 }
 0x1f4   : > { %v1330_v31 = vadd.f32 %v3088_v6, %v1329_v53 }
 0x1f6   : > { %1365 = vst.msk [vmem:[%s2224_s29 + $0x18] sm:$0xff] %vm1133_vm5, %v1330_v31  ;;  %v1383_v14 = vsel %vm1133_vm5, %v1330_v31, 0.0  ;;  %v1420_v37 = vmul.f32 %v1330_v31, %v1330_v31 }
 0x1f7   : > { %v1384_v33 = vadd.f32 %v1383_v14, %v1382_v52 }
 0x1f8   : > { %v1438_v28 = vsel %vm1133_vm5, %v1420_v37, 0.0 }
 0x1f9   : > { %v1386_v18 = vadd.f32 %v1385_v21, %v1384_v33  ;;  %v1439_v15 = vadd.f32 %v1438_v28, %v1437_v7 }
 0x1fa   : > { %v1352_v17 = vpop.f32.mrf.mxu3 }
 0x1fb   : > { %v1441_v38 = vadd.f32 %v1440_v32, %v1439_v15  ;;  %v1353_v44 = vadd.f32 %v3088_v6, %v1352_v17  ;;  %v1388_v56 = vadd.f32 %v1387_v63, %v1386_v18 }
 0x1fd   : > { %1374 = vst.msk [vmem:[%s2224_s29 + $0x60] sm:$0xff] %vm1133_vm5, %v1353_v44  ;;  %v1443_v39 = vadd.f32 %v1442_v59, %v1441_v38  ;;  %v1429_v27 = vmul.f32 %v1353_v44, %v1353_v44  ;;  %v1401_v4 = vsel %vm1133_vm5, %v1353_v44, 0.0 }
 0x1ff   : > { %v1456_v5 = vsel %vm1133_vm5, %v1429_v27, 0.0 }
 0x202   : > { %v1354_v2 = vpop.f32.mrf.mxu3 }
 0x203   : > { %v1355_v8 = vadd.f32 %v3088_v6, %v1354_v2 }
 0x205   : > { %1375 = vst.msk [vmem:[%s2224_s29 + $0x68] sm:$0xff] %vm1133_vm5, %v1355_v8  ;;  %v1337_v49 = vpop.f32.mrf.mxu1  ;;  %v1430_v14 = vmul.f32 %v1355_v8, %v1355_v8  ;;  %v1403_v7 = vsel %vm1133_vm5, %v1355_v8, 0.0 }
 0x206   : > { %v1338_v51 = vadd.f32 %v3088_v6, %v1337_v49 }
 0x207   : > { %v1458_v28 = vsel %vm1133_vm5, %v1430_v14, 0.0 }
 0x208   : > { %1368 = vst.msk [vmem:[%s2224_s29 + $0x30] sm:$0xff] %vm1133_vm5, %v1338_v51  ;;  %v1423_v62 = vmul.f32 %v1338_v51, %v1338_v51  ;;  %v1389_v0 = vsel %vm1133_vm5, %v1338_v51, 0.0 }
 0x209   : > { %v1390_v9 = vadd.f32 %v1389_v0, %v1388_v56 }
 0x20a   : > { %v1444_v23 = vsel %vm1133_vm5, %v1423_v62, 0.0 }
 0x20b   : > { %v1445_v55 = vadd.f32 %v1444_v23, %v1443_v39 }
 0x20d   : > { %v1339_v24 = vpop.f32.mrf.mxu1 }
 0x20e   : > { %v1340_v60 = vadd.f32 %v3088_v6, %v1339_v24 }
 0x210   : > { %1369 = vst.msk [vmem:[%s2224_s29 + $0x38] sm:$0xff] %vm1133_vm5, %v1340_v60  ;;  %v1391_v29 = vsel %vm1133_vm5, %v1340_v60, 0.0  ;;  %v1424_v26 = vmul.f32 %v1340_v60, %v1340_v60 }
 0x211   : > { %v1392_v57 = vadd.f32 %v1391_v29, %v1390_v9 }
 0x212   : > { %v1446_v34 = vsel %vm1133_vm5, %v1424_v26, 0.0 }
 0x213   : > { %v1394_v1 = vadd.f32 %v1393_v50, %v1392_v57  ;;  %v1447_v61 = vadd.f32 %v1446_v34, %v1445_v55  ;;  %v1347_v19 = vpop.f32.mrf.mxu2 }
 0x214   : > { %v1348_v30 = vadd.f32 %v3088_v6, %v1347_v19 }
 0x215   : > { %v1449_v13 = vadd.f32 %v1448_v20, %v1447_v61  ;;  %v1396_v43 = vadd.f32 %v1395_v47, %v1394_v1 }
 0x216   : > { %1372 = vst.msk [vmem:[%s2224_s29 + $0x50] sm:$0xff] %vm1133_vm5, %v1348_v30  ;;  %v1427_v40 = vmul.f32 %v1348_v30, %v1348_v30  ;;  %v1397_v42 = vsel %vm1133_vm5, %v1348_v30, 0.0 }
 0x217   : > { %v1451_v10 = vadd.f32 %v1450_v46, %v1449_v13  ;;  %v1398_v3 = vadd.f32 %v1397_v42, %v1396_v43 }
 0x218   : > { %v1452_v36 = vsel %vm1133_vm5, %v1427_v40, 0.0 }
 0x219   : > { %v1453_v45 = vadd.f32 %v1452_v36, %v1451_v10 }
 0x21b   : > { %v1349_v41 = vpop.f32.mrf.mxu2 }
 0x21c   : > { %v1350_v25 = vadd.f32 %v3088_v6, %v1349_v41 }
 0x21e   : > { %1373 = vst.msk [vmem:[%s2224_s29 + $0x58] sm:$0xff] %vm1133_vm5, %v1350_v25  ;;  %v1399_v54 = vsel %vm1133_vm5, %v1350_v25, 0.0  ;;  %v1428_v58 = vmul.f32 %v1350_v25, %v1350_v25 }
 0x21f   : > { %v1400_v16 = vadd.f32 %v1399_v54, %v1398_v3 }
 0x220   : > { %v1454_v22 = vsel %vm1133_vm5, %v1428_v58, 0.0 }
 0x221   : > { %v1455_v11 = vadd.f32 %v1454_v22, %v1453_v45  ;;  %v1402_v52 = vadd.f32 %v1401_v4, %v1400_v16 }
 0x222   : > { %v1357_v53 = vpop.f32.mrf.mxu3 }
 0x223   : > { %v1358_v31 = vadd.f32 %v3088_v6, %v1357_v53  ;;  %v1457_v37 = vadd.f32 %v1456_v5, %v1455_v11  ;;  %v1404_v21 = vadd.f32 %v1403_v7, %v1402_v52 }
 0x225   : > { %1376 = vst.msk [vmem:[%s2224_s29 + $0x70] sm:$0xff] %vm1133_vm5, %v1358_v31  ;;  %v1431_v33 = vmul.f32 %v1358_v31, %v1358_v31  ;;  %v1405_v18 = vsel %vm1133_vm5, %v1358_v31, 0.0  ;;  %v1459_v15 = vadd.f32 %v1458_v28, %v1457_v37 }
 0x226   : > { %v1406_v44 = vadd.f32 %v1405_v18, %v1404_v21 }
 0x227   : > { %v1460_v38 = vsel %vm1133_vm5, %v1431_v33, 0.0 }
 0x228   : > { %v1461_v51 = vadd.f32 %v1460_v38, %v1459_v15 }
 0x22a   : > { %v1359_v32 = vpop.f32.mrf.mxu3 }
 0x22b   : > { %v1360_v17 = vadd.f32 %v3088_v6, %v1359_v32 }
 0x22d   : > { %1377 = vst.msk [vmem:[%s2224_s29 + $0x78] sm:$0xff] %vm1133_vm5, %v1360_v17  ;;  %v1407_v2 = vsel %vm1133_vm5, %v1360_v17, 0.0  ;;  %v1432_v49 = vmul.f32 %v1360_v17, %v1360_v17 }
 0x22e   : > { %v1408_v8 = vadd.f32 %v1407_v2, %v1406_v44 }
 0x22f   : > { %v1462_v48 = vsel %vm1133_vm5, %v1432_v49, 0.0 }
 0x230   : > { %v1409_v62 = vrot.slane %v1408_v8, 4  ;;  %v1463_v63 = vadd.f32 %v1462_v48, %v1461_v51 }
 0x232   : > { %v1410_v0 = vadd.f32 %v1409_v62, %v1408_v8  ;;  %v1464_v56 = vrot.slane %v1463_v63, 4 }
 0x234   : > { %v1411_v24 = vrot.slane %v1410_v0, 2  ;;  %v1465_v59 = vadd.f32 %v1464_v56, %v1463_v63 }
 0x236   : > { %v1412_v23 = vadd.f32 %v1411_v24, %v1410_v0  ;;  %v1466_v6 = vrot.slane %v1465_v59, 2 }
 0x238   : > { %v1413_v60 = vrot.slane %v1412_v23, 1  ;;  %v1467_v9 = vadd.f32 %v1466_v6, %v1465_v59 }
 0x23a   : > { %v1414_v39 = vadd.f32 %v1413_v60, %v1412_v23  ;;  %v1468_v35 = vrot.slane %v1467_v9, 1 }
 0x23c   : > { %1416 = vst.msk [vmem:[%s361_s14] sm:$0x1] %vm1415_vm14, %v1414_v39  ;;  %v1469_v29 = vadd.f32 %v1468_v35, %v1467_v9 }
 0x23e   : > { %1470 = vst.msk [vmem:[%s368_s17] sm:$0x1] %vm1415_vm14, %v1469_v29 }
 0x23f PF: > { %s18_s28 = sadd.s32 1, %s2119_s28   ;;  %s3206_s10 = sld [smem:[#allocation3_spill]] }
 0x240   : > { %p15_p9 = scmp.ge.s32.totalorder %s18_s28, 6   ;;  %s3207_s11 = sld [smem:[#allocation4_spill]] }
 0x241   : > { %s3208_s24 = smov %s2111_s26  ;;  %s3209_s25 = smov %s2115_s27 }
 0x242   :  { %17 = sbr.rel (!%p15_p9) target bundleno = 3 (0x3), region = 106 }
 0x245   : > { %s3210_s26 = smov %s3206_s10 }
 0x246   : > { %s3211_s27 = smov %s3207_s11 }

// kernel: conv_block_forward.6
= control target key start
LH: loop header
LB: loop body
LE: loop exit
PB: predicated region body
PF: predicated region fallthrough
CT: control target
= control target key end

     0   :  { %s2234_s24 = smov 0   ;;  %s2236_s25 = smov 0   ;;  %s3261_s0 = inlined_call_operand.vmem [shape: f32[2,16,16,8], index: 0, kind: input, shape index: {}]   ;;  %s3262_s1 = inlined_call_operand.vmem [shape: f32[2,1,8], index: 1, kind: input, shape index: {}]   ;;  %s3263_s2 = inlined_call_operand.vmem [shape: f32[2,1,8], index: 2, kind: input, shape index: {}]   ;;  %s3264_s3 = inlined_call_operand.vmem [shape: bf16[72,8], index: 3, kind: input, shape index: {}]   ;;  %s3265_s4 = inlined_call_operand.vmem [shape: f32[1,8], index: 4, kind: input, shape index: {}]   ;;  %s3266_s5 = inlined_call_operand.vmem [shape: f32[2,16,16,8], index: 5, kind: output, shape index: {0}]   ;;  %s3267_s6 = inlined_call_operand.vmem [shape: f32[2,2,1,8], index: 6, kind: output, shape index: {1}]   ;;  %s3268_s7 = inlined_call_operand.vmem [shape: f32[2,2,1,8], index: 7, kind: output, shape index: {2}]  }
   0x1   :  { %s2238_s26 = smov 0   ;;  %s2240_s27 = smov 0  }
   0x2   :  { %s2242_s28 = smov 0  }
   0x3 LB: > { %s27_s29 = sadd.s32 1, %s2175_s26  ;;  %s30_s30 = sadd.s32 1, %s2179_s27  ;;  %s2183_s28 = sphi %s2242_s28, %s18_s28   ;;  %s2179_s27 = sphi %s2240_s27, %s3277_s27   ;;  %s2175_s26 = sphi %s2238_s26, %s3276_s26   ;;  %s2171_s25 = sphi %s2236_s25, %s3275_s25   ;;  %s2167_s24 = sphi %s2234_s24, %s3274_s24  }
   0x4   : > { %p28_p0 = scmp.ge.s32.totalorder %s27_s29, 2  ;;  %p1715_p1 = scmp.ge.s32.totalorder %s2183_s28, 1 }
   0x5   : > { %p276_p2 = scmp.lt.s32.totalorder %s2183_s28, 5 }
   0x6   : > { %s3279_s29 = smov (%p28_p0, %s27_s29), 0  ;;  %s3281_s30 = smov (!%p28_p0, %s30_s30), %s2179_s27 }
   0x7   : > { %3269 = sst [smem:[#allocation3_spill]] %s3279_s29  ;;  %p277_p3 = pnand %p1715_p1, %p276_p2 }
   0x8   : > { %p32_p4 = scmp.ge.s32.totalorder %s3281_s30, 2  ;;  %p333_p5 = scmp.lt.s32.totalorder (!%p277_p3), %s2171_s25, 1 }
   0x9   : > { %280 = sbr.rel (%p277_p3) target bundleno = 575 (0x23f), region = 40  ;;  %s1718_s8 = sshll.u32 (!%p277_p3), %s2167_s24, 3 }
   0xa   : > { %s3283_s30 = smov (%p32_p4, %s3281_s30), 0  ;;  %p347_p6 = scmp.lt.s32.totalorder (!%p277_p3), %s1718_s8, 15 }
   0xb   : > { %3270 = sst [smem:[#allocation4_spill]] %s3283_s30  ;;  %p357_p7 = scmp.lt.s32.totalorder (!%p277_p3), %s2167_s24, 1 }
   0xc   : > { %p1724_p8 = scmp.ne.s32.totalorder (!%p277_p3), %s2167_s24, 0 }
   0xe   : > { %s3285_s25 = smov (!%p333_p5, %s2171_s25), 1  ;;  %s3287_s8 = smov (!%p347_p6, %s1718_s8), 15 }
   0xf   : > { %s1753_s9 = sshll.u32 %s3285_s25, 8  ;;  %s343_s18 = scalar_lea.vmem %s3263_s2, %s3285_s25 }
  0x10   : > { %s2278_s15 = scalar_lea.vmem %s3261_s0, %s1753_s9  ;;  %s1719_s19 = sshll.u32 %s3287_s8, 1 }
  0x11   : > { %s1720_s20 = sshll.u32 %s3285_s25, 5  ;;  %s1722_s10 = sshll.u32 %s3285_s25, 1 }
  0x12   : > { %s351_s21 = sadd.s32 %s1720_s20, %s1719_s19  ;;  %s3271_s20 = scalar_lea.vmem (!%p1724_p8), %s3262_s1, %s3285_s25 }
  0x13   : > { %s1721_s22 = sshll.u32 %s351_s21, 3 }
  0x14   : > { %s2288_s29 = scalar_lea.vmem %s3266_s5, %s1721_s22  ;;  %373 = sbr.rel (%p1724_p8) target bundleno = 112 (0x70), region = 44 }
  0x15   : > { %s358_s11 = scalar_select %p357_p7, %s2167_s24, 1 }
  0x17   : > { %s2292_s12 = sadd.s32 %s1722_s10, %s358_s11 }
  0x18   : > { %s361_s14 = scalar_lea.vmem %s3267_s6, %s2292_s12  ;;  %s368_s17 = scalar_lea.vmem %s3268_s7, %s2292_s12 }
  0x19   : > { %vm374_vm0 = vcmask 64512   ;;  %v2185_v0 = vmov 0.0   ;;  %vm377_vm1 = vcmask 58368   ;;  %v2386_v1 = vld [vmem:[%s3271_s20] ss:$0 sm:$0xff]  ;;  %v431_v3 = vld [vmem:[%s2278_s15 + $0x8] sm:$0xff] }
  0x1a   : > { %379 = vst.msk [vmem:[#allocation2 + $0x18] sm:$0xff] %vm374_vm0, %v2185_v0  ;;  %v430_v2 = vld [vmem:[%s2278_s15] sm:$0xff]  ;;  %v432_v4 = vld [vmem:[%s2278_s15 + $0x10] sm:$0xff]  ;;  %v433_v7 = vld [vmem:[%s2278_s15 + $0x18] sm:$0xff]  ;;  %v467_v8 = vmul.f32 %v2386_v1, %v431_v3 }
  0x1b   : > { %375 = vst.msk [vmem:[#allocation2] sm:$0xff] %vm374_vm0, %v2185_v0  ;;  %v466_v5 = vmul.f32 %v2386_v1, %v430_v2  ;;  %v2405_v6 = vld [vmem:[%s343_s18] ss:$0 sm:$0xff]  ;;  %v468_v10 = vmul.f32 %v2386_v1, %v432_v4  ;;  %v435_v11 = vld [vmem:[%s2278_s15 + $0x28] sm:$0xff]  ;;  %v469_v12 = vmul.f32 %v2386_v1, %v433_v7  ;;  %v436_v13 = vld [vmem:[%s2278_s15 + $0x30] sm:$0xff] }
  0x1c   : > { %376 = vst.msk [vmem:[#allocation2 + $0x8] sm:$0xff] %vm374_vm0, %v2185_v0  ;;  %v434_v9 = vld [vmem:[%s2278_s15 + $0x20] sm:$0xff]  ;;  %v437_v16 = vld [vmem:[%s2278_s15 + $0x38] sm:$0xff]  ;;  %v503_v17 = vadd.f32 %v2405_v6, %v467_v8  ;;  %v471_v18 = vmul.f32 %v2386_v1, %v435_v11  ;;  %v472_v21 = vmul.f32 %v2386_v1, %v436_v13  ;;  %v439_v22 = vld [vmem:[%s2278_s15 + $0x48] sm:$0xff] }
  0x1d   : > { %380 = vst.msk [vmem:[#allocation2 + $0x20] sm:$0xff] %vm374_vm0, %v2185_v0  ;;  %v502_v14 = vadd.f32 %v2405_v6, %v466_v5  ;;  %v470_v15 = vmul.f32 %v2386_v1, %v434_v9  ;;  %v438_v19 = vld [vmem:[%s2278_s15 + $0x40] sm:$0xff]  ;;  %v504_v20 = vadd.f32 %v2405_v6, %v468_v10  ;;  %v505_v23 = vadd.f32 %v2405_v6, %v469_v12  ;;  %v440_v25 = vld [vmem:[%s2278_s15 + $0x50] sm:$0xff]  ;;  %v441_v29 = vld [vmem:[%s2278_s15 + $0x58] sm:$0xff] }
  0x1e   : > { %382 = vst.msk [vmem:[#allocation2 + $0x30] sm:$0xff] %vm374_vm0, %v2185_v0  ;;  %v473_v24 = vmul.f32 %v2386_v1, %v437_v16  ;;  %v474_v28 = vmul.f32 %v2386_v1, %v438_v19  ;;  %v535_v30 = vmax.f32 %v503_v17, 0.0  ;;  %v507_v31 = vadd.f32 %v2405_v6, %v471_v18  ;;  %v442_v33 = vld [vmem:[%s2278_s15 + $0x60] sm:$0xff]  ;;  %v443_v37 = vld [vmem:[%s2278_s15 + $0x68] sm:$0xff]  ;;  %v444_v41 = vld [vmem:[%s2278_s15 + $0x70] sm:$0xff] }
  0x1f   : > { %383 = vst.msk [vmem:[#allocation2 + $0x38] sm:$0xff] %vm374_vm0, %v2185_v0  ;;  %v534_v26 = vmax.f32 %v502_v14, 0.0  ;;  %v506_v27 = vadd.f32 %v2405_v6, %v470_v15  ;;  %v475_v32 = vmul.f32 %v2386_v1, %v439_v22  ;;  %v536_v34 = vmax.f32 %v504_v20, 0.0  ;;  %v445_v45 = vld [vmem:[%s2278_s15 + $0x78] sm:$0xff]  ;;  %v446_v49 = vld [vmem:[%s2278_s15 + $0x80] sm:$0xff]  ;;  %v447_v53 = vld [vmem:[%s2278_s15 + $0x88] sm:$0xff] }
  0x20   : > { %385 = vst.msk [vmem:[#allocation2 + $0x48] sm:$0xff] %vm374_vm0, %v2185_v0  ;;  %v508_v35 = vadd.f32 %v2405_v6, %v472_v21  ;;  %v476_v36 = vmul.f32 %v2386_v1, %v440_v25  ;;  %v537_v38 = vmax.f32 %v505_v23, 0.0  ;;  %v509_v39 = vadd.f32 %v2405_v6, %v473_v24  ;;  %v448_v57 = vld [vmem:[%s2278_s15 + $0x90] sm:$0xff]  ;;  %v449_v61 = vld [vmem:[%s2278_s15 + $0x98] sm:$0xff]  ;;  %v450_v2 = vld [vmem:[%s2278_s15 + $0xa0] sm:$0xff] }
  0x21   : > { %386 = vst.msk [vmem:[#allocation2 + $0x50] sm:$0xff] %vm374_vm0, %v2185_v0  ;;  %v477_v40 = vmul.f32 %v2386_v1, %v441_v29  ;;  %v538_v42 = vmax.f32 %v506_v27, 0.0  ;;  %v510_v43 = vadd.f32 %v2405_v6, %v474_v28  ;;  %v478_v44 = vmul.f32 %v2386_v1, %v442_v33  ;;  %v451_v7 = vld [vmem:[%s2278_s15 + $0xa8] sm:$0xff]  ;;  %v452_v11 = vld [vmem:[%s2278_s15 + $0xb0] sm:$0xff]  ;;  %v453_v15 = vld [vmem:[%s2278_s15 + $0xb8] sm:$0xff] }
  0x22   : > { %388 = vst.msk [vmem:[#allocation2 + $0x60] sm:$0xff] %vm374_vm0, %v2185_v0  ;;  %v539_v46 = vmax.f32 %v507_v31, 0.0  ;;  %v511_v47 = vadd.f32 %v2405_v6, %v475_v32  ;;  %v479_v48 = vmul.f32 %v2386_v1, %v443_v37  ;;  %v540_v50 = vmax.f32 %v508_v35, 0.0  ;;  %v454_v19 = vld [vmem:[%s2278_s15 + $0xc0] sm:$0xff]  ;;  %v455_v23 = vld [vmem:[%s2278_s15 + $0xc8] sm:$0xff]  ;;  %v456_v27 = vld [vmem:[%s2278_s15 + $0xd0] sm:$0xff] }
  0x23   : > { %389 = vst.msk [vmem:[#allocation2 + $0x68] sm:$0xff] %vm374_vm0, %v2185_v0  ;;  %v512_v51 = vadd.f32 %v2405_v6, %v476_v36  ;;  %v480_v52 = vmul.f32 %v2386_v1, %v444_v41  ;;  %v541_v54 = vmax.f32 %v509_v39, 0.0  ;;  %v513_v55 = vadd.f32 %v2405_v6, %v477_v40  ;;  %v457_v31 = vld [vmem:[%s2278_s15 + $0xd8] sm:$0xff]  ;;  %v458_v35 = vld [vmem:[%s2278_s15 + $0xe0] sm:$0xff]  ;;  %v459_v39 = vld [vmem:[%s2278_s15 + $0xe8] sm:$0xff] }
  0x24   : > { %391 = vst.msk [vmem:[#allocation2 + $0x78] sm:$0xff] %vm374_vm0, %v2185_v0  ;;  %v481_v56 = vmul.f32 %v2386_v1, %v445_v45  ;;  %v542_v58 = vmax.f32 %v510_v43, 0.0  ;;  %v514_v59 = vadd.f32 %v2405_v6, %v478_v44  ;;  %v482_v60 = vmul.f32 %v2386_v1, %v446_v49  ;;  %v460_v43 = vld [vmem:[%s2278_s15 + $0xf0] sm:$0xff] }
  0x25   : > { %392 = vst.msk [vmem:[#allocation2 + $0x80] sm:$0xff] %vm374_vm0, %v2185_v0  ;;  %v543_v62 = vmax.f32 %v511_v47, 0.0  ;;  %v515_v63 = vadd.f32 %v2405_v6, %v479_v48  ;;  %v544_v3 = vmax.f32 %v512_v51, 0.0  ;;  %v516_v4 = vadd.f32 %v2405_v6, %v480_v52  ;;  %v461_v47 = vld [vmem:[%s2278_s15 + $0xf8] sm:$0xff] }
  0x26   : > { %394 = vst.msk [vmem:[#allocation2 + $0x90] sm:$0xff] %vm374_vm0, %v2185_v0  ;;  %v484_v5 = vmul.f32 %v2386_v1, %v448_v57  ;;  %v545_v8 = vmax.f32 %v513_v55, 0.0  ;;  %v517_v9 = vadd.f32 %v2405_v6, %v481_v56  ;;  %v485_v10 = vmul.f32 %v2386_v1, %v449_v61 }
  0x27   : > { %395 = vst.msk [vmem:[#allocation2 + $0x98] sm:$0xff] %vm374_vm0, %v2185_v0  ;;  %v546_v12 = vmax.f32 %v514_v59, 0.0  ;;  %v518_v13 = vadd.f32 %v2405_v6, %v482_v60  ;;  %v486_v14 = vmul.f32 %v2386_v1, %v450_v2  ;;  %v547_v16 = vmax.f32 %v515_v63, 0.0 }
  0x28   : > { %397 = vst.msk [vmem:[#allocation2 + $0xa8] sm:$0xff] %vm374_vm0, %v2185_v0  ;;  %v487_v18 = vmul.f32 %v2386_v1, %v451_v7  ;;  %v548_v20 = vmax.f32 %v516_v4, 0.0  ;;  %v520_v21 = vadd.f32 %v2405_v6, %v484_v5  ;;  %v488_v22 = vmul.f32 %v2386_v1, %v452_v11 }
  0x29   : > { %398 = vst.msk [vmem:[#allocation2 + $0xb0] sm:$0xff] %vm374_vm0, %v2185_v0  ;;  %v549_v24 = vmax.f32 %v517_v9, 0.0  ;;  %v521_v25 = vadd.f32 %v2405_v6, %v485_v10  ;;  %v550_v28 = vmax.f32 %v518_v13, 0.0  ;;  %v522_v29 = vadd.f32 %v2405_v6, %v486_v14 }
  0x2a   : > { %400 = vst.msk [vmem:[#allocation2 + $0xc0] sm:$0xff] %vm374_vm0, %v2185_v0  ;;  %v523_v33 = vadd.f32 %v2405_v6, %v487_v18  ;;  %v552_v36 = vmax.f32 %v520_v21, 0.0  ;;  %v524_v37 = vadd.f32 %v2405_v6, %v488_v22  ;;  %v497_v56 = vmul.f32 %v2386_v1, %v461_v47 }
  0x2b   : > { %401 = vst.msk [vmem:[#allocation2 + $0xc8] sm:$0xff] %vm374_vm0, %v2185_v0  ;;  %v553_v40 = vmax.f32 %v521_v25, 0.0  ;;  %v554_v44 = vmax.f32 %v522_v29, 0.0 }
  0x2c   : > { %403 = vst.msk [vmem:[#allocation2 + $0xd8] sm:$0xff] %vm374_vm0, %v2185_v0  ;;  %v555_v48 = vmax.f32 %v523_v33, 0.0  ;;  %v556_v51 = vmax.f32 %v524_v37, 0.0 }
  0x2d   : > { %404 = vst.msk [vmem:[#allocation2 + $0xe0] sm:$0xff] %vm374_vm0, %v2185_v0 }
  0x2e   : > { %406 = vst.msk [vmem:[#allocation2 + $0xf0] sm:$0xff] %vm374_vm0, %v2185_v0 }
  0x2f   : > { %407 = vst.msk [vmem:[#allocation2 + $0xf8] sm:$0xff] %vm374_vm0, %v2185_v0 }
  0x30   : > { %409 = vst.msk [vmem:[#allocation2 + $0x108] sm:$0xff] %vm374_vm0, %v2185_v0 }
  0x31   : > { %410 = vst.msk [vmem:[#allocation2 + $0x110] sm:$0xff] %vm374_vm0, %v2185_v0 }
  0x32   : > { %412 = vst.msk [vmem:[#allocation2 + $0x120] sm:$0xff] %vm374_vm0, %v2185_v0 }
  0x33   : > { %413 = vst.msk [vmem:[#allocation2 + $0x128] sm:$0xff] %vm374_vm0, %v2185_v0 }
  0x34   : > { %415 = vst.msk [vmem:[#allocation2 + $0x138] sm:$0xff] %vm374_vm0, %v2185_v0 }
  0x35   : > { %416 = vst.msk [vmem:[#allocation2 + $0x140] sm:$0xff] %vm374_vm0, %v2185_v0 }
  0x36   : > { %418 = vst.msk [vmem:[#allocation2 + $0x150] sm:$0xff] %vm374_vm0, %v2185_v0 }
  0x37   : > { %419 = vst.msk [vmem:[#allocation2 + $0x158] sm:$0xff] %vm374_vm0, %v2185_v0 }
  0x38   : > { %421 = vst.msk [vmem:[#allocation2 + $0x168] sm:$0xff] %vm374_vm0, %v2185_v0 }
  0x39   : > { %422 = vst.msk [vmem:[#allocation2 + $0x170] sm:$0xff] %vm374_vm0, %v2185_v0 }
  0x3a   : > { %424 = vst.msk [vmem:[#allocation2 + $0x180] sm:$0xff] %vm374_vm0, %v2185_v0 }
  0x3b   : > { %425 = vst.msk [vmem:[#allocation2 + $0x188] sm:$0xff] %vm374_vm0, %v2185_v0 }
  0x3c   : > { %427 = vst.msk [vmem:[#allocation2 + $0x198] sm:$0xff] %vm374_vm0, %v2185_v0 }
  0x3d   : > { %428 = vst.msk [vmem:[#allocation2 + $0x1a0] sm:$0xff] %vm374_vm0, %v2185_v0 }
  0x3e   : > { %381 = vst.msk [vmem:[#allocation2 + $0x28] sm:$0x3] %vm377_vm1, %v2185_v0 }
  0x3f   : > { %378 = vst.msk [vmem:[#allocation2 + $0x10] sm:$0x3] %vm377_vm1, %v2185_v0 }
  0x40   : > { %384 = vst.msk [vmem:[#allocation2 + $0x40] sm:$0x3] %vm377_vm1, %v2185_v0 }
  0x41   : > { %387 = vst.msk [vmem:[#allocation2 + $0x58] sm:$0x3] %vm377_vm1, %v2185_v0 }
  0x42   : > { %390 = vst.msk [vmem:[#allocation2 + $0x70] sm:$0x3] %vm377_vm1, %v2185_v0 }
  0x43   : > { %393 = vst.msk [vmem:[#allocation2 + $0x88] sm:$0x3] %vm377_vm1, %v2185_v0 }
  0x44   : > { %396 = vst.msk [vmem:[#allocation2 + $0xa0] sm:$0x3] %vm377_vm1, %v2185_v0 }
  0x45   : > { %399 = vst.msk [vmem:[#allocation2 + $0xb8] sm:$0x3] %vm377_vm1, %v2185_v0 }
  0x46   : > { %402 = vst.msk [vmem:[#allocation2 + $0xd0] sm:$0x3] %vm377_vm1, %v2185_v0 }
  0x47   : > { %405 = vst.msk [vmem:[#allocation2 + $0xe8] sm:$0x3] %vm377_vm1, %v2185_v0 }
  0x48   : > { %408 = vst.msk [vmem:[#allocation2 + $0x100] sm:$0x3] %vm377_vm1, %v2185_v0 }
  0x49   : > { %411 = vst.msk [vmem:[#allocation2 + $0x118] sm:$0x3] %vm377_vm1, %v2185_v0 }
  0x4a   : > { %414 = vst.msk [vmem:[#allocation2 + $0x130] sm:$0x3] %vm377_vm1, %v2185_v0 }
  0x4b   : > { %417 = vst.msk [vmem:[#allocation2 + $0x148] sm:$0x3] %vm377_vm1, %v2185_v0 }
  0x4c   : > { %420 = vst.msk [vmem:[#allocation2 + $0x160] sm:$0x3] %vm377_vm1, %v2185_v0 }
  0x4d   : > { %423 = vst.msk [vmem:[#allocation2 + $0x178] sm:$0x3] %vm377_vm1, %v2185_v0 }
  0x4e   : > { %426 = vst.msk [vmem:[#allocation2 + $0x190] sm:$0x3] %vm377_vm1, %v2185_v0 }
  0x4f   : > { %429 = vst.msk [vmem:[#allocation2 + $0x1a8] sm:$0x3] %vm377_vm1, %v2185_v0  ;;  %v483_v0 = vmul.f32 %v2386_v1, %v447_v53  ;;  %v496_v53 = vmul.f32 %v2386_v1, %v460_v43 }
  0x50   : > { %567 = vst.msk [vmem:[#allocation2 + $0x19] sm:$0xff] %vm374_vm0, %v534_v26  ;;  %v489_v26 = vmul.f32 %v2386_v1, %v453_v15 }
  0x51   : > { %568 = vst.msk [vmem:[#allocation2 + $0x21] sm:$0xff] %vm374_vm0, %v535_v30  ;;  %v519_v17 = vadd.f32 %v2405_v6, %v483_v0  ;;  %v490_v30 = vmul.f32 %v2386_v1, %v454_v19 }
  0x52   : > { %569 = vst.msk [vmem:[#allocation2 + $0x31] sm:$0xff] %vm374_vm0, %v536_v34  ;;  %v491_v34 = vmul.f32 %v2386_v1, %v455_v23  ;;  %v525_v41 = vadd.f32 %v2405_v6, %v489_v26 }
  0x53   : > { %570 = vst.msk [vmem:[#allocation2 + $0x39] sm:$0xff] %vm374_vm0, %v537_v38  ;;  %v551_v32 = vmax.f32 %v519_v17, 0.0  ;;  %v492_v38 = vmul.f32 %v2386_v1, %v456_v27  ;;  %v526_v45 = vadd.f32 %v2405_v6, %v490_v30 }
  0x54   : > { %571 = vst.msk [vmem:[#allocation2 + $0x49] sm:$0xff] %vm374_vm0, %v538_v42  ;;  %v493_v42 = vmul.f32 %v2386_v1, %v457_v31  ;;  %v527_v49 = vadd.f32 %v2405_v6, %v491_v34 }
  0x55   : > { %572 = vst.msk [vmem:[#allocation2 + $0x51] sm:$0xff] %vm374_vm0, %v539_v46  ;;  %v494_v46 = vmul.f32 %v2386_v1, %v458_v35  ;;  %v528_v52 = vadd.f32 %v2405_v6, %v492_v38  ;;  %v558_v57 = vmax.f32 %v526_v45, 0.0 }
  0x56   : > { %573 = vst.msk [vmem:[#allocation2 + $0x61] sm:$0xff] %vm374_vm0, %v540_v50  ;;  %v495_v50 = vmul.f32 %v2386_v1, %v459_v39  ;;  %v529_v55 = vadd.f32 %v2405_v6, %v493_v42  ;;  %v559_v59 = vmax.f32 %v527_v49, 0.0  ;;  %v533_v1 = vadd.f32 %v2405_v6, %v497_v56 }
  0x57   : > { %574 = vst.msk [vmem:[#allocation2 + $0x69] sm:$0xff] %vm374_vm0, %v541_v54  ;;  %v557_v54 = vmax.f32 %v525_v41, 0.0  ;;  %v560_v61 = vmax.f32 %v528_v52, 0.0 }
  0x58   : > { %575 = vst.msk [vmem:[#allocation2 + $0x79] sm:$0xff] %vm374_vm0, %v542_v58  ;;  %v530_v58 = vadd.f32 %v2405_v6, %v494_v46  ;;  %v531_v60 = vadd.f32 %v2405_v6, %v495_v50  ;;  %v561_v63 = vmax.f32 %v529_v55, 0.0  ;;  %v565_v4 = vmax.f32 %v533_v1, 0.0 }
  0x59   : > { %576 = vst.msk [vmem:[#allocation2 + $0x81] sm:$0xff] %vm374_vm0, %v543_v62  ;;  %v532_v62 = vadd.f32 %v2405_v6, %v496_v53 }
  0x5a   : > { %577 = vst.msk [vmem:[#allocation2 + $0x91] sm:$0xff] %vm374_vm0, %v544_v3  ;;  %v562_v0 = vmax.f32 %v530_v58, 0.0  ;;  %v563_v2 = vmax.f32 %v531_v60, 0.0 }
  0x5b   : > { %578 = vst.msk [vmem:[#allocation2 + $0x99] sm:$0xff] %vm374_vm0, %v545_v8  ;;  %v564_v3 = vmax.f32 %v532_v62, 0.0 }
  0x5c   : > { %579 = vst.msk [vmem:[#allocation2 + $0xa9] sm:$0xff] %vm374_vm0, %v546_v12 }
  0x5d   : > { %580 = vst.msk [vmem:[#allocation2 + $0xb1] sm:$0xff] %vm374_vm0, %v547_v16 }
  0x5e   : > { %581 = vst.msk [vmem:[#allocation2 + $0xc1] sm:$0xff] %vm374_vm0, %v548_v20 }
  0x5f   : > { %582 = vst.msk [vmem:[#allocation2 + $0xc9] sm:$0xff] %vm374_vm0, %v549_v24 }
  0x60   : > { %583 = vst.msk [vmem:[#allocation2 + $0xd9] sm:$0xff] %vm374_vm0, %v550_v28 }
  0x61   : > { %584 = vst.msk [vmem:[#allocation2 + $0xe1] sm:$0xff] %vm374_vm0, %v551_v32 }
  0x62   : > { %585 = vst.msk [vmem:[#allocation2 + $0xf1] sm:$0xff] %vm374_vm0, %v552_v36 }
  0x63   : > { %586 = vst.msk [vmem:[#allocation2 + $0xf9] sm:$0xff] %vm374_vm0, %v553_v40 }
  0x64   : > { %587 = vst.msk [vmem:[#allocation2 + $0x109] sm:$0xff] %vm374_vm0, %v554_v44 }
  0x65   : > { %588 = vst.msk [vmem:[#allocation2 + $0x111] sm:$0xff] %vm374_vm0, %v555_v48 }
  0x66   : > { %589 = vst.msk [vmem:[#allocation2 + $0x121] sm:$0xff] %vm374_vm0, %v556_v51 }
  0x67   : > { %590 = vst.msk [vmem:[#allocation2 + $0x129] sm:$0xff] %vm374_vm0, %v557_v54 }
  0x68   : > { %591 = vst.msk [vmem:[#allocation2 + $0x139] sm:$0xff] %vm374_vm0, %v558_v57 }
  0x69   : > { %592 = vst.msk [vmem:[#allocation2 + $0x141] sm:$0xff] %vm374_vm0, %v559_v59 }
  0x6a   : > { %593 = vst.msk [vmem:[#allocation2 + $0x151] sm:$0xff] %vm374_vm0, %v560_v61 }
  0x6b   : > { %594 = vst.msk [vmem:[#allocation2 + $0x159] sm:$0xff] %vm374_vm0, %v561_v63 }
  0x6c   : > { %595 = vst.msk [vmem:[#allocation2 + $0x169] sm:$0xff] %vm374_vm0, %v562_v0 }
  0x6d   : > { %596 = vst.msk [vmem:[#allocation2 + $0x171] sm:$0xff] %vm374_vm0, %v563_v2 }
  0x6e   : > { %597 = vst.msk [vmem:[#allocation2 + $0x181] sm:$0xff] %vm374_vm0, %v564_v3 }
  0x6f   : > { %598 = vst.msk [vmem:[#allocation2 + $0x189] sm:$0xff] %vm374_vm0, %v565_v4 }
  0x70 PF: > { %s1726_s25 = smul.u32 192, %s2167_s24  ;;  %vm656_vm2 = vcmask 1046528   ;;  %s2186_s24 = smov 8   ;;  %vm697_vm3 = vcmask 1045504   ;;  %vm1148_vm4 = vcmask 64512   ;;  %vm1165_vm5 = vcmask 130048  }
  0x71   : > { %s2187_s18 = smov 16   ;;  %s2188_s23 = smov 24   ;;  %vm1182_vm6 = vcmask 195584   ;;  %vm1357_vm7 = vcmask 1043456   ;;  %vm1199_vm8 = vcmask 261120   ;;  %vm1216_vm9 = vcmask 326656  }
  0x72   : > { %s2554_s15 = scalar_lea.vmem [#allocation2], %s1726_s25  ;;  %s2189_s10 = smov 48   ;;  %vm1233_vm10 = vcmask 392192   ;;  %vm1250_vm11 = vcmask 457728   ;;  %vm1267_vm12 = vcmask 523264   ;;  %vm1332_vm13 = vcmask 588800  }
  0x73   : > { %s2190_s11 = smov 40   ;;  %s2191_s9 = smov 32   ;;  %vm1463_vm14 = vcmask 57344  }
  0x74   : > { %s2192_s13 = smov 64   ;;  %s2193_s16 = smov 56  }
  0x76   : > { %v2557_v6 = vld [vmem:[%s2554_s15 + $0x60] sm:$0xff]  ;;  %v2560_v5 = vld [vmem:[%s2554_s15 + $0x68] sm:$0xff]  ;;  %v2563_v7 = vld [vmem:[%s2554_s15 + $0x70] sm:$0x3] }
  0x77   : > { %v677_v8 = vrot.slane %v2557_v6, 1  ;;  %v678_v9 = vrot.slane %v2560_v5, 1  ;;  %v680_v10 = vrot.slane %v2563_v7, 1  ;;  %v2569_v11 = vld [vmem:[%s2554_s15 + $0x30] sm:$0xff]  ;;  %v2572_v12 = vld [vmem:[%s2554_s15 + $0x38] sm:$0xff]  ;;  %v2580_v16 = vld [vmem:[%s2554_s15] sm:$0xff] }
  0x78   : > { %v2575_v13 = vld [vmem:[%s2554_s15 + $0x40] sm:$0x3]  ;;  %v667_v14 = vrot.slane %v2569_v11, 1  ;;  %v668_v15 = vrot.slane %v2572_v12, 1  ;;  %v2583_v17 = vld [vmem:[%s2554_s15 + $0x8] sm:$0xff]  ;;  %v2590_v22 = vld [vmem:[%s2554_s15 + $0x78] sm:$0xff] }
  0x79   : > { %v679_v18 = vsel %vm656_vm2, %v677_v8, %v678_v9  ;;  %v681_v19 = vsel %vm656_vm2, %v678_v9, %v680_v10  ;;  %v670_v20 = vrot.slane %v2575_v13, 1  ;;  %v604_v21 = vld [vmem:[%s2554_s15 + $0x10] sm:$0x3]  ;;  %v2593_v23 = vld [vmem:[%s2554_s15 + $0x80] sm:$0xff]  ;;  %v657_v26 = vrot.slane %v2580_v16, 1  ;;  %v2604_v29 = vld [vmem:[%s2554_s15 + $0x48] sm:$0xff] }
  0x7a   : > { %v2595_v24 = vpack.i.bf16 %v681_v19, %v679_v18  ;;  %v669_v25 = vsel %vm656_vm2, %v667_v14, %v668_v15  ;;  %v658_v27 = vrot.slane %v2583_v17, 1  ;;  %v2601_v28 = vld [vmem:[%s2554_s15 + $0x88] sm:$0x3]  ;;  %v2607_v30 = vld [vmem:[%s2554_s15 + $0x50] sm:$0xff]  ;;  %v660_v32 = vrot.slane %v604_v21, 1  ;;  %v2615_v35 = vld [vmem:[%s2554_s15 + $0x18] sm:$0xff] }
  0x7b   : > { %v671_v31 = vsel %vm656_vm2, %v668_v15, %v670_v20  ;;  %v682_v33 = vrot.slane %v2590_v22, 1  ;;  %v2612_v34 = vld [vmem:[%s2554_s15 + $0x58] sm:$0x3]  ;;  %v683_v38 = vrot.slane %v2593_v23, 1  ;;  %v685_v39 = vrot.slane %v2601_v28, 1  ;;  %v2625_v40 = vld [vmem:[%s2554_s15 + $0x20] sm:$0xff] }
  0x7c   : > { %1845 = vrot.lane.b32.xlu2 %v2595_v24, %s2186_s24  ;;  %v2619_v36 = vpack.i.bf16 %v671_v31, %v669_v25  ;;  %v659_v37 = vsel %vm656_vm2, %v657_v26, %v658_v27  ;;  %v661_v41 = vsel %vm656_vm2, %v658_v27, %v660_v32  ;;  %v672_v42 = vrot.slane %v2604_v29, 1  ;;  %v2632_v45 = vld [vmem:[%s2554_s15 + $0x28] sm:$0x3]  ;;  %v2650_v56 = vld [vmem:[%s2554_s15 + $0xb0] sm:$0xff]  ;;  %v2653_v57 = vld [vmem:[%s2554_s15 + $0xb8] sm:$0x3] }
  0x7d   : > { %v673_v43 = vrot.slane %v2607_v30, 1  ;;  %v675_v44 = vrot.slane %v2612_v34, 1  ;;  %v1824_v46 = vpack.i.bf16 %v661_v41, %v659_v37  ;;  %v684_v47 = vsel %vm656_vm2, %v682_v33, %v683_v38  ;;  %v2647_v55 = vld [vmem:[%s2554_s15 + $0xa8] sm:$0xff]  ;;  %v2659_v62 = vld [vmem:[%s2554_s15 + $0x90] sm:$0xff]  ;;  %v2662_v63 = vld [vmem:[%s2554_s15 + $0x98] sm:$0xff] }
  0x7e   : > { %1835 = vrot.lane.b32.xlu1 %v2619_v36, %s2186_s24  ;;  %v686_v48 = vsel %vm656_vm2, %v683_v38, %v685_v39  ;;  %v662_v49 = vrot.slane %v2615_v35, 1  ;;  %v663_v52 = vrot.slane %v2625_v40, 1  ;;  %v665_v54 = vrot.slane %v2632_v45, 1  ;;  %v622_v2 = vld [vmem:[%s2554_s15 + $0xa0] sm:$0x3] }
  0x7f   : > { %v674_v50 = vsel %vm656_vm2, %v672_v42, %v673_v43  ;;  %v676_v51 = vsel %vm656_vm2, %v673_v43, %v675_v44  ;;  %1825 = vrot.lane.b32.xlu0 %v1824_v46, %s2186_s24  ;;  %v2643_v53 = vpack.i.bf16 %v686_v48, %v684_v47  ;;  %v701_v58 = vrot.slane %v604_v21, 2 }
  0x80   : > { %v664_v59 = vsel %vm656_vm2, %v662_v49, %v663_v52  ;;  %v698_v60 = vrot.slane %v2580_v16, 2  ;;  %v699_v61 = vrot.slane %v2583_v17, 2  ;;  %v2664_v1 = vpack.i.bf16 %v676_v51, %v674_v50 }
  0x81   : > { %v666_v0 = vsel %vm656_vm2, %v663_v52, %v665_v54  ;;  %v692_v3 = vrot.slane %v2647_v55, 1  ;;  %v693_v4 = vrot.slane %v2650_v56, 1  ;;  %v695_v8 = vrot.slane %v2653_v57, 1 }
  0x82   : > { %v2673_v9 = vpack.i.bf16 %v666_v0, %v664_v59  ;;  %v687_v10 = vrot.slane %v2659_v62, 1  ;;  %v688_v14 = vrot.slane %v2662_v63, 1  ;;  %v700_v15 = vsel %vm697_vm3, %v698_v60, %v699_v61 }
  0x83   : > { %v702_v18 = vsel %vm697_vm3, %v699_v61, %v701_v58  ;;  %v690_v19 = vrot.slane %v622_v2, 1  ;;  %v694_v20 = vsel %vm656_vm2, %v692_v3, %v693_v4  ;;  %v696_v21 = vsel %vm656_vm2, %v693_v4, %v695_v8 }
  0x84   : > { %1850 = vrot.lane.b32.xlu2 %v2643_v53, %s2186_s24  ;;  %v1864_v25 = vpack.i.bf16 %v702_v18, %v700_v15  ;;  %v689_v26 = vsel %vm656_vm2, %v687_v10, %v688_v14  ;;  %v713_v31 = vrot.slane %v2604_v29, 2  ;;  %v714_v32 = vrot.slane %v2607_v30, 2 }
  0x85   : > { %v691_v27 = vsel %vm656_vm2, %v688_v14, %v690_v19  ;;  %v716_v33 = vrot.slane %v2612_v34, 2  ;;  %v2690_v37 = vpack.i.bf16 %v696_v21, %v694_v20  ;;  %v711_v38 = vrot.slane %v2575_v13, 2 }
  0x86   : > { %1840 = vrot.lane.b32.xlu1 %v2664_v1, %s2186_s24  ;;  %v708_v39 = vrot.slane %v2569_v11, 2  ;;  %v709_v41 = vrot.slane %v2572_v12, 2  ;;  %v2696_v42 = vpack.i.bf16 %v691_v27, %v689_v26  ;;  %v703_v43 = vrot.slane %v2615_v35, 2 }
  0x87   : > { %1830 = vrot.lane.b32.xlu0 %v2673_v9, %s2186_s24  ;;  %v704_v44 = vrot.slane %v2625_v40, 2  ;;  %v715_v46 = vsel %vm697_vm3, %v713_v31, %v714_v32  ;;  %v717_v34 = vsel %vm697_vm3, %v714_v32, %v716_v33  ;;  %v706_v47 = vrot.slane %v2632_v45, 2 }
  0x88   : > { %v710_v13 = vsel %vm697_vm3, %v708_v39, %v709_v41  ;;  %v712_v48 = vsel %vm697_vm3, %v709_v41, %v711_v38  ;;  %v2709_v49 = vpack.i.bf16 %v717_v34, %v715_v46  ;;  %v728_v52 = vrot.slane %v2659_v62, 2 }
  0x89   : > { %v705_v50 = vsel %vm697_vm3, %v703_v43, %v704_v44  ;;  %v707_v51 = vsel %vm697_vm3, %v704_v44, %v706_v47  ;;  %v729_v45 = vrot.slane %v2662_v63, 2  ;;  %v731_v54 = vrot.slane %v622_v2, 2  ;;  %v2769_v43 = vld [vmem:[%s2554_s15 + $0xc0] sm:$0xff]  ;;  %v2772_v44 = vld [vmem:[%s2554_s15 + $0xc8] sm:$0xff] }
  0x8a   : > { %v2715_v58 = vpack.i.bf16 %v712_v48, %v710_v13  ;;  %v723_v59 = vrot.slane %v2590_v22, 2  ;;  %v724_v60 = vrot.slane %v2593_v23, 2  ;;  %v726_v61 = vrot.slane %v2601_v28, 2 }
  0x8b   : > { %v721_v0 = vrot.slane %v2563_v7, 2  ;;  %v1869_v3 = vpack.i.bf16 %v707_v51, %v705_v50  ;;  %v730_v4 = vsel %vm697_vm3, %v728_v52, %v729_v45  ;;  %v732_v8 = vsel %vm697_vm3, %v729_v45, %v731_v54  ;;  %v628_v50 = vld [vmem:[%s2554_s15 + $0xd0] sm:$0x3] }
  0x8c   : > { %1865 = vrot.lane.b32.xlu2 %v1864_v25, %s2187_s18  ;;  %v718_v2 = vrot.slane %v2557_v6, 2  ;;  %v719_v10 = vrot.slane %v2560_v5, 2  ;;  %v725_v14 = vsel %vm697_vm3, %v723_v59, %v724_v60  ;;  %v727_v28 = vsel %vm697_vm3, %v724_v60, %v726_v61 }
  0x8d   : > { %v2732_v7 = vpack.i.bf16 %v732_v8, %v730_v4  ;;  %v2736_v19 = vpack.i.bf16 %v727_v28, %v725_v14  ;;  %v733_v21 = vrot.slane %v2647_v55, 2  ;;  %v734_v25 = vrot.slane %v2650_v56, 2 }
  0x8e   : > { %1860 = vrot.lane.b32.xlu1 %v2690_v37, %s2186_s24  ;;  %v720_v15 = vsel %vm697_vm3, %v718_v2, %v719_v10  ;;  %v722_v18 = vsel %vm697_vm3, %v719_v10, %v721_v0  ;;  %v736_v26 = vrot.slane %v2653_v57, 2  ;;  %v1909_v27 = vpack.i.bf16 %v2572_v12, %v2569_v11 }
  0x8f   : > { %1855 = vrot.lane.b32.xlu0 %v2696_v42, %s2186_s24  ;;  %v2740_v20 = vpack.i.bf16 %v722_v18, %v720_v15  ;;  %v735_v31 = vsel %vm697_vm3, %v733_v21, %v734_v25  ;;  %v1904_v33 = vpack.i.bf16 %v2625_v40, %v2615_v35  ;;  %v2761_v38 = vpack.i.bf16 %v2593_v23, %v2590_v22 }
  0x90   : > { %v737_v32 = vsel %vm697_vm3, %v734_v25, %v736_v26  ;;  %v1919_v39 = vpack.i.bf16 %v2560_v5, %v2557_v6  ;;  %v1914_v41 = vpack.i.bf16 %v2607_v30, %v2604_v29  ;;  %v1939_v46 = vpack.i.bf16 %v2772_v44, %v2769_v43 }
  0x91   : > { %v2755_v57 = vpack.i.bf16 %v737_v32, %v735_v31  ;;  %v2778_v34 = vpack.i.bf16 %v2650_v56, %v2647_v55  ;;  %v1929_v47 = vpack.i.bf16 %v2662_v63, %v2659_v62  ;;  %v741_v51 = vrot.slane %v2769_v43, 1 }
  0x92   : > { %v742_v52 = vrot.slane %v2772_v44, 1  ;;  %v744_v45 = vrot.slane %v628_v50, 1  ;;  %v747_v0 = vrot.slane %v2772_v44, 2 }
  0x94   : > { %1880 = vrot.lane.b32.xlu2 %v2709_v49, %s2187_s18  ;;  %v743_v54 = vsel %vm656_vm2, %v741_v51, %v742_v52  ;;  %v745_v59 = vsel %vm656_vm2, %v742_v52, %v744_v45 }
  0x96   : > { %1875 = vrot.lane.b32.xlu1 %v2715_v58, %s2187_s18 }
  0x97   : > { %1870 = vrot.lane.b32.xlu0 %v1869_v3, %s2187_s18 }
  0x9c   : > { %1895 = vrot.lane.b32.xlu2 %v2732_v7, %s2187_s18 }
  0x9e   : > { %1890 = vrot.lane.b32.xlu1 %v2736_v19, %s2187_s18 }
  0x9f   : > { %1885 = vrot.lane.b32.xlu0 %v2740_v20, %s2187_s18 }
  0xa4   : > { %1910 = vrot.lane.b32.xlu2 %v1909_v27, %s2188_s23 }
  0xa6   : > { %1905 = vrot.lane.b32.xlu1 %v1904_v33, %s2188_s23 }
  0xa7   : > { %1900 = vrot.lane.b32.xlu0 %v2755_v57, %s2187_s18 }
  0xac   : > { %1925 = vrot.lane.b32.xlu2 %v2761_v38, %s2188_s23 }
  0xae   : > { %1920 = vrot.lane.b32.xlu1 %v1919_v39, %s2188_s23 }
  0xaf   : > { %1915 = vrot.lane.b32.xlu0 %v1914_v41, %s2188_s23 }
  0xb4   : > { %1940 = vrot.lane.b32.xlu2 %v1939_v46, %s2188_s23 }
  0xb6   : > { %1935 = vrot.lane.b32.xlu1 %v2778_v34, %s2188_s23 }
  0xb7   : > { %1930 = vrot.lane.b32.xlu0 %v1929_v47, %s2188_s23 }
  0xbc   : > { %1955 = vrot.lane.b32.xlu2 %v1909_v27, %s2189_s10 }
  0xbe   : > { %1950 = vrot.lane.b32.xlu1 %v1869_v3, %s2190_s11  ;;  %v749_v3 = vrot.slane %v628_v50, 2 }
  0xbf   : > { %1945 = vrot.lane.b32.xlu0 %v2673_v9, %s2191_s9 }
  0xc0   : > { %v750_v18 = vsel %vm697_vm3, %v747_v0, %v749_v3 }
  0xc4   : > { %1970 = vrot.lane.b32.xlu2 %v2664_v1, %s2191_s9 }
  0xc6   : > { %1965 = vrot.lane.b32.xlu1 %v2715_v58, %s2192_s13 }
  0xc7   : > { %1960 = vrot.lane.b32.xlu0 %v2619_v36, %s2193_s16 }
  0xcc   : > { %1985 = vrot.lane.b32.xlu2 %v1919_v39, %s2189_s10 }
  0xce   : > { %1980 = vrot.lane.b32.xlu1 %v2643_v53, %s2191_s9 }
  0xcf   : > { %1975 = vrot.lane.b32.xlu0 %v2709_v49, %s2190_s11 }
  0xd4   : > { %2000 = vrot.lane.b32.xlu2 %v1929_v47, %s2189_s10 }
  0xd6   : > { %1995 = vrot.lane.b32.xlu1 %v2595_v24, %s2193_s16  ;;  %v2801_v9 = vpop.permute.xlu2 %1845 }
  0xd7   : > { %1990 = vrot.lane.b32.xlu0 %v2736_v19, %s2190_s11 }
  0xdc   : > { %2015 = vrot.lane.b32.xlu2 %v2732_v7, %s2192_s13 }
  0xde   : > { %2010 = vrot.lane.b32.xlu1 %v2696_v42, %s2193_s16  ;;  %v2809_v13 = vpop.permute.xlu2 %1850 }
  0xdf   : > { %2005 = vrot.lane.b32.xlu0 %v2740_v20, %s2192_s13 }
  0xe4   : > { %2030 = vrot.lane.b32.xlu2 %v2690_v37, %s2191_s9 }
  0xe6   : > { %2025 = vrot.lane.b32.xlu1 %v2715_v58, %s2190_s11  ;;  %v2817_v48 = vpop.permute.xlu2 %1865 }
  0xe7   : > { %2020 = vrot.lane.b32.xlu0 %v2619_v36, %s2191_s9  ;;  %v2831_v36 = vpack.i.bf16 %v745_v59, %v743_v54 }
  0xec   : > { %2045 = vrot.lane.b32.xlu2 %v2664_v1, %s2193_s16  ;;  %v746_v1 = vrot.slane %v2769_v43, 2 }
  0xee   : > { %2040 = vrot.lane.b32.xlu1 %v2755_v57, %s2190_s11  ;;  %v1881_v58 = vpop.permute.xlu2 %1880  ;;  %v748_v15 = vsel %vm697_vm3, %v746_v1, %v747_v0 }
  0xef   : > { %2035 = vrot.lane.b32.xlu0 %v1914_v41, %s2189_s10  ;;  %v1883_v8 = vunpack.i.h.bf16 %v1881_v58  ;;  %v1882_v2 = vunpack.i.l.bf16 %v1881_v58  ;;  %v2850_v26 = vpack.i.bf16 %v750_v18, %v748_v15  ;;  %v1852_v15 = vunpack.i.l.bf16 %v2809_v13  ;;  %v1757_v18 = vld [vmem:[%s3264_s3 + $0x18] sm:$0xff] }
  0xf0   : > { %v1836_v60 = vpop.permute.xlu1 %1835 }
  0xf1   : > { %v2833_v61 = vpop.permute.xlu0 %1825  ;;  %v1838_v44 = vunpack.i.h.bf16 %v1836_v60 }
  0xf3   : > { %v1154_v59 = vsel %vm1148_vm4, %v2572_v12, %v1838_v44  ;;  %v1755_v44 = vld [vmem:[%s3264_s3 + $0x8] sm:$0xff] }
  0xf4   : > { %2060 = vrot.lane.b32.xlu2 %v2831_v36, %s2193_s16 }
  0xf6   : > { %2055 = vrot.lane.b32.xlu1 %v2709_v49, %s2192_s13  ;;  %v1896_v4 = vpop.permute.xlu2 %1895 }
  0xf7   : > { %2050 = vrot.lane.b32.xlu0 %v1939_v46, %s2189_s10  ;;  %v1897_v33 = vunpack.i.l.bf16 %v1896_v4  ;;  %v1837_v46 = vunpack.i.l.bf16 %v1836_v60 }
  0xf8   : > { %v1841_v10 = vpop.permute.xlu1 %1840 }
  0xf9   : > { %v1843_v14 = vunpack.i.h.bf16 %v1841_v10  ;;  %v1842_v28 = vunpack.i.l.bf16 %v1841_v10  ;;  %v1831_v21 = vpop.permute.xlu0 %1830  ;;  %v1153_v58 = vsel %vm1148_vm4, %v2569_v11, %v1837_v46  ;;  %v1853_v10 = vunpack.i.h.bf16 %v2809_v13 }
  0xfa   : > { %v1833_v51 = vunpack.i.h.bf16 %v1831_v21  ;;  %v1832_v52 = vunpack.i.l.bf16 %v1831_v21 }
  0xfb   : > { %v1156_v25 = vsel %vm1148_vm4, %v2607_v30, %v1843_v14  ;;  %v1155_v49 = vsel %vm1148_vm4, %v2604_v29, %v1842_v28  ;;  %v1898_v30 = vunpack.i.h.bf16 %v1896_v4 }
  0xfc   : > { %2075 = vrot.lane.b32.xlu2 %v2740_v20, %s2190_s11  ;;  %v2853_v27 = vsel %vm1165_vm5, %v1155_v49, %v1882_v2  ;;  %v2856_v31 = vsel %vm1165_vm5, %v1156_v25, %v1883_v8  ;;  %v1152_v2 = vsel %vm1148_vm4, %v2625_v40, %v1833_v51  ;;  %v1151_v12 = vsel %vm1148_vm4, %v2615_v35, %v1832_v52 }
  0xfd   : > { %v1160_v25 = vsel %vm1148_vm4, %v2593_v23, %v1853_v10  ;;  %v1159_v49 = vsel %vm1148_vm4, %v2590_v22, %v1852_v15  ;;  %v631_v23 = vld [vmem:[%s2554_s15 + $0xe8] sm:$0x3]  ;;  %v1756_v22 = vld [vmem:[%s3264_s3 + $0x10] sm:$0xff] }
  0xfe   : > { %2070 = vrot.lane.b32.xlu1 %v2595_v24, %s2191_s9  ;;  %v1911_v32 = vpop.permute.xlu2 %1910 }
  0xff   : > { %2065 = vrot.lane.b32.xlu0 %v2850_v26, %s2192_s13  ;;  %v1913_v60 = vunpack.i.h.bf16 %v1911_v32  ;;  %v1912_v1 = vunpack.i.l.bf16 %v1911_v32 }
 0x100   : > { %v2862_v29 = vpop.permute.xlu1 %1860 }
 0x101   : > { %v1856_v20 = vpop.permute.xlu0 %1855  ;;  %v1863_v51 = vunpack.i.h.bf16 %v2862_v29  ;;  %v1862_v52 = vunpack.i.l.bf16 %v2862_v29 }
 0x102   : > { %v1858_v39 = vunpack.i.h.bf16 %v1856_v20  ;;  %v1857_v41 = vunpack.i.l.bf16 %v1856_v20 }
 0x103   : > { %v1163_v29 = vsel %vm1148_vm4, %v2647_v55, %v1862_v52 }
 0x104   : > { %2090 = vrot.lane.b32.xlu2 %v2732_v7, %s2190_s11  ;;  %v1162_v43 = vsel %vm1148_vm4, %v2662_v63, %v1858_v39  ;;  %v1161_v24 = vsel %vm1148_vm4, %v2659_v62, %v1857_v41  ;;  %v1300_v62 = vld [vmem:[%s3264_s3 + $0x20] sm:$0xf] }
 0x105   : > { %v2873_v47 = vsel %vm1165_vm5, %v1161_v24, %v1897_v33  ;;  %v2876_v50 = vsel %vm1165_vm5, %v1162_v43, %v1898_v30  ;;  %v1322_v54 = vunpack.c.l.b16 %v1300_v62  ;;  %v629_v30 = vld [vmem:[%s2554_s15 + $0xd8] sm:$0xff]  ;;  %v630_v33 = vld [vmem:[%s2554_s15 + $0xe0] sm:$0xff]  ;;  %v757_v24 = vrot.slane %v631_v23, 1 }
 0x106   : > { %2085 = vrot.lane.b32.xlu1 %v2761_v38, %s2189_s10  ;;  %v2883_v38 = vpop.permute.xlu2 %1925  ;;  %v755_v41 = vrot.slane %v630_v33, 1  ;;  %v754_v43 = vrot.slane %v629_v30, 1 }
 0x107   : > { %2080 = vrot.lane.b32.xlu0 %v2696_v42, %s2191_s9  ;;  %v1327_v11 = vpack.c.b16 %v1322_v54, %v1322_v54  ;;  %v2129_v54 = vpack.i.bf16 %v630_v33, %v629_v30 }
 0x108   : > { %v1876_v63 = vpop.permute.xlu1 %1875  ;;  %v756_v46 = vsel %vm656_vm2, %v754_v43, %v755_v41  ;;  %v1827_v43 = vunpack.i.l.bf16 %v2833_v61 }
 0x109   : > { %v1878_v7 = vunpack.i.h.bf16 %v1876_v63  ;;  %v1877_v45 = vunpack.i.l.bf16 %v1876_v63  ;;  %v1871_v42 = vpop.permute.xlu0 %1870  ;;  %v1359_v40 = vsel %vm1357_vm7, %v1327_v11, 0 }
 0x10a   : > { %v1873_v4 = vunpack.i.h.bf16 %v1871_v42  ;;  %v1872_v8 = vunpack.i.l.bf16 %v1871_v42  ;;  %1364 = vmatpush.bf16.msra.mxu0 %v1359_v40  ;;  %1758 = vmatpush.bf16.msra.mxu1 %v1359_v40 }
 0x10b   : > { %v2890_v0 = vsel %vm1165_vm5, %v1153_v58, %v1877_v45  ;;  %v2893_v3 = vsel %vm1165_vm5, %v1154_v59, %v1878_v7  ;;  %1759 = vmatpush.bf16.msra.mxu2 %v1359_v40  ;;  %1760 = vmatpush.bf16.msra.mxu3 %v1359_v40 }
 0x10c   : > { %2105 = vrot.lane.b32.xlu2 %v2736_v19, %s2192_s13  ;;  %v1168_v14 = vsel %vm1165_vm5, %v1151_v12, %v1872_v8  ;;  %v1169_v28 = vsel %vm1165_vm5, %v1152_v2, %v1873_v4  ;;  %v759_v2 = vrot.slane %v629_v30, 2  ;;  %v762_v12 = vrot.slane %v631_v23, 2 }
 0x10d   : > { %v2908_v35 = vsel %vm1182_vm6, %v1168_v14, %v1912_v1  ;;  %v2911_v19 = vsel %vm1182_vm6, %v1169_v28, %v1913_v60  ;;  %v1164_v60 = vsel %vm1148_vm4, %v2650_v56, %v1863_v51  ;;  %v1754_v1 = vld [vmem:[%s3264_s3] sm:$0xff] }
 0x10e   : > { %2100 = vrot.lane.b32.xlu1 %v2778_v34, %s2189_s10  ;;  %v1941_v39 = vpop.permute.xlu2 %1940  ;;  %1365 = vmatpush.bf16.msra.mxu0 %v1757_v18 }
 0x10f   : > { %2095 = vrot.lane.b32.xlu0 %v2643_v53, %s2193_s16  ;;  %1761 = vmatpush.bf16.msra.mxu1 %v1757_v18  ;;  %v1943_v62 = vunpack.i.h.bf16 %v1941_v39  ;;  %v1942_v7 = vunpack.i.l.bf16 %v1941_v39 }
 0x110   : > { %v1891_v13 = vpop.permute.xlu1 %1890  ;;  %1762 = vmatpush.bf16.msra.mxu2 %v1757_v18  ;;  %1763 = vmatpush.bf16.msra.mxu3 %v1757_v18 }
 0x111   : > { %v1893_v34 = vunpack.i.h.bf16 %v1891_v13  ;;  %v1892_v21 = vunpack.i.l.bf16 %v1891_v13  ;;  %v2922_v32 = vpop.permute.xlu0 %1885 }
 0x112   : > { %1366 = vmatpush.bf16.msra.mxu0 %v1756_v22 }
 0x113   : > { %v2927_v20 = vsel %vm1165_vm5, %v1160_v25, %v1893_v34  ;;  %v2930_v53 = vsel %vm1165_vm5, %v1159_v49, %v1892_v21  ;;  %1764 = vmatpush.bf16.msra.mxu1 %v1756_v22 }
 0x114   : > { %2120 = vrot.lane.b32.xlu2 %v2831_v36, %s2191_s9  ;;  %v758_v36 = vsel %vm656_vm2, %v755_v41, %v757_v24  ;;  %1765 = vmatpush.bf16.msra.mxu2 %v1756_v22  ;;  %v1828_v41 = vunpack.i.h.bf16 %v2833_v61  ;;  %v1867_v24 = vunpack.i.l.bf16 %v2817_v48 }
 0x115   : > { %1766 = vmatpush.bf16.msra.mxu3 %v1756_v22 }
 0x116   : > { %2115 = vrot.lane.b32.xlu1 %v2755_v57, %s2192_s13  ;;  %v2134_v57 = vpack.i.bf16 %v758_v36, %v756_v46  ;;  %1367 = vmatpush.bf16.msra.mxu0 %v1755_v44  ;;  %v2959_v42 = vpop.permute.xlu2 %1955  ;;  %v1149_v46 = vsel %vm1148_vm4, %v2580_v16, %v1827_v43 }
 0x117   : > { %2110 = vrot.lane.b32.xlu0 %v2690_v37, %s2193_s16  ;;  %1767 = vmatpush.bf16.msra.mxu1 %v1755_v44  ;;  %v760_v37 = vrot.slane %v630_v33, 2 }
 0x118   : > { %v2949_v63 = vpop.permute.xlu1 %1905  ;;  %1768 = vmatpush.bf16.msra.mxu2 %v1755_v44 }
 0x119   : > { %v1901_v45 = vpop.permute.xlu0 %1900  ;;  %1769 = vmatpush.bf16.msra.mxu3 %v1755_v44  ;;  %v761_v28 = vsel %vm697_vm3, %v759_v2, %v760_v37  ;;  %v763_v15 = vsel %vm697_vm3, %v760_v37, %v762_v12  ;;  %v1150_v44 = vsel %vm1148_vm4, %v2583_v17, %v1828_v41  ;;  %v1908_v61 = vunpack.i.h.bf16 %v2949_v63 }
 0x11a   : > { %v1903_v59 = vunpack.i.h.bf16 %v1901_v45  ;;  %v1902_v58 = vunpack.i.l.bf16 %v1901_v45  ;;  %1368 = vmatpush.bf16.msra.mxu0 %v1754_v1 }
 0x11b   : > { %1770 = vmatpush.bf16.msra.mxu1 %v1754_v1 }
 0x11c   : > { %2135 = vrot.lane.b32.xlu2 %v2134_v57, %s2193_s16  ;;  %v1181_v4 = vsel %vm1165_vm5, %v1164_v60, %v1903_v59  ;;  %v1180_v8 = vsel %vm1165_vm5, %v1163_v29, %v1902_v58  ;;  %1771 = vmatpush.bf16.msra.mxu2 %v1754_v1  ;;  %v1166_v57 = vsel %vm1165_vm5, %v1149_v46, %v1867_v24  ;;  %v1957_v59 = vunpack.i.l.bf16 %v2959_v42 }
 0x11d   : > { %v2965_v55 = vsel %vm1182_vm6, %v1180_v8, %v1942_v7  ;;  %v2968_v56 = vsel %vm1182_vm6, %v1181_v4, %v1943_v62  ;;  %1772 = vmatpush.bf16.msra.mxu3 %v1754_v1  ;;  %v1927_v46 = vunpack.i.l.bf16 %v2883_v38 }
 0x11e   : > { %2130 = vrot.lane.b32.xlu1 %v2129_v54, %s2189_s10  ;;  %v2984_v34 = vpop.permute.xlu2 %1970  ;;  %v1958_v54 = vunpack.i.h.bf16 %v2959_v42 }
 0x11f   : > { %2125 = vrot.lane.b32.xlu0 %v2850_v26, %s2190_s11  ;;  %v2139_v26 = vpack.i.bf16 %v763_v15, %v761_v28 }
 0x120   : > { %v1921_v11 = vpop.permute.xlu1 %1920 }
 0x121   : > { %v1923_v10 = vunpack.i.h.bf16 %v1921_v11  ;;  %v1922_v14 = vunpack.i.l.bf16 %v1921_v11  ;;  %v2974_v40 = vpop.permute.xlu0 %1915 }
 0x122   : > { %v1918_v43 = vunpack.i.h.bf16 %v2974_v40 }
 0x123   : > { %v2978_v18 = vsel %vm1182_vm6, %v2853_v27, %v1922_v14  ;;  %v2982_v13 = vsel %vm1182_vm6, %v2856_v31, %v1923_v10 }
 0x126   : > { %v3013_v36 = vpop.permute.xlu2 %1985 }
 0x127   : > { %2140 = vrot.lane.b32.xlu0 %v2139_v26, %s2192_s13 }
 0x128   : > { %v1936_v21 = vpop.permute.xlu1 %1935 }
 0x129   : > { %v1938_v25 = vunpack.i.h.bf16 %v1936_v21  ;;  %v1937_v49 = vunpack.i.l.bf16 %v1936_v21  ;;  %v1931_v30 = vpop.permute.xlu0 %1930 }
 0x12a   : > { %v1933_v39 = vunpack.i.h.bf16 %v1931_v30  ;;  %v1932_v31 = vunpack.i.l.bf16 %v1931_v30  ;;  %v1847_v30 = vunpack.i.l.bf16 %v2801_v9 }
 0x12b   : > { %v2989_v33 = vsel %vm1182_vm6, %v2873_v47, %v1937_v49  ;;  %v2993_v27 = vsel %vm1182_vm6, %v2876_v50, %v1938_v25  ;;  %v1868_v47 = vunpack.i.h.bf16 %v2817_v48  ;;  %v1848_v49 = vunpack.i.h.bf16 %v2801_v9 }
 0x12c   : > { %v2999_v23 = vsel %vm1182_vm6, %v2927_v20, %v1933_v39  ;;  %v3003_v22 = vsel %vm1182_vm6, %v2930_v53, %v1932_v31  ;;  %v1907_v20 = vunpack.i.l.bf16 %v2949_v63  ;;  %v1888_v39 = vunpack.i.h.bf16 %v2922_v32 }
 0x12d   : > { %v1167_v48 = vsel %vm1165_vm5, %v1150_v44, %v1868_v47  ;;  %v1887_v31 = vunpack.i.l.bf16 %v2922_v32  ;;  %v1917_v47 = vunpack.i.l.bf16 %v2974_v40  ;;  %v1158_v24 = vsel %vm1148_vm4, %v2560_v5, %v1848_v49 }
 0x12e   : > { %v1183_v62 = vsel %vm1182_vm6, %v1166_v57, %v1907_v20  ;;  %v1184_v17 = vsel %vm1182_vm6, %v1167_v48, %v1908_v61  ;;  %v3025_v8 = vpop.permute.xlu2 %2000  ;;  %v1928_v44 = vunpack.i.h.bf16 %v2883_v38  ;;  %v1175_v61 = vsel %vm1165_vm5, %v1158_v24, %v1888_v39 }
 0x12f   : > { %v1973_v20 = vunpack.i.h.bf16 %v2984_v34  ;;  %v1188_v40 = vsel %vm1182_vm6, %v2893_v3, %v1918_v43  ;;  %v1187_v5 = vsel %vm1182_vm6, %v2890_v0, %v1917_v47  ;;  %v2003_v0 = vunpack.i.h.bf16 %v3025_v8 }
 0x130   : > { %v1951_v50 = vpop.permute.xlu1 %1950 }
 0x131   : > { %v1946_v51 = vpop.permute.xlu0 %1945  ;;  %v1953_v7 = vunpack.i.h.bf16 %v1951_v50  ;;  %v1952_v16 = vunpack.i.l.bf16 %v1951_v50  ;;  %v1157_v50 = vsel %vm1148_vm4, %v2557_v6, %v1847_v30 }
 0x132   : > { %v1948_v53 = vunpack.i.h.bf16 %v1946_v51  ;;  %v1947_v52 = vunpack.i.l.bf16 %v1946_v51  ;;  %v1174_v32 = vsel %vm1165_vm5, %v1157_v50, %v1887_v31  ;;  %v1972_v51 = vunpack.i.l.bf16 %v2984_v34 }
 0x133   : > { %v1987_v34 = vunpack.i.l.bf16 %v3013_v36 }
 0x134   : > { %v1200_v45 = vsel %vm1199_vm8, %v1183_v62, %v1947_v52  ;;  %v1201_v63 = vsel %vm1199_vm8, %v1184_v17, %v1948_v53  ;;  %v1191_v17 = vsel %vm1182_vm6, %v1174_v32, %v1927_v46  ;;  %v1204_v3 = vsel %vm1199_vm8, %v1187_v5, %v1972_v51 }
 0x135   : > { %v1217_v60 = vsel %vm1216_vm9, %v1200_v45, %v1952_v16  ;;  %v1218_v29 = vsel %vm1216_vm9, %v1201_v63, %v1953_v7  ;;  %v1192_v7 = vsel %vm1182_vm6, %v1175_v61, %v1928_v44  ;;  %v1988_v16 = vunpack.i.h.bf16 %v3013_v36 }
 0x136   : > { %v1234_v11 = vsel %vm1233_vm10, %v1217_v60, %v1957_v59  ;;  %v1235_v10 = vsel %vm1233_vm10, %v1218_v29, %v1958_v54  ;;  %v2016_v41 = vpop.permute.xlu2 %2015  ;;  %v1205_v45 = vsel %vm1199_vm8, %v1188_v40, %v1973_v20  ;;  %v2002_v63 = vunpack.i.l.bf16 %v3025_v8 }
 0x138   : > { %v1966_v58 = vpop.permute.xlu1 %1965 }
 0x139   : > { %v1968_v37 = vunpack.i.h.bf16 %v1966_v58  ;;  %v1967_v1 = vunpack.i.l.bf16 %v1966_v58  ;;  %v1961_v4 = vpop.permute.xlu0 %1960 }
 0x13a   : > { %v1963_v2 = vunpack.i.h.bf16 %v1961_v4  ;;  %v1962_v12 = vunpack.i.l.bf16 %v1961_v4  ;;  %v2017_v4 = vunpack.i.l.bf16 %v2016_v41 }
 0x13c   : > { %v1251_v42 = vsel %vm1250_vm11, %v1234_v11, %v1962_v12  ;;  %v1252_v14 = vsel %vm1250_vm11, %v1235_v10, %v1963_v2 }
 0x13d   : > { %v1268_v28 = vsel %vm1267_vm12, %v1251_v42, %v1967_v1  ;;  %v1269_v15 = vsel %vm1267_vm12, %v1252_v14, %v1968_v37  ;;  %v2018_v1 = vunpack.i.h.bf16 %v2016_v41 }
 0x13e   : > { %v1284_v26 = vpack.c.bf16 %v1269_v15, %v1268_v28  ;;  %v3064_v58 = vpop.permute.xlu2 %2030 }
 0x140   : > { %v1981_v21 = vpop.permute.xlu1 %1980  ;;  %1743 = vmatmul.msk.bf16.vlgmr.msra.gmra.mxu0 %vm1332_vm13, %v1284_v26 }
 0x141   : > { %v1976_v25 = vpop.permute.xlu0 %1975  ;;  %v1983_v6 = vunpack.i.h.bf16 %v1981_v21  ;;  %v1982_v53 = vunpack.i.l.bf16 %v1981_v21 }
 0x142   : > { %v1978_v57 = vunpack.i.h.bf16 %v1976_v25  ;;  %v1977_v38 = vunpack.i.l.bf16 %v1976_v25 }
 0x143   : > { %v1208_v54 = vsel %vm1199_vm8, %v1191_v17, %v1982_v53  ;;  %v1209_v59 = vsel %vm1199_vm8, %v1192_v7, %v1983_v6 }
 0x144   : > { %v1221_v60 = vsel %vm1216_vm9, %v1204_v3, %v1977_v38  ;;  %v1222_v29 = vsel %vm1216_vm9, %v1205_v45, %v1978_v57 }
 0x145   : > { %v1238_v42 = vsel %vm1233_vm10, %v1221_v60, %v1987_v34  ;;  %v1239_v14 = vsel %vm1233_vm10, %v1222_v29, %v1988_v16  ;;  %v2032_v60 = vunpack.i.l.bf16 %v3064_v58 }
 0x148   : > { %v1996_v9 = vpop.permute.xlu1 %1995 }
 0x149   : > { %v1991_v52 = vpop.permute.xlu0 %1990  ;;  %v1998_v2 = vunpack.i.h.bf16 %v1996_v9  ;;  %v1997_v12 = vunpack.i.l.bf16 %v1996_v9  ;;  %v2046_v9 = vpop.permute.xlu2 %2045 }
 0x14a   : > { %v1993_v48 = vunpack.i.h.bf16 %v1991_v52  ;;  %v1992_v62 = vunpack.i.l.bf16 %v1991_v52  ;;  %v2047_v17 = vunpack.i.l.bf16 %v2046_v9 }
 0x14b   : > { %v1255_v39 = vsel %vm1250_vm11, %v1238_v42, %v1997_v12  ;;  %v1256_v31 = vsel %vm1250_vm11, %v1239_v14, %v1998_v2 }
 0x14c   : > { %v1225_v36 = vsel %vm1216_vm9, %v1208_v54, %v1992_v62  ;;  %v1226_v37 = vsel %vm1216_vm9, %v1209_v59, %v1993_v48  ;;  %v2048_v62 = vunpack.i.h.bf16 %v2046_v9  ;;  %v2033_v59 = vunpack.i.h.bf16 %v3064_v58 }
 0x14d   : > { %v1242_v28 = vsel %vm1233_vm10, %v1225_v36, %v2002_v63  ;;  %v1243_v15 = vsel %vm1233_vm10, %v1226_v37, %v2003_v0 }
 0x150   : > { %v2011_v11 = vpop.permute.xlu1 %2010 }
 0x151   : > { %v2013_v8 = vunpack.i.h.bf16 %v2011_v11  ;;  %v2012_v10 = vunpack.i.l.bf16 %v2011_v11  ;;  %v2006_v26 = vpop.permute.xlu0 %2005  ;;  %v2061_v53 = vpop.permute.xlu2 %2060 }
 0x152   : > { %v2008_v49 = vunpack.i.h.bf16 %v2006_v26  ;;  %v2007_v30 = vunpack.i.l.bf16 %v2006_v26  ;;  %v2063_v42 = vunpack.i.h.bf16 %v2061_v53  ;;  %v2062_v58 = vunpack.i.l.bf16 %v2061_v53 }
 0x153   : > { %v1259_v21 = vsel %vm1250_vm11, %v1242_v28, %v2012_v10  ;;  %v1260_v25 = vsel %vm1250_vm11, %v1243_v15, %v2013_v8  ;;  %v1212_v8 = vsel %vm1199_vm8, %v2989_v33, %v2032_v60  ;;  %v1213_v10 = vsel %vm1199_vm8, %v2993_v27, %v2033_v59 }
 0x154   : > { %v1276_v41 = vsel %vm1267_vm12, %v1259_v21, %v2017_v4  ;;  %v1277_v43 = vsel %vm1267_vm12, %v1260_v25, %v2018_v1  ;;  %v1272_v47 = vsel %vm1267_vm12, %v1255_v39, %v2007_v30  ;;  %v1273_v24 = vsel %vm1267_vm12, %v1256_v31, %v2008_v49 }
 0x155   : > { %v1288_v50 = vpack.c.bf16 %v1277_v43, %v1276_v41  ;;  %v1286_v44 = vpack.c.bf16 %v1273_v24, %v1272_v47 }
 0x157   : > { %1747 = vmatmul.msk.bf16.vlgmr.msra.gmra.mxu2 %vm1332_vm13, %v1288_v50  ;;  %1745 = vmatmul.msk.bf16.vlgmr.msra.gmra.mxu1 %vm1332_vm13, %v1286_v44 }
 0x158   : > { %v2026_v46 = vpop.permute.xlu1 %2025 }
 0x159   : > { %v2021_v61 = vpop.permute.xlu0 %2020  ;;  %v2028_v40 = vunpack.i.h.bf16 %v2026_v46  ;;  %v2027_v5 = vunpack.i.l.bf16 %v2026_v46  ;;  %v2076_v2 = vpop.permute.xlu2 %2075 }
 0x15a   : > { %v2023_v32 = vunpack.i.h.bf16 %v2021_v61  ;;  %v2022_v20 = vunpack.i.l.bf16 %v2021_v61  ;;  %v2078_v46 = vunpack.i.h.bf16 %v2076_v2  ;;  %v2077_v9 = vunpack.i.l.bf16 %v2076_v2 }
 0x15c   : > { %v1202_v52 = vsel %vm1199_vm8, %v2908_v35, %v2022_v20  ;;  %v1203_v57 = vsel %vm1199_vm8, %v2911_v19, %v2023_v32 }
 0x15d   : > { %v1219_v7 = vsel %vm1216_vm9, %v1202_v52, %v2027_v5  ;;  %v1220_v16 = vsel %vm1216_vm9, %v1203_v57, %v2028_v40 }
 0x160   : > { %v2041_v51 = vpop.permute.xlu1 %2040 }
 0x161   : > { %v2036_v6 = vpop.permute.xlu0 %2035  ;;  %v2043_v37 = vunpack.i.h.bf16 %v2041_v51  ;;  %v2042_v1 = vunpack.i.l.bf16 %v2041_v51  ;;  %v2091_v43 = vpop.permute.xlu2 %2090 }
 0x162   : > { %v2038_v38 = vunpack.i.h.bf16 %v2036_v6  ;;  %v2037_v48 = vunpack.i.l.bf16 %v2036_v6 }
 0x163   : > { %v1229_v14 = vsel %vm1216_vm9, %v1212_v8, %v2042_v1  ;;  %v1230_v28 = vsel %vm1216_vm9, %v1213_v10, %v2043_v37 }
 0x164   : > { %v1236_v34 = vsel %vm1233_vm10, %v1219_v7, %v2037_v48  ;;  %v1237_v3 = vsel %vm1233_vm10, %v1220_v16, %v2038_v38 }
 0x165   : > { %v1253_v35 = vsel %vm1250_vm11, %v1236_v34, %v2047_v17  ;;  %v1254_v19 = vsel %vm1250_vm11, %v1237_v3, %v2048_v62 }
 0x168   : > { %v2056_v45 = vpop.permute.xlu1 %2055 }
 0x169   : > { %v2058_v0 = vunpack.i.h.bf16 %v2056_v45  ;;  %v2057_v63 = vunpack.i.l.bf16 %v2056_v45  ;;  %v2051_v54 = vpop.permute.xlu0 %2050  ;;  %v2106_v5 = vpop.permute.xlu2 %2105 }
 0x16a   : > { %v2053_v12 = vunpack.i.h.bf16 %v2051_v54  ;;  %v2052_v11 = vunpack.i.l.bf16 %v2051_v54  ;;  %v2108_v6 = vunpack.i.h.bf16 %v2106_v5  ;;  %v2107_v53 = vunpack.i.l.bf16 %v2106_v5  ;;  %v3154_v5 = vld [vmem:[%s3265_s4] ss:$0 sm:$0xff] }
 0x16b   : > { %v1270_v29 = vsel %vm1267_vm12, %v1253_v35, %v2057_v63  ;;  %v1271_v36 = vsel %vm1267_vm12, %v1254_v19, %v2058_v0  ;;  %v2093_v0 = vunpack.i.h.bf16 %v2091_v43  ;;  %v2092_v63 = vunpack.i.l.bf16 %v2091_v43 }
 0x16c   : > { %v1285_v4 = vpack.c.bf16 %v1271_v36, %v1270_v29  ;;  %v1246_v26 = vsel %vm1233_vm10, %v1229_v14, %v2052_v11  ;;  %v1247_v21 = vsel %vm1233_vm10, %v1230_v28, %v2053_v12 }
 0x16d   : > { %v1263_v39 = vsel %vm1250_vm11, %v1246_v26, %v2062_v58  ;;  %v1264_v33 = vsel %vm1250_vm11, %v1247_v21, %v2063_v42 }
 0x16e   : > { %1744 = vmatmul.msk.bf16.gmra.mxu0 %vm1332_vm13, %v1285_v4 }
 0x170   : > { %v2071_v15 = vpop.permute.xlu1 %2070 }
 0x171   : > { %v2066_v25 = vpop.permute.xlu0 %2065  ;;  %v2073_v50 = vunpack.i.h.bf16 %v2071_v15  ;;  %v2072_v44 = vunpack.i.l.bf16 %v2071_v15  ;;  %v2121_v10 = vpop.permute.xlu2 %2120 }
 0x172   : > { %v2068_v49 = vunpack.i.h.bf16 %v2066_v25  ;;  %v2067_v30 = vunpack.i.l.bf16 %v2066_v25  ;;  %v2123_v15 = vunpack.i.h.bf16 %v2121_v10  ;;  %v2122_v26 = vunpack.i.l.bf16 %v2121_v10 }
 0x173   : > { %v1206_v61 = vsel %vm1199_vm8, %v2978_v18, %v2072_v44  ;;  %v1207_v32 = vsel %vm1199_vm8, %v2982_v13, %v2073_v50 }
 0x174   : > { %v1280_v27 = vsel %vm1267_vm12, %v1263_v39, %v2067_v30  ;;  %v1281_v31 = vsel %vm1267_vm12, %v1264_v33, %v2068_v49  ;;  %v1223_v57 = vsel %vm1216_vm9, %v1206_v61, %v2077_v9  ;;  %v1224_v38 = vsel %vm1216_vm9, %v1207_v32, %v2078_v46 }
 0x175   : > { %v1290_v41 = vpack.c.bf16 %v1281_v31, %v1280_v27  ;;  %v1214_v39 = vsel %vm1199_vm8, %v2965_v55, %v2122_v26  ;;  %v1215_v33 = vsel %vm1199_vm8, %v2968_v56, %v2123_v15 }
 0x177   : > { %1749 = vmatmul.msk.bf16.vlgmr.msra.gmra.mxu3 %vm1332_vm13, %v1290_v41 }
 0x178   : > { %v2086_v47 = vpop.permute.xlu1 %2085 }
 0x179   : > { %v2081_v24 = vpop.permute.xlu0 %2080  ;;  %v2088_v20 = vunpack.i.h.bf16 %v2086_v47  ;;  %v2087_v51 = vunpack.i.l.bf16 %v2086_v47  ;;  %v2136_v41 = vpop.permute.xlu2 %2135 }
 0x17a   : > { %v2083_v7 = vunpack.i.h.bf16 %v2081_v24  ;;  %v2082_v16 = vunpack.i.l.bf16 %v2081_v24  ;;  %v2138_v24 = vunpack.i.h.bf16 %v2136_v41  ;;  %v2137_v50 = vunpack.i.l.bf16 %v2136_v41 }
 0x17b   : > { %v1240_v17 = vsel %vm1233_vm10, %v1223_v57, %v2087_v51  ;;  %v1241_v18 = vsel %vm1233_vm10, %v1224_v38, %v2088_v20 }
 0x17c   : > { %v1210_v35 = vsel %vm1199_vm8, %v3003_v22, %v2082_v16  ;;  %v1211_v19 = vsel %vm1199_vm8, %v2999_v23, %v2083_v7 }
 0x17d   : > { %v1227_v4 = vsel %vm1216_vm9, %v1210_v35, %v2092_v63  ;;  %v1228_v2 = vsel %vm1216_vm9, %v1211_v19, %v2093_v0 }
 0x180   : > { %v2101_v40 = vpop.permute.xlu1 %2100 }
 0x181   : > { %v2096_v52 = vpop.permute.xlu0 %2095  ;;  %v2103_v59 = vunpack.i.h.bf16 %v2101_v40  ;;  %v2102_v60 = vunpack.i.l.bf16 %v2101_v40 }
 0x182   : > { %v2098_v48 = vunpack.i.h.bf16 %v2096_v52  ;;  %v2097_v62 = vunpack.i.l.bf16 %v2096_v52 }
 0x183   : > { %v1244_v8 = vsel %vm1233_vm10, %v1227_v4, %v2102_v60  ;;  %v1245_v22 = vsel %vm1233_vm10, %v1228_v2, %v2103_v59 }
 0x184   : > { %v1258_v13 = vsel %vm1250_vm11, %v1241_v18, %v2098_v48  ;;  %v1257_v34 = vsel %vm1250_vm11, %v1240_v17, %v2097_v62 }
 0x185   : > { %v1274_v3 = vsel %vm1267_vm12, %v1257_v34, %v2107_v53  ;;  %v1275_v45 = vsel %vm1267_vm12, %v1258_v13, %v2108_v6 }
 0x186   : > { %v1287_v54 = vpack.c.bf16 %v1275_v45, %v1274_v3 }
 0x188   : > { %v2116_v29 = vpop.permute.xlu1 %2115  ;;  %1746 = vmatmul.msk.bf16.gmra.mxu1 %vm1332_vm13, %v1287_v54 }
 0x189   : > { %v2111_v36 = vpop.permute.xlu0 %2110  ;;  %v2118_v37 = vunpack.i.h.bf16 %v2116_v29  ;;  %v2117_v1 = vunpack.i.l.bf16 %v2116_v29 }
 0x18a   : > { %v2113_v12 = vunpack.i.h.bf16 %v2111_v36  ;;  %v2112_v11 = vunpack.i.l.bf16 %v2111_v36 }
 0x18c   : > { %v1261_v23 = vsel %vm1250_vm11, %v1244_v8, %v2112_v11  ;;  %v1262_v42 = vsel %vm1250_vm11, %v1245_v22, %v2113_v12 }
 0x18d   : > { %v1278_v58 = vsel %vm1267_vm12, %v1261_v23, %v2117_v1  ;;  %v1279_v14 = vsel %vm1267_vm12, %v1262_v42, %v2118_v37 }
 0x18e   : > { %v1289_v28 = vpack.c.bf16 %v1279_v14, %v1278_v58 }
 0x190   : > { %1748 = vmatmul.msk.bf16.gmra.mxu2 %vm1332_vm13, %v1289_v28  ;;  %v2131_v25 = vpop.permute.xlu1 %2130 }
 0x191   : > { %v2126_v21 = vpop.permute.xlu0 %2125  ;;  %v2133_v27 = vunpack.i.h.bf16 %v2131_v25  ;;  %v2132_v31 = vunpack.i.l.bf16 %v2131_v25 }
 0x192   : > { %v2128_v49 = vunpack.i.h.bf16 %v2126_v21  ;;  %v2127_v30 = vunpack.i.l.bf16 %v2126_v21 }
 0x194   : > { %v1231_v43 = vsel %vm1216_vm9, %v1214_v39, %v2127_v30  ;;  %v1232_v47 = vsel %vm1216_vm9, %v1215_v33, %v2128_v49 }
 0x195   : > { %v1248_v44 = vsel %vm1233_vm10, %v1231_v43, %v2132_v31  ;;  %v1249_v46 = vsel %vm1233_vm10, %v1232_v47, %v2133_v27 }
 0x196   : > { %v1265_v56 = vsel %vm1250_vm11, %v1248_v44, %v2137_v50  ;;  %v1266_v32 = vsel %vm1250_vm11, %v1249_v46, %v2138_v24 }
 0x199   : > { %v2141_v9 = vpop.permute.xlu0 %2140 }
 0x19a   : > { %v2143_v61 = vunpack.i.h.bf16 %v2141_v9  ;;  %v2142_v55 = vunpack.i.l.bf16 %v2141_v9 }
 0x19c   : > { %v1282_v20 = vsel %vm1267_vm12, %v1265_v56, %v2142_v55  ;;  %v1283_v51 = vsel %vm1267_vm12, %v1266_v32, %v2143_v61 }
 0x19d   : > { %v1291_v40 = vpack.c.bf16 %v1283_v51, %v1282_v20 }
 0x19f   : > { %1750 = vmatmul.msk.bf16.gmra.mxu3 %vm1332_vm13, %v1291_v40 }
 0x1bd   : > { %v1370_v6 = vpop.f32.mrf.mxu0 }
 0x1be   : > { %v1371_v53 = vadd.f32 %v3154_v5, %v1370_v6 }
 0x1c0   : > { %1410 = vst.msk [vmem:[%s2288_s29] sm:$0xff] %vm1148_vm4, %v1371_v53  ;;  %v1465_v57 = vmul.f32 %v1371_v53, %v1371_v53  ;;  %v1426_v48 = vsel %vm1148_vm4, %v1371_v53, 0.0 }
 0x1c2   : > { %v1481_v7 = vsel %vm1148_vm4, %v1465_v57, 0.0 }
 0x1c5   : > { %v1372_v52 = vpop.f32.mrf.mxu0 }
 0x1c6   : > { %v1373_v38 = vadd.f32 %v3154_v5, %v1372_v52 }
 0x1c8   : > { %1411 = vst.msk [vmem:[%s2288_s29 + $0x8] sm:$0xff] %vm1148_vm4, %v1373_v38  ;;  %v1427_v62 = vsel %vm1148_vm4, %v1373_v38, 0.0  ;;  %v1466_v17 = vmul.f32 %v1373_v38, %v1373_v38 }
 0x1c9   : > { %v1428_v18 = vadd.f32 %v1427_v62, %v1426_v48 }
 0x1ca   : > { %v1482_v16 = vsel %vm1148_vm4, %v1466_v17, 0.0 }
 0x1cb   : > { %v1483_v13 = vadd.f32 %v1482_v16, %v1481_v7 }
 0x1d4   : > { %v1380_v34 = vpop.f32.mrf.mxu1 }
 0x1d5   : > { %v1381_v3 = vadd.f32 %v3154_v5, %v1380_v34 }
 0x1d7   : > { %1414 = vst.msk [vmem:[%s2288_s29 + $0x20] sm:$0xff] %vm1148_vm4, %v1381_v3  ;;  %v1469_v12 = vmul.f32 %v1381_v3, %v1381_v3  ;;  %v1433_v23 = vsel %vm1148_vm4, %v1381_v3, 0.0 }
 0x1d9   : > { %v1488_v28 = vsel %vm1148_vm4, %v1469_v12, 0.0 }
 0x1da   : > { %v1390_v45 = vpop.f32.mrf.mxu2 }
 0x1db   : > { %v1391_v0 = vadd.f32 %v3154_v5, %v1390_v45 }
 0x1dc   : > { %v1382_v63 = vpop.f32.mrf.mxu1 }
 0x1dd   : > { %1418 = vst.msk [vmem:[%s2288_s29 + $0x40] sm:$0xff] %vm1148_vm4, %v1391_v0  ;;  %v1383_v54 = vadd.f32 %v3154_v5, %v1382_v63  ;;  %v1473_v61 = vmul.f32 %v1391_v0, %v1391_v0  ;;  %v1441_v51 = vsel %vm1148_vm4, %v1391_v0, 0.0 }
 0x1df   : > { %1415 = vst.msk [vmem:[%s2288_s29 + $0x28] sm:$0xff] %vm1148_vm4, %v1383_v54  ;;  %v1470_v33 = vmul.f32 %v1383_v54, %v1383_v54  ;;  %v1435_v31 = vsel %vm1148_vm4, %v1383_v54, 0.0  ;;  %v1496_v57 = vsel %vm1148_vm4, %v1473_v61, 0.0 }
 0x1e1   : > { %v1490_v24 = vsel %vm1148_vm4, %v1470_v33, 0.0 }
 0x1e2   : > { %v1392_v35 = vpop.f32.mrf.mxu2 }
 0x1e3   : > { %v1393_v19 = vadd.f32 %v3154_v5, %v1392_v35 }
 0x1e5   : > { %1419 = vst.msk [vmem:[%s2288_s29 + $0x48] sm:$0xff] %vm1148_vm4, %v1393_v19  ;;  %v1474_v62 = vmul.f32 %v1393_v19, %v1393_v19  ;;  %v1443_v17 = vsel %vm1148_vm4, %v1393_v19, 0.0 }
 0x1e7   : > { %v1498_v16 = vsel %vm1148_vm4, %v1474_v62, 0.0 }
 0x1eb   : > { %v1375_v59 = vpop.f32.mrf.mxu0 }
 0x1ec   : > { %v1376_v60 = vadd.f32 %v3154_v5, %v1375_v59 }
 0x1ee   : > { %1412 = vst.msk [vmem:[%s2288_s29 + $0x10] sm:$0xff] %vm1148_vm4, %v1376_v60  ;;  %v1467_v29 = vmul.f32 %v1376_v60, %v1376_v60  ;;  %v1429_v36 = vsel %vm1148_vm4, %v1376_v60, 0.0 }
 0x1ef   : > { %v1430_v2 = vadd.f32 %v1429_v36, %v1428_v18 }
 0x1f0   : > { %v1484_v1 = vsel %vm1148_vm4, %v1467_v29, 0.0 }
 0x1f1   : > { %v1485_v22 = vadd.f32 %v1484_v1, %v1483_v13 }
 0x1f3   : > { %v1377_v37 = vpop.f32.mrf.mxu0 }
 0x1f4   : > { %v1378_v4 = vadd.f32 %v3154_v5, %v1377_v37 }
 0x1f6   : > { %1413 = vst.msk [vmem:[%s2288_s29 + $0x18] sm:$0xff] %vm1148_vm4, %v1378_v4  ;;  %v1431_v11 = vsel %vm1148_vm4, %v1378_v4, 0.0  ;;  %v1468_v8 = vmul.f32 %v1378_v4, %v1378_v4 }
 0x1f7   : > { %v1432_v10 = vadd.f32 %v1431_v11, %v1430_v2 }
 0x1f8   : > { %v1486_v42 = vsel %vm1148_vm4, %v1468_v8, 0.0 }
 0x1f9   : > { %v1434_v58 = vadd.f32 %v1433_v23, %v1432_v10  ;;  %v1487_v14 = vadd.f32 %v1486_v42, %v1485_v22 }
 0x1fa   : > { %v1400_v26 = vpop.f32.mrf.mxu3 }
 0x1fb   : > { %v1489_v15 = vadd.f32 %v1488_v28, %v1487_v14  ;;  %v1401_v21 = vadd.f32 %v3154_v5, %v1400_v26  ;;  %v1436_v43 = vadd.f32 %v1435_v31, %v1434_v58 }
 0x1fd   : > { %1422 = vst.msk [vmem:[%s2288_s29 + $0x60] sm:$0xff] %vm1148_vm4, %v1401_v21  ;;  %v1491_v9 = vadd.f32 %v1490_v24, %v1489_v15  ;;  %v1477_v29 = vmul.f32 %v1401_v21, %v1401_v21  ;;  %v1449_v1 = vsel %vm1148_vm4, %v1401_v21, 0.0 }
 0x1ff   : > { %v1504_v12 = vsel %vm1148_vm4, %v1477_v29, 0.0 }
 0x202   : > { %v1402_v25 = vpop.f32.mrf.mxu3 }
 0x203   : > { %v1403_v49 = vadd.f32 %v3154_v5, %v1402_v25 }
 0x205   : > { %1423 = vst.msk [vmem:[%s2288_s29 + $0x68] sm:$0xff] %vm1148_vm4, %v1403_v49  ;;  %v1385_v30 = vpop.f32.mrf.mxu1  ;;  %v1478_v11 = vmul.f32 %v1403_v49, %v1403_v49  ;;  %v1451_v22 = vsel %vm1148_vm4, %v1403_v49, 0.0 }
 0x206   : > { %v1386_v39 = vadd.f32 %v3154_v5, %v1385_v30 }
 0x207   : > { %v1506_v42 = vsel %vm1148_vm4, %v1478_v11, 0.0 }
 0x208   : > { %1416 = vst.msk [vmem:[%s2288_s29 + $0x30] sm:$0xff] %vm1148_vm4, %v1386_v39  ;;  %v1471_v27 = vmul.f32 %v1386_v39, %v1386_v39  ;;  %v1437_v41 = vsel %vm1148_vm4, %v1386_v39, 0.0 }
 0x209   : > { %v1438_v46 = vadd.f32 %v1437_v41, %v1436_v43 }
 0x20a   : > { %v1492_v50 = vsel %vm1148_vm4, %v1471_v27, 0.0 }
 0x20b   : > { %v1493_v32 = vadd.f32 %v1492_v50, %v1491_v9 }
 0x20d   : > { %v1387_v47 = vpop.f32.mrf.mxu1 }
 0x20e   : > { %v1388_v44 = vadd.f32 %v3154_v5, %v1387_v47 }
 0x210   : > { %1417 = vst.msk [vmem:[%s2288_s29 + $0x38] sm:$0xff] %vm1148_vm4, %v1388_v44  ;;  %v1439_v55 = vsel %vm1148_vm4, %v1388_v44, 0.0  ;;  %v1472_v56 = vmul.f32 %v1388_v44, %v1388_v44 }
 0x211   : > { %v1440_v20 = vadd.f32 %v1439_v55, %v1438_v46 }
 0x212   : > { %v1494_v40 = vsel %vm1148_vm4, %v1472_v56, 0.0 }
 0x213   : > { %v1442_v6 = vadd.f32 %v1441_v51, %v1440_v20  ;;  %v1495_v53 = vadd.f32 %v1494_v40, %v1493_v32  ;;  %v1395_v52 = vpop.f32.mrf.mxu2 }
 0x214   : > { %v1396_v38 = vadd.f32 %v3154_v5, %v1395_v52 }
 0x215   : > { %v1497_v48 = vadd.f32 %v1496_v57, %v1495_v53  ;;  %v1444_v7 = vadd.f32 %v1443_v17, %v1442_v6 }
 0x216   : > { %1420 = vst.msk [vmem:[%s2288_s29 + $0x50] sm:$0xff] %vm1148_vm4, %v1396_v38  ;;  %v1475_v18 = vmul.f32 %v1396_v38, %v1396_v38  ;;  %v1445_v13 = vsel %vm1148_vm4, %v1396_v38, 0.0 }
 0x217   : > { %v1499_v3 = vadd.f32 %v1498_v16, %v1497_v48  ;;  %v1446_v63 = vadd.f32 %v1445_v13, %v1444_v7 }
 0x218   : > { %v1500_v0 = vsel %vm1148_vm4, %v1475_v18, 0.0 }
 0x219   : > { %v1501_v19 = vadd.f32 %v1500_v0, %v1499_v3 }
 0x21b   : > { %v1397_v34 = vpop.f32.mrf.mxu2 }
 0x21c   : > { %v1398_v45 = vadd.f32 %v3154_v5, %v1397_v34 }
 0x21e   : > { %1421 = vst.msk [vmem:[%s2288_s29 + $0x58] sm:$0xff] %vm1148_vm4, %v1398_v45  ;;  %v1447_v54 = vsel %vm1148_vm4, %v1398_v45, 0.0  ;;  %v1476_v35 = vmul.f32 %v1398_v45, %v1398_v45 }
 0x21f   : > { %v1448_v59 = vadd.f32 %v1447_v54, %v1446_v63 }
 0x220   : > { %v1502_v60 = vsel %vm1148_vm4, %v1476_v35, 0.0 }
 0x221   : > { %v1503_v36 = vadd.f32 %v1502_v60, %v1501_v19  ;;  %v1450_v2 = vadd.f32 %v1449_v1, %v1448_v59 }
 0x222   : > { %v1405_v37 = vpop.f32.mrf.mxu3 }
 0x223   : > { %v1406_v4 = vadd.f32 %v3154_v5, %v1405_v37  ;;  %v1505_v8 = vadd.f32 %v1504_v12, %v1503_v36  ;;  %v1452_v23 = vadd.f32 %v1451_v22, %v1450_v2 }
 0x225   : > { %1424 = vst.msk [vmem:[%s2288_s29 + $0x70] sm:$0xff] %vm1148_vm4, %v1406_v4  ;;  %v1479_v10 = vmul.f32 %v1406_v4, %v1406_v4  ;;  %v1453_v58 = vsel %vm1148_vm4, %v1406_v4, 0.0  ;;  %v1507_v14 = vadd.f32 %v1506_v42, %v1505_v8 }
 0x226   : > { %v1454_v21 = vadd.f32 %v1453_v58, %v1452_v23 }
 0x227   : > { %v1508_v15 = vsel %vm1148_vm4, %v1479_v10, 0.0 }
 0x228   : > { %v1509_v39 = vadd.f32 %v1508_v15, %v1507_v14 }
 0x22a   : > { %v1407_v28 = vpop.f32.mrf.mxu3 }
 0x22b   : > { %v1408_v26 = vadd.f32 %v3154_v5, %v1407_v28 }
 0x22d   : > { %1425 = vst.msk [vmem:[%s2288_s29 + $0x78] sm:$0xff] %vm1148_vm4, %v1408_v26  ;;  %v1455_v25 = vsel %vm1148_vm4, %v1408_v26, 0.0  ;;  %v1480_v30 = vmul.f32 %v1408_v26, %v1408_v26 }
 0x22e   : > { %v1456_v49 = vadd.f32 %v1455_v25, %v1454_v21 }
 0x22f   : > { %v1510_v33 = vsel %vm1148_vm4, %v1480_v30, 0.0 }
 0x230   : > { %v1457_v27 = vrot.slane %v1456_v49, 4  ;;  %v1511_v31 = vadd.f32 %v1510_v33, %v1509_v39 }
 0x232   : > { %v1458_v41 = vadd.f32 %v1457_v27, %v1456_v49  ;;  %v1512_v43 = vrot.slane %v1511_v31, 4 }
 0x234   : > { %v1459_v47 = vrot.slane %v1458_v41, 2  ;;  %v1513_v24 = vadd.f32 %v1512_v43, %v1511_v31 }
 0x236   : > { %v1460_v50 = vadd.f32 %v1459_v47, %v1458_v41  ;;  %v1514_v5 = vrot.slane %v1513_v24, 2 }
 0x238   : > { %v1461_v44 = vrot.slane %v1460_v50, 1  ;;  %v1515_v46 = vadd.f32 %v1514_v5, %v1513_v24 }
 0x23a   : > { %v1462_v9 = vadd.f32 %v1461_v44, %v1460_v50  ;;  %v1516_v61 = vrot.slane %v1515_v46, 1 }
 0x23c   : > { %1464 = vst.msk [vmem:[%s361_s14] sm:$0x1] %vm1463_vm14, %v1462_v9  ;;  %v1517_v55 = vadd.f32 %v1516_v61, %v1515_v46 }
 0x23e   : > { %1518 = vst.msk [vmem:[%s368_s17] sm:$0x1] %vm1463_vm14, %v1517_v55 }
 0x23f PF: > { %s18_s28 = sadd.s32 1, %s2183_s28   ;;  %s3272_s16 = sld [smem:[#allocation3_spill]] }
 0x240   : > { %p15_p9 = scmp.ge.s32.totalorder %s18_s28, 6   ;;  %s3273_s8 = sld [smem:[#allocation4_spill]] }
 0x241   : > { %s3274_s24 = smov %s2175_s26  ;;  %s3275_s25 = smov %s2179_s27 }
 0x242   :  { %17 = sbr.rel (!%p15_p9) target bundleno = 3 (0x3), region = 106 }
 0x245   : > { %s3276_s26 = smov %s3272_s16 }
 0x246   : > { %s3277_s27 = smov %s3273_s8 }

</bundles_post_ra>
